<compile_context>
chip_gen: v7x
topology: tpu7x:2x2x1
jax: 0.10.0
libtpu: 0.0.40
codegen_flags: <defaults>
</compile_context>

<pallas_src>
import jax
import jax.numpy as jnp
from jax import lax
from jax.experimental import pallas as pl
from jax.experimental.pallas import tpu as pltpu


# ----------------------------------------------------------------------------
# In-kernel helpers (values are (channels, H*W); spatial axis = lanes)
# ----------------------------------------------------------------------------
def _roll_lanes(v, shift, size):
    """Lane rotation equivalent to jnp.roll(v, shift, axis=-1) (XLU rotate)."""
    s = shift % size
    if s == 0:
        return v
    return pltpu.roll(v, s, axis=v.ndim - 1)


def _conv3x3_circ_im2col(x2d, w_big, bias, wrap_masks, W):
    """Circular-padded 3x3 conv as a single im2col MXU matmul + bias + ReLU.

    x2d:        (Cin, H*W), Cin % 8 == 0 (channels zero-padded in the wrapper).
    w_big:      (Cout, 9*Cin), column index = (ky*3 + kx)*Cin + cin.
    bias:       (Cout, 1)
    wrap_masks: (mask_left, mask_right), each (Cin, H*W) bool (w==0 / w==W-1).
    returns (Cout, H*W)
    """
    Cin, HW = x2d.shape
    mask_l, mask_r = wrap_masks

    # Vertical (H) torus shift is an exact flat roll by -dy*W.
    rows = {dy: _roll_lanes(x2d, -dy * W, HW) for dy in (-1, 0, 1)}

    slabs = []
    for ky in range(3):
        r = rows[ky - 1]
        for kx in range(3):
            dx = kx - 1
            if dx == 0:
                slabs.append(r)
            else:
                # Horizontal (W) shift: interior is a flat roll by -dx; the
                # wrapped column re-uses the same row via a roll by -dx +/- W.
                interior = _roll_lanes(r, -dx, HW)
                wrapped = _roll_lanes(r, -dx + (W if dx > 0 else -W), HW)
                slabs.append(jnp.where(mask_r if dx > 0 else mask_l,
                                       wrapped, interior))

    col = jnp.concatenate(slabs, axis=0)                       # (9*Cin, HW)
    acc = jnp.dot(w_big, col, preferred_element_type=jnp.float32)
    return jnp.maximum(acc + bias, 0.0)                        # (Cout, HW)


# ----------------------------------------------------------------------------
# Fully fused model kernel: one grid step = full block chain for one batch elem
# ----------------------------------------------------------------------------
def _build_model_kernel(metas, H, W):
    HW = H * W

    def kernel(*args):
        x_ref = args[0]
        o_ref = args[-1]
        wrefs = args[1:-1]

        # --- hoisted circular-wrap machinery (once per kernel invocation) ---
        masks = {}
        for m in metas:
            for cin in (m["cin"], m["cout"]):
                if cin not in masks:
                    colw = lax.broadcasted_iota(jnp.int32, (cin, HW), 1) % W
                    masks[cin] = (colw == 0, colw == (W - 1))

        x = x_ref[0]                                           # (Cin0, HW)
        ri = 0
        for m in metas:
            cin, cout, cr = m["cin"], m["cout"], m["cr"]
            w1 = wrefs[ri][...]                                # (Cout, 9*Cin)
            w2 = wrefs[ri + 1][...]                            # (Cout, 9*Cout)
            small = wrefs[ri + 2][...]                         # (Cout, k)
            ri += 3

            b1 = small[:, 0:1]
            b2 = small[:, 1:2]
            sew1 = small[:, 2:2 + cr]                          # (Cout, Cr)
            sew2t = small[:, 2 + cr:2 + 2 * cr]                # (Cout, Cr)

            # conv -> ReLU -> conv -> ReLU (each conv = one MXU matmul)
            h1 = _conv3x3_circ_im2col(x, w1, b1, masks[cin], W)
            h2 = _conv3x3_circ_im2col(h1, w2, b2, masks[cout], W)

            # SELayer: avgpool -> FC -> ReLU -> FC -> sigmoid
            y = jnp.sum(h2, axis=1, keepdims=True) * (1.0 / HW)        # (Cout,1)
            hid = jnp.maximum(jnp.sum(sew1 * y, axis=0, keepdims=True), 0.0)
            s = jax.nn.sigmoid(jnp.sum(sew2t * hid, axis=1, keepdims=True))

            # skip path: 1x1 change_n_channels conv or identity
            if m["has_cnc"]:
                cw = wrefs[ri][...]                            # (Cout, Cin)
                ri += 1
                cb = small[:, 2 + 2 * cr:3 + 2 * cr]
                skip = jnp.dot(cw, x, preferred_element_type=jnp.float32) + cb
            else:
                skip = x

            x = jnp.maximum(h2 * s + skip, 0.0)                # (Cout, HW)

        o_ref[0] = x.astype(o_ref.dtype)

    return kernel


def build_residual_model(metas, H, W):
    """Returns a jitted forward(x_nchw, packed) -> NCHW output."""
    HW = H * W
    cin0 = metas[0]["cin"]
    cout_last = metas[-1]["cout"]
    for i in range(1, len(metas)):
        # TODO(synk): mid-chain channel zero-padding not implemented; inter-block
        # channel counts must already be multiples of 8 (true for this model).
        assert metas[i]["cin"] == metas[i - 1]["cout"]

    kernel = _build_model_kernel(metas, H, W)

    def forward(x_nchw, packed):
        N, C, Hh, Ww = x_nchw.shape
        x = x_nchw.astype(jnp.float32).reshape(N, C, HW)       # pure reshape
        if cin0 > C:                                           # pad 4 -> 8 chans
            x = jnp.pad(x, ((0, 0), (0, cin0 - C), (0, 0)))

        in_arrays = [x]
        in_specs = [pl.BlockSpec((1, cin0, HW), lambda n: (n, 0, 0))]
        for m, p in zip(metas, packed):
            names = ("w1", "w2", "small") + (("cnc_w",) if m["has_cnc"] else ())
            for name in names:
                arr = p[name]
                in_arrays.append(arr)
                in_specs.append(pl.BlockSpec(arr.shape, lambda n: (0, 0)))

        out = pl.pallas_call(
            kernel,
            out_shape=jax.ShapeDtypeStruct((N, cout_last, HW), jnp.float32),
            grid_spec=pltpu.PrefetchScalarGridSpec(
                num_scalar_prefetch=0,
                grid=(N,),
                in_specs=in_specs,
                out_specs=pl.BlockSpec((1, cout_last, HW), lambda n: (n, 0, 0)),
            ),
            compiler_params=pltpu.CompilerParams(
                dimension_semantics=("parallel",)),   # 2 TCs on v7x share batch
        )(*in_arrays)
        return out.reshape(N, cout_last, Hh, Ww)

    return jax.jit(forward)


# ----------------------------------------------------------------------------
# One-time (outside jit) weight re-layout into the kernel's packed format
# ----------------------------------------------------------------------------
def pack_params(params):
    metas, packed = [], []
    for p in params:
        _, _, cin, cout = p["conv1_w"].shape
        cr = p["se_w1"].shape[1]
        cin_pad = -(-cin // 8) * 8
        has_cnc = "cnc_w" in p

        w1 = p["conv1_w"]                                      # (3,3,Cin,Cout)
        if cin_pad != cin:
            w1 = jnp.pad(w1, ((0, 0), (0, 0), (0, cin_pad - cin), (0, 0)))
        w1 = jnp.transpose(w1, (3, 0, 1, 2)).reshape(cout, 9 * cin_pad)
        w2 = jnp.transpose(p["conv2_w"], (3, 0, 1, 2)).reshape(cout, 9 * cout)

        small_parts = [p["conv1_b"].reshape(cout, 1),
                       p["conv2_b"].reshape(cout, 1),
                       p["se_w1"],
                       jnp.transpose(p["se_w2"])]
        entry = {"w1": w1, "w2": w2}
        if has_cnc:
            cw = p["cnc_w"]                                    # (Cin, Cout)
            if cin_pad != cin:
                cw = jnp.pad(cw, ((0, cin_pad - cin), (0, 0)))
            entry["cnc_w"] = jnp.transpose(cw)                 # (Cout, Cin_pad)
            small_parts.append(p["cnc_b"].reshape(cout, 1))
        entry["small"] = jnp.concatenate(small_parts, axis=1)  # (Cout, 6 or 7)

        packed.append(entry)
        metas.append({"cin": cin_pad, "cout": cout, "cr": cr, "has_cnc": has_cnc})
    return packed, metas


# ----------------------------------------------------------------------------
# Pure-JAX reference (for correctness check)
# ----------------------------------------------------------------------------
def _ref_conv3x3(x, w, b):
    xpad = jnp.pad(x, ((0, 0), (1, 1), (1, 1), (0, 0)), mode="wrap")
    y = lax.conv_general_dilated(
        xpad, w, window_strides=(1, 1), padding="VALID",
        dimension_numbers=("NHWC", "HWIO", "NHWC"))
    return y + b[None, None, None, :]


def _ref_forward(x_nchw, params):
    x = jnp.transpose(x_nchw, (0, 2, 3, 1)).astype(jnp.float32)
    for p in params:
        identity = x
        h = jax.nn.relu(_ref_conv3x3(x, p["conv1_w"], p["conv1_b"]))
        h = jax.nn.relu(_ref_conv3x3(h, p["conv2_w"], p["conv2_b"]))
        y = jnp.mean(h, axis=(1, 2))                                   # (N, C)
        s = jax.nn.sigmoid(jax.nn.relu(y @ p["se_w1"]) @ p["se_w2"])
        h = h * s[:, None, None, :]
        if "cnc_w" in p:
            skip = jnp.einsum("nhwc,cd->nhwd", identity, p["cnc_w"]) + p["cnc_b"]
        else:
            skip = identity
        x = jax.nn.relu(h + skip)
    return jnp.transpose(x, (0, 3, 1, 2))


# ----------------------------------------------------------------------------
# Deterministic parameter construction (torch-equivalent layouts)
# ----------------------------------------------------------------------------
def make_params(block_kwargs, key, reduction=16):
    params = []
    for kwargs in block_kwargs:
        cin, cout = kwargs["in_channels"], kwargs["out_channels"]
        cr = max(cout // reduction, 1)
        key, *ks = jax.random.split(key, 8)
        p = {
            "conv1_w": 0.1 * jax.random.normal(ks[0], (3, 3, cin, cout), jnp.float32),
            "conv1_b": 0.05 * jax.random.normal(ks[1], (cout,), jnp.float32),
            "conv2_w": 0.1 * jax.random.normal(ks[2], (3, 3, cout, cout), jnp.float32),
            "conv2_b": 0.05 * jax.random.normal(ks[3], (cout,), jnp.float32),
            "se_w1": 0.2 * jax.random.normal(ks[4], (cout, cr), jnp.float32),
            "se_w2": 0.2 * jax.random.normal(ks[5], (cr, cout), jnp.float32),
        }
        if cin != cout:
            p["cnc_w"] = 0.1 * jax.random.normal(ks[6], (cin, cout), jnp.float32)
            p["cnc_b"] = 0.05 * jax.random.normal(key, (cout,), jnp.float32)
        params.append(p)
    return params


if __name__ == "__main__":
    # Two BasicConvolutionalBlocks: 4->32 (with 1x1 change_n_channels) and
    # 32->32 (identity skip).  squeeze_excitation=True (reduction=16 -> hidden=2),
    # ReLU activations, circular padding, n_layers=2, normalize=False,
    # downsample / postprocessing_layer = nn.Identity().
    block_kwargs = [
        dict(in_channels=4, out_channels=32, kernel_size=3, n_layers=2),
        dict(in_channels=32, out_channels=32, kernel_size=3, n_layers=2),
    ]

    key = jax.random.PRNGKey(0)
    kx, kp = jax.random.split(key)
    x = jax.random.normal(kx, (2, 4, 16, 16), jnp.float32)     # NCHW, like PyTorch
    params = make_params(block_kwargs, kp)

    # One-time weight re-layout, outside the jitted forward.
    packed, metas = pack_params(params)
    fwd = build_residual_model(metas, H=16, W=16)

    out = jax.block_until_ready(fwd(x, packed))
    ref = jax.block_until_ready(_ref_forward(x, params))

    assert out.shape == (2, 32, 16, 16), out.shape
    max_err = float(jnp.max(jnp.abs(out - ref)))
    assert jnp.allclose(out, ref, atol=1e-4, rtol=1e-4), max_err

    print("KERNEL_OK")
</pallas_src>

<mosaic_0001>
module attributes {stable_mosaic.version = 11 : i64} {
  func.func @kernel(%arg0: i32, %arg1: memref<1x8x256xf32, #tpu.memory_space<vmem>>, %arg2: memref<32x72xf32, #tpu.memory_space<vmem>>, %arg3: memref<32x288xf32, #tpu.memory_space<vmem>>, %arg4: memref<32x7xf32, #tpu.memory_space<vmem>>, %arg5: memref<32x8xf32, #tpu.memory_space<vmem>>, %arg6: memref<32x288xf32, #tpu.memory_space<vmem>>, %arg7: memref<32x288xf32, #tpu.memory_space<vmem>>, %arg8: memref<32x6xf32, #tpu.memory_space<vmem>>, %arg9: memref<1x32x256xf32, #tpu.memory_space<vmem>>) attributes {dimension_semantics = [#tpu.dimension_semantics<parallel>], iteration_bounds = array<i64: 2>, scalar_prefetch = 0 : i64, scratch_operands = 0 : i64, tpu.core_type = #tpu.core_type<tc>, window_params = [{transform_indices = @transform_0, window_bounds = array<i64: 1, 8, 256>}, {pipeline_mode = #tpu.pipeline_mode<synchronous>, transform_indices = @transform_1, window_bounds = array<i64: 32, 72>}, {pipeline_mode = #tpu.pipeline_mode<synchronous>, transform_indices = @transform_2, window_bounds = array<i64: 32, 288>}, {pipeline_mode = #tpu.pipeline_mode<synchronous>, transform_indices = @transform_3, window_bounds = array<i64: 32, 7>}, {pipeline_mode = #tpu.pipeline_mode<synchronous>, transform_indices = @transform_4, window_bounds = array<i64: 32, 8>}, {pipeline_mode = #tpu.pipeline_mode<synchronous>, transform_indices = @transform_5, window_bounds = array<i64: 32, 288>}, {pipeline_mode = #tpu.pipeline_mode<synchronous>, transform_indices = @transform_6, window_bounds = array<i64: 32, 288>}, {pipeline_mode = #tpu.pipeline_mode<synchronous>, transform_indices = @transform_7, window_bounds = array<i64: 32, 6>}, {transform_indices = @transform_8, window_bounds = array<i64: 1, 32, 256>}]} {
    %0 = tpu.iota {dimensions = array<i32: 1>} : vector<8x256xi32>
    %c16_i32 = arith.constant 16 : i32
    %c0_i32 = arith.constant 0 : i32
    %1 = arith.cmpi eq, %c16_i32, %c0_i32 : i32
    %c1_i32 = arith.constant 1 : i32
    %2 = arith.select %1, %c1_i32, %c16_i32 : i32
    %3 = vector.broadcast %2 : i32 to vector<8x256xi32>
    %4 = arith.remsi %0, %3 : vector<8x256xi32>
    %c0_i32_0 = arith.constant 0 : i32
    %5 = vector.broadcast %c0_i32_0 : i32 to vector<8x256xi32>
    %6 = arith.cmpi ne, %4, %5 : vector<8x256xi32>
    %c0_i32_1 = arith.constant 0 : i32
    %7 = vector.broadcast %c0_i32_1 : i32 to vector<8x256xi32>
    %8 = arith.cmpi slt, %4, %7 : vector<8x256xi32>
    %c0_i32_2 = arith.constant 0 : i32
    %9 = arith.cmpi slt, %2, %c0_i32_2 : i32
    %10 = vector.broadcast %9 : i1 to vector<8x256xi1>
    %11 = vector.broadcast %10 : vector<8x256xi1> to vector<8x256xi1>
    %12 = arith.xori %8, %11 : vector<8x256xi1>
    %13 = arith.andi %12, %6 : vector<8x256xi1>
    %14 = vector.broadcast %2 : i32 to vector<8x256xi32>
    %15 = arith.addi %4, %14 : vector<8x256xi32>
    %16 = arith.select %13, %15, %4 : vector<8x256xi1>, vector<8x256xi32>
    %c0_i32_3 = arith.constant 0 : i32
    %17 = vector.broadcast %c0_i32_3 : i32 to vector<8x256xi32>
    %18 = arith.cmpi eq, %16, %17 : vector<8x256xi32>
    %c15_i32 = arith.constant 15 : i32
    %19 = vector.broadcast %c15_i32 : i32 to vector<8x256xi32>
    %20 = arith.cmpi eq, %16, %19 : vector<8x256xi32>
    %21 = tpu.iota {dimensions = array<i32: 1>} : vector<32x256xi32>
    %c16_i32_4 = arith.constant 16 : i32
    %c0_i32_5 = arith.constant 0 : i32
    %22 = arith.cmpi eq, %c16_i32_4, %c0_i32_5 : i32
    %c1_i32_6 = arith.constant 1 : i32
    %23 = arith.select %22, %c1_i32_6, %c16_i32_4 : i32
    %24 = vector.broadcast %23 : i32 to vector<32x256xi32>
    %25 = arith.remsi %21, %24 : vector<32x256xi32>
    %c0_i32_7 = arith.constant 0 : i32
    %26 = vector.broadcast %c0_i32_7 : i32 to vector<32x256xi32>
    %27 = arith.cmpi ne, %25, %26 : vector<32x256xi32>
    %c0_i32_8 = arith.constant 0 : i32
    %28 = vector.broadcast %c0_i32_8 : i32 to vector<32x256xi32>
    %29 = arith.cmpi slt, %25, %28 : vector<32x256xi32>
    %c0_i32_9 = arith.constant 0 : i32
    %30 = arith.cmpi slt, %23, %c0_i32_9 : i32
    %31 = vector.broadcast %30 : i1 to vector<32x256xi1>
    %32 = vector.broadcast %31 : vector<32x256xi1> to vector<32x256xi1>
    %33 = arith.xori %29, %32 : vector<32x256xi1>
    %34 = arith.andi %33, %27 : vector<32x256xi1>
    %35 = vector.broadcast %23 : i32 to vector<32x256xi32>
    %36 = arith.addi %25, %35 : vector<32x256xi32>
    %37 = arith.select %34, %36, %25 : vector<32x256xi1>, vector<32x256xi32>
    %c0_i32_10 = arith.constant 0 : i32
    %38 = vector.broadcast %c0_i32_10 : i32 to vector<32x256xi32>
    %39 = arith.cmpi eq, %37, %38 : vector<32x256xi32>
    %c15_i32_11 = arith.constant 15 : i32
    %40 = vector.broadcast %c15_i32_11 : i32 to vector<32x256xi32>
    %41 = arith.cmpi eq, %37, %40 : vector<32x256xi32>
    %c0 = arith.constant 0 : index
    %c0_12 = arith.constant 0 : index
    %c0_13 = arith.constant 0 : index
    %42 = vector.load %arg1[%c0, %c0_12, %c0_13] : memref<1x8x256xf32, #tpu.memory_space<vmem>>, vector<1x8x256xf32>
    %43 = vector.shape_cast %42 : vector<1x8x256xf32> to vector<8x256xf32>
    %c0_14 = arith.constant 0 : index
    %c0_15 = arith.constant 0 : index
    %44 = vector.load %arg2[%c0_14, %c0_15] : memref<32x72xf32, #tpu.memory_space<vmem>>, vector<32x72xf32>
    %c0_16 = arith.constant 0 : index
    %c0_17 = arith.constant 0 : index
    %45 = vector.load %arg3[%c0_16, %c0_17] : memref<32x288xf32, #tpu.memory_space<vmem>>, vector<32x288xf32>
    %c0_18 = arith.constant 0 : index
    %c0_19 = arith.constant 0 : index
    %46 = vector.load %arg4[%c0_18, %c0_19] : memref<32x7xf32, #tpu.memory_space<vmem>>, vector<32x7xf32>
    %47 = vector.extract_strided_slice %46 {offsets = [0, 0], sizes = [32, 1], strides = [1, 1]} : vector<32x7xf32> to vector<32x1xf32>
    %48 = vector.extract_strided_slice %46 {offsets = [0, 1], sizes = [32, 1], strides = [1, 1]} : vector<32x7xf32> to vector<32x1xf32>
    %49 = vector.extract_strided_slice %46 {offsets = [0, 2], sizes = [32, 2], strides = [1, 1]} : vector<32x7xf32> to vector<32x2xf32>
    %50 = vector.extract_strided_slice %46 {offsets = [0, 4], sizes = [32, 2], strides = [1, 1]} : vector<32x7xf32> to vector<32x2xf32>
    %c16_i32_20 = arith.constant 16 : i32
    %51 = tpu.dynamic_rotate %43 by %c16_i32_20 dim 1 : vector<8x256xf32>, i32 -> vector<8x256xf32>
    %c240_i32 = arith.constant 240 : i32
    %52 = tpu.dynamic_rotate %43 by %c240_i32 dim 1 : vector<8x256xf32>, i32 -> vector<8x256xf32>
    %c1_i32_21 = arith.constant 1 : i32
    %53 = tpu.dynamic_rotate %51 by %c1_i32_21 dim 1 : vector<8x256xf32>, i32 -> vector<8x256xf32>
    %c241_i32 = arith.constant 241 : i32
    %54 = tpu.dynamic_rotate %51 by %c241_i32 dim 1 : vector<8x256xf32>, i32 -> vector<8x256xf32>
    %55 = arith.select %18, %54, %53 : vector<8x256xi1>, vector<8x256xf32>
    %c255_i32 = arith.constant 255 : i32
    %56 = tpu.dynamic_rotate %51 by %c255_i32 dim 1 : vector<8x256xf32>, i32 -> vector<8x256xf32>
    %c15_i32_22 = arith.constant 15 : i32
    %57 = tpu.dynamic_rotate %51 by %c15_i32_22 dim 1 : vector<8x256xf32>, i32 -> vector<8x256xf32>
    %58 = arith.select %20, %57, %56 : vector<8x256xi1>, vector<8x256xf32>
    %c1_i32_23 = arith.constant 1 : i32
    %59 = tpu.dynamic_rotate %43 by %c1_i32_23 dim 1 : vector<8x256xf32>, i32 -> vector<8x256xf32>
    %c241_i32_24 = arith.constant 241 : i32
    %60 = tpu.dynamic_rotate %43 by %c241_i32_24 dim 1 : vector<8x256xf32>, i32 -> vector<8x256xf32>
    %61 = arith.select %18, %60, %59 : vector<8x256xi1>, vector<8x256xf32>
    %c255_i32_25 = arith.constant 255 : i32
    %62 = tpu.dynamic_rotate %43 by %c255_i32_25 dim 1 : vector<8x256xf32>, i32 -> vector<8x256xf32>
    %c15_i32_26 = arith.constant 15 : i32
    %63 = tpu.dynamic_rotate %43 by %c15_i32_26 dim 1 : vector<8x256xf32>, i32 -> vector<8x256xf32>
    %64 = arith.select %20, %63, %62 : vector<8x256xi1>, vector<8x256xf32>
    %c1_i32_27 = arith.constant 1 : i32
    %65 = tpu.dynamic_rotate %52 by %c1_i32_27 dim 1 : vector<8x256xf32>, i32 -> vector<8x256xf32>
    %c241_i32_28 = arith.constant 241 : i32
    %66 = tpu.dynamic_rotate %52 by %c241_i32_28 dim 1 : vector<8x256xf32>, i32 -> vector<8x256xf32>
    %67 = arith.select %18, %66, %65 : vector<8x256xi1>, vector<8x256xf32>
    %c255_i32_29 = arith.constant 255 : i32
    %68 = tpu.dynamic_rotate %52 by %c255_i32_29 dim 1 : vector<8x256xf32>, i32 -> vector<8x256xf32>
    %c15_i32_30 = arith.constant 15 : i32
    %69 = tpu.dynamic_rotate %52 by %c15_i32_30 dim 1 : vector<8x256xf32>, i32 -> vector<8x256xf32>
    %70 = arith.select %20, %69, %68 : vector<8x256xi1>, vector<8x256xf32>
    %71 = tpu.concatenate %55, %51, %58, %61, %43, %64, %67, %52, %70 in 0 : vector<8x256xf32>, vector<8x256xf32>, vector<8x256xf32>, vector<8x256xf32>, vector<8x256xf32>, vector<8x256xf32>, vector<8x256xf32>, vector<8x256xf32>, vector<8x256xf32> -> vector<72x256xf32>
    %cst = arith.constant dense<0.000000e+00> : vector<32x256xf32>
    %72 = tpu.matmul %44, %71, %cst {dimension_numbers = #tpu.dot_dimension_numbers<[1], [0], [0], [1], [0, 0, 1, 1], [], []>} : vector<32x72xf32>, vector<72x256xf32>, vector<32x256xf32> -> vector<32x256xf32>
    %73 = vector.broadcast %47 : vector<32x1xf32> to vector<32x256xf32>
    %74 = arith.addf %72, %73 : vector<32x256xf32>
    %cst_31 = arith.constant 0.000000e+00 : f32
    %75 = vector.broadcast %cst_31 : f32 to vector<32x256xf32>
    %76 = arith.maximumf %74, %75 : vector<32x256xf32>
    %c16_i32_32 = arith.constant 16 : i32
    %77 = tpu.dynamic_rotate %76 by %c16_i32_32 dim 1 : vector<32x256xf32>, i32 -> vector<32x256xf32>
    %c240_i32_33 = arith.constant 240 : i32
    %78 = tpu.dynamic_rotate %76 by %c240_i32_33 dim 1 : vector<32x256xf32>, i32 -> vector<32x256xf32>
    %c1_i32_34 = arith.constant 1 : i32
    %79 = tpu.dynamic_rotate %77 by %c1_i32_34 dim 1 : vector<32x256xf32>, i32 -> vector<32x256xf32>
    %c241_i32_35 = arith.constant 241 : i32
    %80 = tpu.dynamic_rotate %77 by %c241_i32_35 dim 1 : vector<32x256xf32>, i32 -> vector<32x256xf32>
    %81 = arith.select %39, %80, %79 : vector<32x256xi1>, vector<32x256xf32>
    %c255_i32_36 = arith.constant 255 : i32
    %82 = tpu.dynamic_rotate %77 by %c255_i32_36 dim 1 : vector<32x256xf32>, i32 -> vector<32x256xf32>
    %c15_i32_37 = arith.constant 15 : i32
    %83 = tpu.dynamic_rotate %77 by %c15_i32_37 dim 1 : vector<32x256xf32>, i32 -> vector<32x256xf32>
    %84 = arith.select %41, %83, %82 : vector<32x256xi1>, vector<32x256xf32>
    %c1_i32_38 = arith.constant 1 : i32
    %85 = tpu.dynamic_rotate %76 by %c1_i32_38 dim 1 : vector<32x256xf32>, i32 -> vector<32x256xf32>
    %c241_i32_39 = arith.constant 241 : i32
    %86 = tpu.dynamic_rotate %76 by %c241_i32_39 dim 1 : vector<32x256xf32>, i32 -> vector<32x256xf32>
    %87 = arith.select %39, %86, %85 : vector<32x256xi1>, vector<32x256xf32>
    %c255_i32_40 = arith.constant 255 : i32
    %88 = tpu.dynamic_rotate %76 by %c255_i32_40 dim 1 : vector<32x256xf32>, i32 -> vector<32x256xf32>
    %c15_i32_41 = arith.constant 15 : i32
    %89 = tpu.dynamic_rotate %76 by %c15_i32_41 dim 1 : vector<32x256xf32>, i32 -> vector<32x256xf32>
    %90 = arith.select %41, %89, %88 : vector<32x256xi1>, vector<32x256xf32>
    %c1_i32_42 = arith.constant 1 : i32
    %91 = tpu.dynamic_rotate %78 by %c1_i32_42 dim 1 : vector<32x256xf32>, i32 -> vector<32x256xf32>
    %c241_i32_43 = arith.constant 241 : i32
    %92 = tpu.dynamic_rotate %78 by %c241_i32_43 dim 1 : vector<32x256xf32>, i32 -> vector<32x256xf32>
    %93 = arith.select %39, %92, %91 : vector<32x256xi1>, vector<32x256xf32>
    %c255_i32_44 = arith.constant 255 : i32
    %94 = tpu.dynamic_rotate %78 by %c255_i32_44 dim 1 : vector<32x256xf32>, i32 -> vector<32x256xf32>
    %c15_i32_45 = arith.constant 15 : i32
    %95 = tpu.dynamic_rotate %78 by %c15_i32_45 dim 1 : vector<32x256xf32>, i32 -> vector<32x256xf32>
    %96 = arith.select %41, %95, %94 : vector<32x256xi1>, vector<32x256xf32>
    %97 = tpu.concatenate %81, %77, %84, %87, %76, %90, %93, %78, %96 in 0 : vector<32x256xf32>, vector<32x256xf32>, vector<32x256xf32>, vector<32x256xf32>, vector<32x256xf32>, vector<32x256xf32>, vector<32x256xf32>, vector<32x256xf32>, vector<32x256xf32> -> vector<288x256xf32>
    %cst_46 = arith.constant dense<0.000000e+00> : vector<32x256xf32>
    %98 = tpu.matmul %45, %97, %cst_46 {dimension_numbers = #tpu.dot_dimension_numbers<[1], [0], [0], [1], [0, 0, 1, 1], [], []>} : vector<32x288xf32>, vector<288x256xf32>, vector<32x256xf32> -> vector<32x256xf32>
    %99 = vector.broadcast %48 : vector<32x1xf32> to vector<32x256xf32>
    %100 = arith.addf %98, %99 : vector<32x256xf32>
    %cst_47 = arith.constant 0.000000e+00 : f32
    %101 = vector.broadcast %cst_47 : f32 to vector<32x256xf32>
    %102 = arith.maximumf %100, %101 : vector<32x256xf32>
    %cst_48 = arith.constant dense<0.000000e+00> : vector<32xf32>
    %103 = vector.multi_reduction <add>, %102, %cst_48 [1] : vector<32x256xf32> to vector<32xf32>
    %104 = vector.shape_cast %103 : vector<32xf32> to vector<32x1xf32>
    %cst_49 = arith.constant 3.906250e-03 : f32
    %105 = vector.broadcast %cst_49 : f32 to vector<32x1xf32>
    %106 = arith.mulf %104, %105 : vector<32x1xf32>
    %107 = vector.broadcast %106 : vector<32x1xf32> to vector<32x2xf32>
    %108 = arith.mulf %49, %107 : vector<32x2xf32>
    %cst_50 = arith.constant dense<0.000000e+00> : vector<2xf32>
    %109 = vector.multi_reduction <add>, %108, %cst_50 [0] : vector<32x2xf32> to vector<2xf32>
    %110 = vector.shape_cast %109 : vector<2xf32> to vector<1x2xf32>
    %cst_51 = arith.constant 0.000000e+00 : f32
    %111 = vector.broadcast %cst_51 : f32 to vector<1x2xf32>
    %112 = arith.maximumf %110, %111 : vector<1x2xf32>
    %113 = vector.broadcast %112 : vector<1x2xf32> to vector<32x2xf32>
    %114 = arith.mulf %50, %113 : vector<32x2xf32>
    %cst_52 = arith.constant dense<0.000000e+00> : vector<32xf32>
    %115 = vector.multi_reduction <add>, %114, %cst_52 [1] : vector<32x2xf32> to vector<32xf32>
    %116 = vector.shape_cast %115 : vector<32xf32> to vector<32x1xf32>
    %117 = arith.negf %116 : vector<32x1xf32>
    %118 = math.exp %117 : vector<32x1xf32>
    %cst_53 = arith.constant 1.000000e+00 : f32
    %119 = vector.broadcast %cst_53 : f32 to vector<32x1xf32>
    %120 = arith.addf %119, %118 : vector<32x1xf32>
    %121 = arith.divf %119, %120 : vector<32x1xf32>
    %c0_54 = arith.constant 0 : index
    %c0_55 = arith.constant 0 : index
    %122 = vector.load %arg5[%c0_54, %c0_55] : memref<32x8xf32, #tpu.memory_space<vmem>>, vector<32x8xf32>
    %123 = vector.extract_strided_slice %46 {offsets = [0, 6], sizes = [32, 1], strides = [1, 1]} : vector<32x7xf32> to vector<32x1xf32>
    %cst_56 = arith.constant dense<0.000000e+00> : vector<32x256xf32>
    %124 = tpu.matmul %122, %43, %cst_56 {dimension_numbers = #tpu.dot_dimension_numbers<[1], [0], [0], [1], [0, 0, 1, 1], [], []>} : vector<32x8xf32>, vector<8x256xf32>, vector<32x256xf32> -> vector<32x256xf32>
    %125 = vector.broadcast %123 : vector<32x1xf32> to vector<32x256xf32>
    %126 = arith.addf %124, %125 : vector<32x256xf32>
    %127 = vector.broadcast %121 : vector<32x1xf32> to vector<32x256xf32>
    %128 = arith.mulf %102, %127 : vector<32x256xf32>
    %129 = arith.addf %128, %126 : vector<32x256xf32>
    %cst_57 = arith.constant 0.000000e+00 : f32
    %130 = vector.broadcast %cst_57 : f32 to vector<32x256xf32>
    %131 = arith.maximumf %129, %130 : vector<32x256xf32>
    %c0_58 = arith.constant 0 : index
    %c0_59 = arith.constant 0 : index
    %132 = vector.load %arg6[%c0_58, %c0_59] : memref<32x288xf32, #tpu.memory_space<vmem>>, vector<32x288xf32>
    %c0_60 = arith.constant 0 : index
    %c0_61 = arith.constant 0 : index
    %133 = vector.load %arg7[%c0_60, %c0_61] : memref<32x288xf32, #tpu.memory_space<vmem>>, vector<32x288xf32>
    %c0_62 = arith.constant 0 : index
    %c0_63 = arith.constant 0 : index
    %134 = vector.load %arg8[%c0_62, %c0_63] : memref<32x6xf32, #tpu.memory_space<vmem>>, vector<32x6xf32>
    %135 = vector.extract_strided_slice %134 {offsets = [0, 0], sizes = [32, 1], strides = [1, 1]} : vector<32x6xf32> to vector<32x1xf32>
    %136 = vector.extract_strided_slice %134 {offsets = [0, 1], sizes = [32, 1], strides = [1, 1]} : vector<32x6xf32> to vector<32x1xf32>
    %137 = vector.extract_strided_slice %134 {offsets = [0, 2], sizes = [32, 2], strides = [1, 1]} : vector<32x6xf32> to vector<32x2xf32>
    %138 = vector.extract_strided_slice %134 {offsets = [0, 4], sizes = [32, 2], strides = [1, 1]} : vector<32x6xf32> to vector<32x2xf32>
    %c16_i32_64 = arith.constant 16 : i32
    %139 = tpu.dynamic_rotate %131 by %c16_i32_64 dim 1 : vector<32x256xf32>, i32 -> vector<32x256xf32>
    %c240_i32_65 = arith.constant 240 : i32
    %140 = tpu.dynamic_rotate %131 by %c240_i32_65 dim 1 : vector<32x256xf32>, i32 -> vector<32x256xf32>
    %c1_i32_66 = arith.constant 1 : i32
    %141 = tpu.dynamic_rotate %139 by %c1_i32_66 dim 1 : vector<32x256xf32>, i32 -> vector<32x256xf32>
    %c241_i32_67 = arith.constant 241 : i32
    %142 = tpu.dynamic_rotate %139 by %c241_i32_67 dim 1 : vector<32x256xf32>, i32 -> vector<32x256xf32>
    %143 = arith.select %39, %142, %141 : vector<32x256xi1>, vector<32x256xf32>
    %c255_i32_68 = arith.constant 255 : i32
    %144 = tpu.dynamic_rotate %139 by %c255_i32_68 dim 1 : vector<32x256xf32>, i32 -> vector<32x256xf32>
    %c15_i32_69 = arith.constant 15 : i32
    %145 = tpu.dynamic_rotate %139 by %c15_i32_69 dim 1 : vector<32x256xf32>, i32 -> vector<32x256xf32>
    %146 = arith.select %41, %145, %144 : vector<32x256xi1>, vector<32x256xf32>
    %c1_i32_70 = arith.constant 1 : i32
    %147 = tpu.dynamic_rotate %131 by %c1_i32_70 dim 1 : vector<32x256xf32>, i32 -> vector<32x256xf32>
    %c241_i32_71 = arith.constant 241 : i32
    %148 = tpu.dynamic_rotate %131 by %c241_i32_71 dim 1 : vector<32x256xf32>, i32 -> vector<32x256xf32>
    %149 = arith.select %39, %148, %147 : vector<32x256xi1>, vector<32x256xf32>
    %c255_i32_72 = arith.constant 255 : i32
    %150 = tpu.dynamic_rotate %131 by %c255_i32_72 dim 1 : vector<32x256xf32>, i32 -> vector<32x256xf32>
    %c15_i32_73 = arith.constant 15 : i32
    %151 = tpu.dynamic_rotate %131 by %c15_i32_73 dim 1 : vector<32x256xf32>, i32 -> vector<32x256xf32>
    %152 = arith.select %41, %151, %150 : vector<32x256xi1>, vector<32x256xf32>
    %c1_i32_74 = arith.constant 1 : i32
    %153 = tpu.dynamic_rotate %140 by %c1_i32_74 dim 1 : vector<32x256xf32>, i32 -> vector<32x256xf32>
    %c241_i32_75 = arith.constant 241 : i32
    %154 = tpu.dynamic_rotate %140 by %c241_i32_75 dim 1 : vector<32x256xf32>, i32 -> vector<32x256xf32>
    %155 = arith.select %39, %154, %153 : vector<32x256xi1>, vector<32x256xf32>
    %c255_i32_76 = arith.constant 255 : i32
    %156 = tpu.dynamic_rotate %140 by %c255_i32_76 dim 1 : vector<32x256xf32>, i32 -> vector<32x256xf32>
    %c15_i32_77 = arith.constant 15 : i32
    %157 = tpu.dynamic_rotate %140 by %c15_i32_77 dim 1 : vector<32x256xf32>, i32 -> vector<32x256xf32>
    %158 = arith.select %41, %157, %156 : vector<32x256xi1>, vector<32x256xf32>
    %159 = tpu.concatenate %143, %139, %146, %149, %131, %152, %155, %140, %158 in 0 : vector<32x256xf32>, vector<32x256xf32>, vector<32x256xf32>, vector<32x256xf32>, vector<32x256xf32>, vector<32x256xf32>, vector<32x256xf32>, vector<32x256xf32>, vector<32x256xf32> -> vector<288x256xf32>
    %cst_78 = arith.constant dense<0.000000e+00> : vector<32x256xf32>
    %160 = tpu.matmul %132, %159, %cst_78 {dimension_numbers = #tpu.dot_dimension_numbers<[1], [0], [0], [1], [0, 0, 1, 1], [], []>} : vector<32x288xf32>, vector<288x256xf32>, vector<32x256xf32> -> vector<32x256xf32>
    %161 = vector.broadcast %135 : vector<32x1xf32> to vector<32x256xf32>
    %162 = arith.addf %160, %161 : vector<32x256xf32>
    %cst_79 = arith.constant 0.000000e+00 : f32
    %163 = vector.broadcast %cst_79 : f32 to vector<32x256xf32>
    %164 = arith.maximumf %162, %163 : vector<32x256xf32>
    %c16_i32_80 = arith.constant 16 : i32
    %165 = tpu.dynamic_rotate %164 by %c16_i32_80 dim 1 : vector<32x256xf32>, i32 -> vector<32x256xf32>
    %c240_i32_81 = arith.constant 240 : i32
    %166 = tpu.dynamic_rotate %164 by %c240_i32_81 dim 1 : vector<32x256xf32>, i32 -> vector<32x256xf32>
    %c1_i32_82 = arith.constant 1 : i32
    %167 = tpu.dynamic_rotate %165 by %c1_i32_82 dim 1 : vector<32x256xf32>, i32 -> vector<32x256xf32>
    %c241_i32_83 = arith.constant 241 : i32
    %168 = tpu.dynamic_rotate %165 by %c241_i32_83 dim 1 : vector<32x256xf32>, i32 -> vector<32x256xf32>
    %169 = arith.select %39, %168, %167 : vector<32x256xi1>, vector<32x256xf32>
    %c255_i32_84 = arith.constant 255 : i32
    %170 = tpu.dynamic_rotate %165 by %c255_i32_84 dim 1 : vector<32x256xf32>, i32 -> vector<32x256xf32>
    %c15_i32_85 = arith.constant 15 : i32
    %171 = tpu.dynamic_rotate %165 by %c15_i32_85 dim 1 : vector<32x256xf32>, i32 -> vector<32x256xf32>
    %172 = arith.select %41, %171, %170 : vector<32x256xi1>, vector<32x256xf32>
    %c1_i32_86 = arith.constant 1 : i32
    %173 = tpu.dynamic_rotate %164 by %c1_i32_86 dim 1 : vector<32x256xf32>, i32 -> vector<32x256xf32>
    %c241_i32_87 = arith.constant 241 : i32
    %174 = tpu.dynamic_rotate %164 by %c241_i32_87 dim 1 : vector<32x256xf32>, i32 -> vector<32x256xf32>
    %175 = arith.select %39, %174, %173 : vector<32x256xi1>, vector<32x256xf32>
    %c255_i32_88 = arith.constant 255 : i32
    %176 = tpu.dynamic_rotate %164 by %c255_i32_88 dim 1 : vector<32x256xf32>, i32 -> vector<32x256xf32>
    %c15_i32_89 = arith.constant 15 : i32
    %177 = tpu.dynamic_rotate %164 by %c15_i32_89 dim 1 : vector<32x256xf32>, i32 -> vector<32x256xf32>
    %178 = arith.select %41, %177, %176 : vector<32x256xi1>, vector<32x256xf32>
    %c1_i32_90 = arith.constant 1 : i32
    %179 = tpu.dynamic_rotate %166 by %c1_i32_90 dim 1 : vector<32x256xf32>, i32 -> vector<32x256xf32>
    %c241_i32_91 = arith.constant 241 : i32
    %180 = tpu.dynamic_rotate %166 by %c241_i32_91 dim 1 : vector<32x256xf32>, i32 -> vector<32x256xf32>
    %181 = arith.select %39, %180, %179 : vector<32x256xi1>, vector<32x256xf32>
    %c255_i32_92 = arith.constant 255 : i32
    %182 = tpu.dynamic_rotate %166 by %c255_i32_92 dim 1 : vector<32x256xf32>, i32 -> vector<32x256xf32>
    %c15_i32_93 = arith.constant 15 : i32
    %183 = tpu.dynamic_rotate %166 by %c15_i32_93 dim 1 : vector<32x256xf32>, i32 -> vector<32x256xf32>
    %184 = arith.select %41, %183, %182 : vector<32x256xi1>, vector<32x256xf32>
    %185 = tpu.concatenate %169, %165, %172, %175, %164, %178, %181, %166, %184 in 0 : vector<32x256xf32>, vector<32x256xf32>, vector<32x256xf32>, vector<32x256xf32>, vector<32x256xf32>, vector<32x256xf32>, vector<32x256xf32>, vector<32x256xf32>, vector<32x256xf32> -> vector<288x256xf32>
    %cst_94 = arith.constant dense<0.000000e+00> : vector<32x256xf32>
    %186 = tpu.matmul %133, %185, %cst_94 {dimension_numbers = #tpu.dot_dimension_numbers<[1], [0], [0], [1], [0, 0, 1, 1], [], []>} : vector<32x288xf32>, vector<288x256xf32>, vector<32x256xf32> -> vector<32x256xf32>
    %187 = vector.broadcast %136 : vector<32x1xf32> to vector<32x256xf32>
    %188 = arith.addf %186, %187 : vector<32x256xf32>
    %cst_95 = arith.constant 0.000000e+00 : f32
    %189 = vector.broadcast %cst_95 : f32 to vector<32x256xf32>
    %190 = arith.maximumf %188, %189 : vector<32x256xf32>
    %cst_96 = arith.constant dense<0.000000e+00> : vector<32xf32>
    %191 = vector.multi_reduction <add>, %190, %cst_96 [1] : vector<32x256xf32> to vector<32xf32>
    %192 = vector.shape_cast %191 : vector<32xf32> to vector<32x1xf32>
    %cst_97 = arith.constant 3.906250e-03 : f32
    %193 = vector.broadcast %cst_97 : f32 to vector<32x1xf32>
    %194 = arith.mulf %192, %193 : vector<32x1xf32>
    %195 = vector.broadcast %194 : vector<32x1xf32> to vector<32x2xf32>
    %196 = arith.mulf %137, %195 : vector<32x2xf32>
    %cst_98 = arith.constant dense<0.000000e+00> : vector<2xf32>
    %197 = vector.multi_reduction <add>, %196, %cst_98 [0] : vector<32x2xf32> to vector<2xf32>
    %198 = vector.shape_cast %197 : vector<2xf32> to vector<1x2xf32>
    %cst_99 = arith.constant 0.000000e+00 : f32
    %199 = vector.broadcast %cst_99 : f32 to vector<1x2xf32>
    %200 = arith.maximumf %198, %199 : vector<1x2xf32>
    %201 = vector.broadcast %200 : vector<1x2xf32> to vector<32x2xf32>
    %202 = arith.mulf %138, %201 : vector<32x2xf32>
    %cst_100 = arith.constant dense<0.000000e+00> : vector<32xf32>
    %203 = vector.multi_reduction <add>, %202, %cst_100 [1] : vector<32x2xf32> to vector<32xf32>
    %204 = vector.shape_cast %203 : vector<32xf32> to vector<32x1xf32>
    %205 = arith.negf %204 : vector<32x1xf32>
    %206 = math.exp %205 : vector<32x1xf32>
    %cst_101 = arith.constant 1.000000e+00 : f32
    %207 = vector.broadcast %cst_101 : f32 to vector<32x1xf32>
    %208 = arith.addf %207, %206 : vector<32x1xf32>
    %209 = arith.divf %207, %208 : vector<32x1xf32>
    %210 = vector.broadcast %209 : vector<32x1xf32> to vector<32x256xf32>
    %211 = arith.mulf %190, %210 : vector<32x256xf32>
    %212 = arith.addf %211, %131 : vector<32x256xf32>
    %cst_102 = arith.constant 0.000000e+00 : f32
    %213 = vector.broadcast %cst_102 : f32 to vector<32x256xf32>
    %214 = arith.maximumf %212, %213 : vector<32x256xf32>
    %c0_103 = arith.constant 0 : index
    %c0_104 = arith.constant 0 : index
    %c0_105 = arith.constant 0 : index
    %215 = vector.load %arg9[%c0_103, %c0_104, %c0_105] : memref<1x32x256xf32, #tpu.memory_space<vmem>>, vector<1x32x256xf32>
    %216 = vector.shape_cast %215 : vector<1x32x256xf32> to vector<32x256xf32>
    %217 = vector.shape_cast %214 : vector<32x256xf32> to vector<1x32x256xf32>
    tpu.vector_store %arg9[%c0_103, %c0_104, %c0_105], %217 {strides = array<i32>} : memref<1x32x256xf32, #tpu.memory_space<vmem>>, vector<1x32x256xf32>,
    return
  }
  func.func @transform_0(%arg0: i32) -> (i32, i32, i32) {
    %c0_i32 = arith.constant 0 : i32
    %c0_i32_0 = arith.constant 0 : i32
    %c0_i32_1 = arith.constant 0 : i32
    return %arg0, %c0_i32, %c0_i32_0 : i32, i32, i32
  }
  func.func @transform_1(%arg0: i32) -> (i32, i32) {
    %c0_i32 = arith.constant 0 : i32
    %c0_i32_0 = arith.constant 0 : i32
    %c0_i32_1 = arith.constant 0 : i32
    return %c0_i32, %c0_i32_0 : i32, i32
  }
  func.func @transform_2(%arg0: i32) -> (i32, i32) {
    %c0_i32 = arith.constant 0 : i32
    %c0_i32_0 = arith.constant 0 : i32
    %c0_i32_1 = arith.constant 0 : i32
    return %c0_i32, %c0_i32_0 : i32, i32
  }
  func.func @transform_3(%arg0: i32) -> (i32, i32) {
    %c0_i32 = arith.constant 0 : i32
    %c0_i32_0 = arith.constant 0 : i32
    %c0_i32_1 = arith.constant 0 : i32
    return %c0_i32, %c0_i32_0 : i32, i32
  }
  func.func @transform_4(%arg0: i32) -> (i32, i32) {
    %c0_i32 = arith.constant 0 : i32
    %c0_i32_0 = arith.constant 0 : i32
    %c0_i32_1 = arith.constant 0 : i32
    return %c0_i32, %c0_i32_0 : i32, i32
  }
  func.func @transform_5(%arg0: i32) -> (i32, i32) {
    %c0_i32 = arith.constant 0 : i32
    %c0_i32_0 = arith.constant 0 : i32
    %c0_i32_1 = arith.constant 0 : i32
    return %c0_i32, %c0_i32_0 : i32, i32
  }
  func.func @transform_6(%arg0: i32) -> (i32, i32) {
    %c0_i32 = arith.constant 0 : i32
    %c0_i32_0 = arith.constant 0 : i32
    %c0_i32_1 = arith.constant 0 : i32
    return %c0_i32, %c0_i32_0 : i32, i32
  }
  func.func @transform_7(%arg0: i32) -> (i32, i32) {
    %c0_i32 = arith.constant 0 : i32
    %c0_i32_0 = arith.constant 0 : i32
    %c0_i32_1 = arith.constant 0 : i32
    return %c0_i32, %c0_i32_0 : i32, i32
  }
  func.func @transform_8(%arg0: i32) -> (i32, i32, i32) {
    %c0_i32 = arith.constant 0 : i32
    %c0_i32_0 = arith.constant 0 : i32
    %c0_i32_1 = arith.constant 0 : i32
    return %arg0, %c0_i32, %c0_i32_0 : i32, i32, i32
  }
}

</mosaic_0001>

<bundles_post_ra>
// kernel: forward.1
= control target key start
LH: loop header
LB: loop body
LE: loop exit
PB: predicated region body
PF: predicated region fallthrough
CT: control target
= control target key end

     0   :  { %s4198_s27 = smov 0   ;;  %s6561_s0 = inlined_call_operand.vmem [shape: f32[2,8,256], index: 0, kind: input, shape index: {}]   ;;  %s6562_s1 = inlined_call_operand.vmem [shape: f32[32,72], index: 1, kind: input, shape index: {}]   ;;  %s6563_s2 = inlined_call_operand.vmem [shape: f32[32,288], index: 2, kind: input, shape index: {}]   ;;  %s6564_s3 = inlined_call_operand.vmem [shape: f32[32,7], index: 3, kind: input, shape index: {}]   ;;  %s6565_s4 = inlined_call_operand.vmem [shape: f32[32,8], index: 4, kind: input, shape index: {}]   ;;  %s6566_s5 = inlined_call_operand.vmem [shape: f32[32,288], index: 5, kind: input, shape index: {}]   ;;  %s6567_s6 = inlined_call_operand.vmem [shape: f32[32,288], index: 6, kind: input, shape index: {}]   ;;  %s6568_s7 = inlined_call_operand.vmem [shape: f32[32,6], index: 7, kind: input, shape index: {}]   ;;  %s6569_s8 = inlined_call_operand.vmem [shape: f32[2,32,256], index: 8, kind: output, shape index: {}]  }
   0x1 LB: > { %s2841_s28 = sadd.s32 4294967295, %s4139_s27   ;;  %p2845_p0 = scmp.ge.s32.totalorder %s4139_s27, 1  ;;  %s4139_s27 = sphi %s4198_s27, %s18_s27  }
   0x2   : > { %p262_p1 = scmp.lt.s32.totalorder %s4139_s27, 3 }
   0x4   : > { %p263_p2 = pnand %p2845_p0, %p262_p1 }
   0x6   : > { %266 = sbr.rel (%p263_p2) target bundleno = 3336 (0xd08), region = 52 }
   0xd   : > { %p296_p3 = scmp.lt.s32.totalorder %s2841_s28, 1  ;;  %s4141_s11 = smov 112   ;;  %v306_v3 = vlaneseq  ;;  %v6574_v16 = vmov 0.0   ;;  %v4273_v17 = vld [vmem:[%s6564_s3] sm:$0xff]  ;;  %v4278_v18 = vld [vmem:[%s6564_s3 + $0x8] sm:$0xff]  ;;  %v6572_v19 = vmov 0  }
   0xe   : > { %s4142_s12 = smov 16   ;;  %s4143_s13 = smov 1   ;;  %558 = vmatprep.mubr.f32.mxu0 %v6574_v16  ;;  %3241 = vset.pattern.permute.xlu1 %v6572_v19  ;;  %v4287_v20 = vld [vmem:[%s6564_s3 + $0x10] sm:$0xff]  ;;  %v4293_v21 = vld [vmem:[%s6564_s3 + $0x18] sm:$0xff]  ;;  %vm481_vm10 = vcmask 588800   ;;  %vm991_vm11 = vcmask 261120  }
   0xf   : > { %s6627_s28 = smov (!%p296_p3, %s2841_s28), 1  ;;  %s4144_s14 = smov 113   ;;  %v4229_v4 = vand.u32 127, %v306_v3  ;;  %3242 = vset.pattern.permute.xlu0 %v6572_v19  ;;  %vm1210_vm12 = vcmask 31760   ;;  %vm1306_vm13 = vcmask 64512   ;;  %vm1249_vm14 = vcmask 15360  }
  0x10   : > { %s2880_s29 = sshll.u32 %s6627_s28, 4  ;;  %s4145_s15 = smov 15   ;;  %v1451_v40 = vld [vmem:[%s6567_s6 + $0x38] sm:$0xff]  ;;  %v1446_v30 = vld [vmem:[%s6567_s6 + $0x10] sm:$0xff] }
  0x11   : > { %s4212_s10 = scalar_lea.vmem %s6561_s0, %s2880_s29  ;;  %vm363_vm0 = vcmp.lt.s32.totalorder %v4229_v4, 16  ;;  %vm370_vm1 = vcmp.lt.s32.totalorder %v4229_v4, 112  ;;  %s4146_s16 = smov 127   ;;  %v308_v22 = vadd.s32 128, %v4229_v4  ;;  %v313_v25 = vand.u32 15, %v4229_v4 }
  0x12   : > { %v4215_v0 = vld [vmem:[%s4212_s10] sm:$0xff]  ;;  %v4218_v1 = vld [vmem:[%s4212_s10 + $0x8] sm:$0xff]  ;;  %vm377_vm2 = vcmp.lt.s32.totalorder %v4229_v4, 1  ;;  %vm384_vm3 = vcmp.lt.s32.totalorder %v4229_v4, 113  ;;  %vm393_vm4 = vcmp.lt.s32.totalorder %v4229_v4, 127  ;;  %vm400_vm5 = vcmp.lt.s32.totalorder %v4229_v4, 15 }
  0x13   : > { %v3186_v2 = vpack.i.bf16 %v4218_v1, %v4215_v0  ;;  %368 = vrot.lane.b32.xlu1 %v4218_v1, %s4141_s11  ;;  %v320_v26 = vand.u32 15, %v308_v22  ;;  %vm4302_vm6 = vcmp.eq.s32.totalorder %v313_v25, 0  ;;  %vm4306_vm7 = vcmp.eq.s32.totalorder %v313_v25, 15  ;;  %s4151_s17 = smov 2   ;;  %s4152_s20 = smov 124  }
  0x15   : > { %3187 = vrot.lane.b32.xlu0 %v3186_v2, %s4142_s12  ;;  %vm4310_vm8 = vcmp.eq.s32.totalorder %v320_v26, 0  ;;  %vm4314_vm9 = vcmp.eq.s32.totalorder %v320_v26, 15 }
  0x17   : > { %3192 = vrot.lane.b32.xlu1 %v3186_v2, %s4143_s13 }
  0x19   : > { %366 = vrot.lane.b32.xlu0 %v4215_v0, %s4141_s11 }
  0x1d   : > { %3197 = vrot.lane.b32.xlu0 %v3186_v2, %s4144_s14 }
  0x85   : > { %v369_v11 = vpop.permute.xlu1 %368 }
  0x87   : > { %v3188_v5 = vpop.permute.xlu0 %3187 }
  0x88   : > { %v3190_v6 = vunpack.i.h.bf16 %v3188_v5  ;;  %v3189_v7 = vunpack.i.l.bf16 %v3188_v5 }
  0x89   : > { %v3193_v23 = vpop.permute.xlu1 %3192 }
  0x8a   : > { %v4234_v8 = vsel %vm363_vm0, %v3189_v7, %v3190_v6  ;;  %v4238_v9 = vsel %vm363_vm0, %v3190_v6, %v3189_v7  ;;  %v3195_v27 = vunpack.i.h.bf16 %v3193_v23  ;;  %v3194_v28 = vunpack.i.l.bf16 %v3193_v23 }
  0x8b   : > { %v3206_v10 = vpack.i.bf16 %v4234_v8, %v4238_v9  ;;  %v367_v12 = vpop.permute.xlu0 %366 }
  0x8c   : > { %v4249_v13 = vsel %vm370_vm1, %v367_v12, %v369_v11  ;;  %v4253_v14 = vsel %vm370_vm1, %v369_v11, %v367_v12  ;;  %v409_v41 = vsel %vm377_vm2, %v3194_v28, %v3195_v27  ;;  %v410_v42 = vsel %vm377_vm2, %v3195_v27, %v3194_v28 }
  0x8d   : > { %3207 = vrot.lane.b32.xlu0 %v3206_v10, %s4144_s14  ;;  %3202 = vrot.lane.b32.xlu1 %v3206_v10, %s4143_s13  ;;  %v3236_v15 = vpack.i.bf16 %v4253_v14, %v4249_v13 }
  0x8f   : > { %v3198_v24 = vpop.permute.xlu0 %3197 }
  0x90   : > { %v3200_v31 = vunpack.i.h.bf16 %v3198_v24  ;;  %v3199_v32 = vunpack.i.l.bf16 %v3198_v24 }
  0x91   : > { %3222 = vrot.lane.b32.xlu0 %v3206_v10, %s4145_s15  ;;  %3212 = vrot.lane.b32.xlu1 %v3206_v10, %s4146_s16 }
  0x92   : > { %v416_v51 = vsel %vm384_vm3, %v3200_v31, %v3199_v32  ;;  %v415_v52 = vsel %vm384_vm3, %v3199_v32, %v3200_v31 }
  0x93   : > { %v418_v5 = vsel %vm4310_vm8, %v416_v51, %v409_v41  ;;  %v417_v7 = vsel %vm4302_vm6, %v415_v52, %v410_v42 }
  0x95   : > { %3227 = vrot.lane.b32.xlu0 %v3186_v2, %s4145_s15  ;;  %3217 = vrot.lane.b32.xlu1 %v3186_v2, %s4146_s16 }
  0x99   : > { %3237 = vrot.lane.b32.xlu0 %v3236_v15, %s4144_s14  ;;  %3232 = vrot.lane.b32.xlu1 %v3236_v15, %s4143_s13 }
  0x9d   : > { %449 = vrot.lane.b32.xlu0 %v4253_v14, %s4146_s16  ;;  %447 = vrot.lane.b32.xlu1 %v4249_v13, %s4146_s16 }
  0xa1   : > { %455 = vrot.lane.b32.xlu0 %v4253_v14, %s4145_s15  ;;  %453 = vrot.lane.b32.xlu1 %v4249_v13, %s4145_s15 }
  0xa5   : > { %463 = vperm.xlu1 %3241, %v4273_v17   ;;  %468 = vperm.xlu0 %3242, %v4278_v18  }
  0xa9   : > { %473 = vperm.xlu1 %3241, %v4287_v20  }
  0xad   : > { %478 = vperm.xlu1 %3241, %v4293_v21  }
  0xff   : > { %v3208_v33 = vpop.permute.xlu0 %3207  ;;  %v3203_v34 = vpop.permute.xlu1 %3202 }
 0x100   : > { %v3210_v35 = vunpack.i.h.bf16 %v3208_v33  ;;  %v3209_v36 = vunpack.i.l.bf16 %v3208_v33  ;;  %v3205_v37 = vunpack.i.h.bf16 %v3203_v34  ;;  %v3204_v38 = vunpack.i.l.bf16 %v3203_v34 }
 0x102   : > { %v378_v43 = vsel %vm377_vm2, %v3204_v38, %v3205_v37  ;;  %v386_v44 = vsel %vm384_vm3, %v3210_v35, %v3209_v36  ;;  %v379_v45 = vsel %vm377_vm2, %v3205_v37, %v3204_v38  ;;  %v385_v46 = vsel %vm384_vm3, %v3209_v36, %v3210_v35 }
 0x103   : > { %v3223_v47 = vpop.permute.xlu0 %3222  ;;  %v3213_v48 = vpop.permute.xlu1 %3212  ;;  %v388_v49 = vsel %vm4310_vm8, %v386_v44, %v378_v43  ;;  %v387_v50 = vsel %vm4302_vm6, %v385_v46, %v379_v45 }
 0x104   : > { %v3225_v53 = vunpack.i.h.bf16 %v3223_v47  ;;  %v3224_v54 = vunpack.i.l.bf16 %v3223_v47  ;;  %v3215_v55 = vunpack.i.h.bf16 %v3213_v48  ;;  %v3214_v56 = vunpack.i.l.bf16 %v3213_v48 }
 0x105   : > { %v2882_v57 = vpack.c.bf16 %v4234_v8, %v388_v49  ;;  %v2884_v58 = vpack.c.bf16 %v4238_v9, %v387_v50 }
 0x106   : > { %v395_v59 = vsel %vm393_vm4, %v3215_v55, %v3214_v56  ;;  %v401_v60 = vsel %vm400_vm5, %v3224_v54, %v3225_v53  ;;  %v394_v61 = vsel %vm393_vm4, %v3214_v56, %v3215_v55  ;;  %v402_v62 = vsel %vm400_vm5, %v3225_v53, %v3224_v54  ;;  %v339_v54 = vld [vmem:[%s6562_s1] sm:$0xff]  ;;  %v340_v55 = vld [vmem:[%s6562_s1 + $0x8] sm:$0xff]  ;;  %v341_v56 = vld [vmem:[%s6562_s1 + $0x10] sm:$0xff] }
 0x107   : > { %2883 = vmatprep.subr.bf16.mxu0 %v2882_v57  ;;  %v3228_v63 = vpop.permute.xlu0 %3227  ;;  %v3218_v2 = vpop.permute.xlu1 %3217  ;;  %v404_v3 = vsel %vm4314_vm9, %v401_v60, %v395_v59  ;;  %v403_v6 = vsel %vm4306_vm7, %v402_v62, %v394_v61  ;;  %v342_v57 = vld [vmem:[%s6562_s1 + $0x18] sm:$0xff] }
 0x108   : > { %v3230_v8 = vunpack.i.h.bf16 %v3228_v63  ;;  %v3229_v9 = vunpack.i.l.bf16 %v3228_v63  ;;  %v3220_v10 = vunpack.i.h.bf16 %v3218_v2  ;;  %v3219_v11 = vunpack.i.l.bf16 %v3218_v2  ;;  %2885 = vmatpush1.bf16.msra.mxu0 %v2884_v58 }
 0x109   : > { %v2886_v12 = vpack.c.bf16 %v418_v5, %v404_v3  ;;  %v2888_v15 = vpack.c.bf16 %v417_v7, %v403_v6 }
 0x10a   : > { %v424_v22 = vsel %vm393_vm4, %v3220_v10, %v3219_v11  ;;  %v429_v23 = vsel %vm400_vm5, %v3229_v9, %v3230_v8  ;;  %v423_v24 = vsel %vm393_vm4, %v3219_v11, %v3220_v10  ;;  %v430_v25 = vsel %vm400_vm5, %v3230_v8, %v3229_v9 }
 0x10b   : > { %2887 = vmatprep.subr.bf16.mxu0 %v2886_v12  ;;  %v3238_v26 = vpop.permute.xlu0 %3237  ;;  %v3233_v27 = vpop.permute.xlu1 %3232  ;;  %v432_v28 = vsel %vm4314_vm9, %v429_v23, %v424_v22  ;;  %v431_v31 = vsel %vm4306_vm7, %v430_v25, %v423_v24 }
 0x10c   : > { %v3240_v32 = vunpack.i.h.bf16 %v3238_v26  ;;  %v3239_v33 = vunpack.i.l.bf16 %v3238_v26  ;;  %v3235_v34 = vunpack.i.h.bf16 %v3233_v27  ;;  %v3234_v35 = vunpack.i.l.bf16 %v3233_v27  ;;  %2889 = vmatpush1.bf16.msra.mxu0 %v2888_v15 }
 0x10d   : > { %v2890_v36 = vpack.c.bf16 %v432_v28, %v4218_v1  ;;  %v2892_v37 = vpack.c.bf16 %v431_v31, %v4215_v0 }
 0x10e   : > { %v437_v38 = vsel %vm377_vm2, %v3234_v35, %v3235_v34  ;;  %v444_v41 = vsel %vm384_vm3, %v3240_v32, %v3239_v33  ;;  %v438_v42 = vsel %vm377_vm2, %v3235_v34, %v3234_v35  ;;  %v443_v43 = vsel %vm384_vm3, %v3239_v33, %v3240_v32 }
 0x10f   : > { %2891 = vmatprep.subr.bf16.mxu0 %v2890_v36  ;;  %v450_v44 = vpop.permute.xlu0 %449  ;;  %v448_v45 = vpop.permute.xlu1 %447  ;;  %v446_v1 = vsel %vm4310_vm8, %v444_v41, %v437_v38  ;;  %v445_v0 = vsel %vm4302_vm6, %v443_v43, %v438_v42 }
 0x110   : > { %2893 = vmatpush1.bf16.msra.mxu0 %v2892_v37  ;;  %v2894_v46 = vpack.c.bf16 %v4253_v14, %v446_v1  ;;  %v2896_v47 = vpack.c.bf16 %v4249_v13, %v445_v0  ;;  %v451_v50 = vsel %vm393_vm4, %v448_v45, %v450_v44  ;;  %v452_v51 = vsel %vm393_vm4, %v450_v44, %v448_v45 }
 0x112   : > { %2895 = vmatprep.subr.bf16.mxu0 %v2894_v46 }
 0x113   : > { %v456_v48 = vpop.permute.xlu0 %455  ;;  %v454_v49 = vpop.permute.xlu1 %453 }
 0x114   : > { %v457_v52 = vsel %vm400_vm5, %v454_v49, %v456_v48  ;;  %v458_v53 = vsel %vm400_vm5, %v456_v48, %v454_v49  ;;  %2897 = vmatpush1.bf16.msra.mxu0 %v2896_v47 }
 0x115   : > { %v460_v14 = vsel %vm4314_vm9, %v457_v52, %v452_v51  ;;  %v459_v13 = vsel %vm4306_vm7, %v458_v53, %v451_v50 }
 0x116   : > { %510 = vmatprep.subr.mxu0 %v460_v14 }
 0x118   : > { %511 = vmatpush1.msra.mxu0 %v459_v13 }
 0x119   : > { %2850 = vmatmul.mubr.msk.f32.vlgmr.msra.gmra.mrb[0].mxu0 %vm481_vm10, %v339_v54 }
 0x11a   : > { %564 = vmatprep.mubr.f32.mxu0 %v6574_v16 }
 0x11d   : > { %2851 = vmatmul.mubr.msk.f32.gmra.mrb[2].mxu0 %vm481_vm10, %v340_v55 }
 0x11e   : > { %570 = vmatprep.mubr.f32.mxu0 %v6574_v16 }
 0x121   : > { %2852 = vmatmul.mubr.msk.f32.gmra.mrb[4].mxu0 %vm481_vm10, %v341_v56 }
 0x122   : > { %576 = vmatprep.mubr.f32.mxu0 %v6574_v16 }
 0x124   : > { %v464_v58 = vpop.permute.xlu1 %463  ;;  %v469_v61 = vpop.permute.xlu0 %468 }
 0x125   : > { %2853 = vmatmul.mubr.msk.f32.gmra.mrb[6].mxu0 %vm481_vm10, %v342_v57 }
 0x126   : > { %1157 = vmatprep.mubr.f32.mxu0 %v6574_v16 }
 0x128   : > { %v474_v6 = vpop.permute.xlu1 %473 }
 0x12c   : > { %v479_v25 = vpop.permute.xlu1 %478 }
 0x1ec   : > { %v560_v59 = vpop.f32.mrb[0].mxu0 }
 0x1ed   : > { %v562_v60 = vpop.f32.mrb[1].mxu0  ;;  %v561_v62 = vadd.f32 %v560_v59, %v464_v58 }
 0x1ee   : > { %v563_v63 = vadd.f32 %v562_v60, %v464_v58 }
 0x1ef   : > { %v583_v8 = vmax.f32 %v561_v62, 0.0 }
 0x1f0   : > { %v566_v2 = vpop.f32.mrb[2].mxu0  ;;  %v584_v10 = vmax.f32 %v563_v63, 0.0 }
 0x1f1   : > { %v567_v3 = vadd.f32 %v566_v2, %v469_v61  ;;  %v568_v5 = vpop.f32.mrb[3].mxu0 }
 0x1f2   : > { %v569_v7 = vadd.f32 %v568_v5, %v469_v61 }
 0x1f3   : > { %v585_v9 = vmax.f32 %v567_v3, 0.0 }
 0x1f4   : > { %v586_v11 = vmax.f32 %v569_v7, 0.0  ;;  %v572_v12 = vpop.f32.mrb[4].mxu0 }
 0x1f5   : > { %v574_v15 = vpop.f32.mrb[5].mxu0  ;;  %v4412_v22 = vpack.i.bf16 %v585_v9, %v583_v8  ;;  %v573_v24 = vadd.f32 %v572_v12, %v474_v6  ;;  %v4422_v33 = vpack.c.bf16 %v585_v9, %v583_v8 }
 0x1f6   : > { %v4414_v23 = vpack.i.bf16 %v586_v11, %v584_v10  ;;  %v575_v26 = vadd.f32 %v574_v15, %v474_v6  ;;  %v4420_v32 = vpack.c.bf16 %v586_v11, %v584_v10 }
 0x1f7   : > { %3244 = vrot.lane.b32.xlu0 %v4412_v22, %s4142_s12  ;;  %v587_v35 = vmax.f32 %v573_v24, 0.0 }
 0x1f8   : > { %v578_v27 = vpop.f32.mrb[6].mxu0  ;;  %3249 = vrot.lane.b32.xlu1 %v4414_v23, %s4142_s12  ;;  %v588_v37 = vmax.f32 %v575_v26, 0.0 }
 0x1f9   : > { %v579_v28 = vadd.f32 %v578_v27, %v479_v25  ;;  %v580_v31 = vpop.f32.mrb[7].mxu0 }
 0x1fa   : > { %v581_v34 = vadd.f32 %v580_v31, %v479_v25 }
 0x1fb   : > { %v589_v36 = vmax.f32 %v579_v28, 0.0 }
 0x1fc   : > { %v590_v38 = vmax.f32 %v581_v34, 0.0 }
 0x1fd   : > { %v4424_v41 = vpack.i.bf16 %v589_v36, %v587_v35  ;;  %v4434_v44 = vpack.c.bf16 %v589_v36, %v587_v35 }
 0x1fe   : > { %v4426_v42 = vpack.i.bf16 %v590_v38, %v588_v37  ;;  %v4432_v43 = vpack.c.bf16 %v590_v38, %v588_v37 }
 0x1ff   : > { %3254 = vrot.lane.b32.xlu0 %v4424_v41, %s4142_s12 }
 0x200   : > { %3259 = vrot.lane.b32.xlu1 %v4426_v42, %s4142_s12 }
 0x203   : > { %3264 = vrot.lane.b32.xlu0 %v4412_v22, %s4141_s11 }
 0x204   : > { %3269 = vrot.lane.b32.xlu1 %v4414_v23, %s4141_s11 }
 0x207   : > { %3274 = vrot.lane.b32.xlu0 %v4424_v41, %s4141_s11 }
 0x208   : > { %3284 = vrot.lane.b32.xlu1 %v4414_v23, %s4143_s13 }
 0x20b   : > { %3279 = vrot.lane.b32.xlu0 %v4412_v22, %s4143_s13 }
 0x20c   : > { %3294 = vrot.lane.b32.xlu1 %v4414_v23, %s4144_s14 }
 0x20f   : > { %3289 = vrot.lane.b32.xlu0 %v4412_v22, %s4144_s14 }
 0x210   : > { %3304 = vrot.lane.b32.xlu1 %v4426_v42, %s4141_s11 }
 0x213   : > { %3299 = vrot.lane.b32.xlu0 %v4424_v41, %s4143_s13 }
 0x214   : > { %3309 = vrot.lane.b32.xlu1 %v4426_v42, %s4143_s13 }
 0x269   : > { %v3245_v45 = vpop.permute.xlu0 %3244 }
 0x26a   : > { %v3247_v1 = vunpack.i.h.bf16 %v3245_v45  ;;  %v3246_v0 = vunpack.i.l.bf16 %v3245_v45  ;;  %v3250_v46 = vpop.permute.xlu1 %3249 }
 0x26b   : > { %v3252_v47 = vunpack.i.h.bf16 %v3250_v46  ;;  %v3251_v48 = vunpack.i.l.bf16 %v3250_v46 }
 0x26d   : > { %v4458_v49 = vsel %vm363_vm0, %v3246_v0, %v3251_v48  ;;  %v4462_v50 = vsel %vm363_vm0, %v3247_v1, %v3252_v47  ;;  %v4466_v51 = vsel %vm363_vm0, %v3251_v48, %v3246_v0  ;;  %v4470_v52 = vsel %vm363_vm0, %v3252_v47, %v3247_v1 }
 0x26e   : > { %v3313_v53 = vpack.i.bf16 %v4470_v52, %v4466_v51  ;;  %v3318_v14 = vpack.i.bf16 %v4462_v50, %v4458_v49  ;;  %v2906_v13 = vpack.c.bf16 %v4462_v50, %v4458_v49  ;;  %v2908_v54 = vpack.c.bf16 %v4470_v52, %v4466_v51 }
 0x270   : > { %3314 = vrot.lane.b32.xlu0 %v3313_v53, %s4143_s13  ;;  %3319 = vrot.lane.b32.xlu1 %v3318_v14, %s4143_s13 }
 0x271   : > { %v3255_v55 = vpop.permute.xlu0 %3254 }
 0x272   : > { %v3260_v56 = vpop.permute.xlu1 %3259  ;;  %v3257_v58 = vunpack.i.h.bf16 %v3255_v55  ;;  %v3256_v59 = vunpack.i.l.bf16 %v3255_v55 }
 0x273   : > { %v3262_v60 = vunpack.i.h.bf16 %v3260_v56  ;;  %v3261_v61 = vunpack.i.l.bf16 %v3260_v56 }
 0x274   : > { %3324 = vrot.lane.b32.xlu0 %v3313_v53, %s4144_s14  ;;  %3329 = vrot.lane.b32.xlu1 %v3318_v14, %s4144_s14 }
 0x275   : > { %v3265_v57 = vpop.permute.xlu0 %3264  ;;  %v4488_v6 = vsel %vm363_vm0, %v3256_v59, %v3261_v61  ;;  %v4492_v7 = vsel %vm363_vm0, %v3257_v58, %v3262_v60  ;;  %v4496_v8 = vsel %vm363_vm0, %v3261_v61, %v3256_v59  ;;  %v4500_v9 = vsel %vm363_vm0, %v3262_v60, %v3257_v58 }
 0x276   : > { %v3270_v62 = vpop.permute.xlu1 %3269  ;;  %v3267_v63 = vunpack.i.h.bf16 %v3265_v57  ;;  %v3266_v2 = vunpack.i.l.bf16 %v3265_v57  ;;  %v2910_v25 = vpack.c.bf16 %v4492_v7, %v4488_v6  ;;  %v2912_v26 = vpack.c.bf16 %v4500_v9, %v4496_v8 }
 0x277   : > { %v3272_v3 = vunpack.i.h.bf16 %v3270_v62  ;;  %v3271_v5 = vunpack.i.l.bf16 %v3270_v62  ;;  %v3353_v28 = vpack.i.bf16 %v4500_v9, %v4496_v8  ;;  %v3358_v31 = vpack.i.bf16 %v4492_v7, %v4488_v6 }
 0x278   : > { %3334 = vrot.lane.b32.xlu0 %v3313_v53, %s4146_s16  ;;  %3339 = vrot.lane.b32.xlu1 %v3318_v14, %s4146_s16  ;;  %v6570_v57 = vmov 1  }
 0x279   : > { %v4506_v11 = vsel %vm370_vm1, %v3266_v2, %v3271_v5  ;;  %v4510_v12 = vsel %vm370_vm1, %v3267_v63, %v3272_v3  ;;  %v4514_v15 = vsel %vm370_vm1, %v3271_v5, %v3266_v2  ;;  %v4518_v24 = vsel %vm370_vm1, %v3272_v3, %v3267_v63  ;;  %v3275_v37 = vpop.permute.xlu0 %3274  ;;  %3523 = vset.pattern.permute.xlu0 %v6570_v57 }
 0x27a   : > { %v4502_v10 = vpop.permute.xlu1 %3284  ;;  %v3277_v1 = vunpack.i.h.bf16 %v3275_v37  ;;  %v3276_v0 = vunpack.i.l.bf16 %v3275_v37  ;;  %v3443_v56 = vpack.i.bf16 %v4510_v12, %v4506_v11  ;;  %3524 = vset.pattern.permute.xlu1 %v6570_v57 }
 0x27c   : > { %3344 = vrot.lane.b32.xlu0 %v3313_v53, %s4145_s15  ;;  %3349 = vrot.lane.b32.xlu1 %v3318_v14, %s4145_s15 }
 0x27d   : > { %v4617_v58 = vpop.permute.xlu0 %3279 }
 0x27e   : > { %v4526_v27 = vpop.permute.xlu1 %3294 }
 0x280   : > { %3354 = vrot.lane.b32.xlu0 %v3353_v28, %s4143_s13  ;;  %3359 = vrot.lane.b32.xlu1 %v3358_v31, %s4143_s13 }
 0x281   : > { %v4619_v59 = vpop.permute.xlu0 %3289 }
 0x282   : > { %v3305_v36 = vpop.permute.xlu1 %3304  ;;  %v3291_v55 = vunpack.i.l.bf16 %v4619_v59 }
 0x283   : > { %v3307_v38 = vunpack.i.h.bf16 %v3305_v36  ;;  %v3306_v45 = vunpack.i.l.bf16 %v3305_v36 }
 0x284   : > { %3364 = vrot.lane.b32.xlu0 %v3353_v28, %s4144_s14  ;;  %3374 = vrot.lane.b32.xlu1 %v3358_v31, %s4144_s14 }
 0x285   : > { %v4546_v46 = vsel %vm370_vm1, %v3276_v0, %v3306_v45  ;;  %v4550_v47 = vsel %vm370_vm1, %v3277_v1, %v3307_v38  ;;  %v4554_v48 = vsel %vm370_vm1, %v3306_v45, %v3276_v0  ;;  %v4558_v53 = vsel %vm370_vm1, %v3307_v38, %v3277_v1  ;;  %v4621_v60 = vpop.permute.xlu0 %3299 }
 0x286   : > { %v4623_v61 = vpop.permute.xlu1 %3309 }
 0x288   : > { %3369 = vrot.lane.b32.xlu0 %v4424_v41, %s4144_s14  ;;  %3379 = vrot.lane.b32.xlu1 %v4426_v42, %s4144_s14 }
 0x28c   : > { %3384 = vrot.lane.b32.xlu0 %v4412_v22, %s4146_s16  ;;  %3389 = vrot.lane.b32.xlu1 %v4414_v23, %s4146_s16 }
 0x290   : > { %3394 = vrot.lane.b32.xlu0 %v3353_v28, %s4146_s16  ;;  %3399 = vrot.lane.b32.xlu1 %v3358_v31, %s4146_s16 }
 0x294   : > { %3404 = vrot.lane.b32.xlu0 %v3353_v28, %s4145_s15  ;;  %3414 = vrot.lane.b32.xlu1 %v3358_v31, %s4145_s15 }
 0x298   : > { %3409 = vrot.lane.b32.xlu0 %v4412_v22, %s4145_s15  ;;  %3419 = vrot.lane.b32.xlu1 %v4414_v23, %s4145_s15  ;;  %v3448_v22 = vpack.i.bf16 %v4518_v24, %v4514_v15  ;;  %v3473_v23 = vpack.i.bf16 %v4550_v47, %v4546_v46 }
 0x29c   : > { %3424 = vrot.lane.b32.xlu0 %v4424_v41, %s4146_s16  ;;  %3429 = vrot.lane.b32.xlu1 %v4426_v42, %s4146_s16 }
 0x2a0   : > { %3434 = vrot.lane.b32.xlu0 %v4424_v41, %s4145_s15  ;;  %3439 = vrot.lane.b32.xlu1 %v4426_v42, %s4145_s15  ;;  %v3478_v41 = vpack.i.bf16 %v4558_v53, %v4554_v48  ;;  %v344_v42 = vld [vmem:[%s6563_s2 + $0x8] sm:$0xff] }
 0x2a1   : > { %1068 = vmatprep.mubr.f32.mxu1 %v344_v42 }
 0x2a4   : > { %3444 = vrot.lane.b32.xlu0 %v3443_v56, %s4143_s13  ;;  %3449 = vrot.lane.b32.xlu1 %v3448_v22, %s4143_s13 }
 0x2a8   : > { %3454 = vrot.lane.b32.xlu0 %v3443_v56, %s4144_s14  ;;  %3459 = vrot.lane.b32.xlu1 %v3448_v22, %s4144_s14 }
 0x2ac   : > { %3464 = vrot.lane.b32.xlu0 %v3443_v56, %s4146_s16  ;;  %3469 = vrot.lane.b32.xlu1 %v3448_v22, %s4146_s16 }
 0x2b0   : > { %3474 = vrot.lane.b32.xlu0 %v3473_v23, %s4143_s13  ;;  %3479 = vrot.lane.b32.xlu1 %v3478_v41, %s4143_s13 }
 0x2b4   : > { %3484 = vrot.lane.b32.xlu0 %v3473_v23, %s4144_s14  ;;  %3494 = vrot.lane.b32.xlu1 %v3478_v41, %s4144_s14 }
 0x2b8   : > { %3489 = vrot.lane.b32.xlu0 %v3443_v56, %s4145_s15  ;;  %3499 = vrot.lane.b32.xlu1 %v3448_v22, %s4145_s15 }
 0x2bc   : > { %3504 = vrot.lane.b32.xlu0 %v3473_v23, %s4146_s16  ;;  %3509 = vrot.lane.b32.xlu1 %v3478_v41, %s4146_s16 }
 0x2c0   : > { %3514 = vrot.lane.b32.xlu0 %v3473_v23, %s4145_s15  ;;  %3519 = vrot.lane.b32.xlu1 %v3478_v41, %s4145_s15 }
 0x2c4   : > { %976 = vperm.xlu0 %3523, %v4273_v17   ;;  %980 = vperm.xlu1 %3524, %v4278_v18  }
 0x2c8   : > { %984 = vperm.xlu1 %3524, %v4287_v20   ;;  %988 = vperm.xlu0 %3523, %v4293_v21  }
 0x2e2   : > { %v3315_v62 = vpop.permute.xlu0 %3314  ;;  %v3320_v63 = vpop.permute.xlu1 %3319 }
 0x2e3   : > { %v3317_v2 = vunpack.i.h.bf16 %v3315_v62  ;;  %v3316_v3 = vunpack.i.l.bf16 %v3315_v62  ;;  %v3322_v5 = vunpack.i.h.bf16 %v3320_v63  ;;  %v3321_v17 = vunpack.i.l.bf16 %v3320_v63 }
 0x2e5   : > { %v655_v37 = vsel %vm377_vm2, %v3316_v3, %v3321_v17  ;;  %v656_v38 = vsel %vm377_vm2, %v3317_v2, %v3322_v5  ;;  %v659_v45 = vsel %vm377_vm2, %v3321_v17, %v3316_v3  ;;  %v660_v1 = vsel %vm377_vm2, %v3322_v5, %v3317_v2 }
 0x2e6   : > { %v3325_v28 = vpop.permute.xlu0 %3324  ;;  %v3330_v18 = vpop.permute.xlu1 %3329 }
 0x2e7   : > { %v3327_v31 = vunpack.i.h.bf16 %v3325_v28  ;;  %v3326_v20 = vunpack.i.l.bf16 %v3325_v28  ;;  %v3332_v36 = vunpack.i.h.bf16 %v3330_v18  ;;  %v3331_v21 = vunpack.i.l.bf16 %v3330_v18 }
 0x2e9   : > { %v683_v0 = vsel %vm384_vm3, %v3331_v21, %v3326_v20  ;;  %v684_v56 = vsel %vm384_vm3, %v3332_v36, %v3327_v31  ;;  %v679_v22 = vsel %vm384_vm3, %v3326_v20, %v3331_v21  ;;  %v680_v23 = vsel %vm384_vm3, %v3327_v31, %v3332_v36 }
 0x2ea   : > { %v4641_v41 = vpop.permute.xlu0 %3334  ;;  %v4643_v42 = vpop.permute.xlu1 %3339  ;;  %v688_v62 = vsel %vm4310_vm8, %v683_v0, %v655_v37  ;;  %v690_v63 = vsel %vm4310_vm8, %v684_v56, %v656_v38  ;;  %v687_v2 = vsel %vm4302_vm6, %v679_v22, %v659_v45  ;;  %v689_v3 = vsel %vm4302_vm6, %v680_v23, %v660_v1 }
 0x2eb   : > { %v2898_v5 = vpack.c.bf16 %v690_v63, %v688_v62  ;;  %v2900_v17 = vpack.c.bf16 %v689_v3, %v687_v2  ;;  %v3282_v38 = vunpack.i.h.bf16 %v4617_v58  ;;  %v3281_v56 = vunpack.i.l.bf16 %v4617_v58 }
 0x2ed   : > { %2899 = vmatprep.subr.bf16.mxu1 %v2898_v5 }
 0x2ee   : > { %v3345_v28 = vpop.permute.xlu0 %3344  ;;  %v3350_v18 = vpop.permute.xlu1 %3349  ;;  %2901 = vmatpush1.bf16.msra.mxu1 %v2900_v17 }
 0x2ef   : > { %v3352_v16 = vunpack.i.h.bf16 %v3350_v18 }
 0x2f2   : > { %v3355_v31 = vpop.permute.xlu0 %3354  ;;  %v3360_v20 = vpop.permute.xlu1 %3359 }
 0x2f3   : > { %v3357_v36 = vunpack.i.h.bf16 %v3355_v31  ;;  %v3356_v21 = vunpack.i.l.bf16 %v3355_v31  ;;  %v3362_v37 = vunpack.i.h.bf16 %v3360_v20  ;;  %v3361_v0 = vunpack.i.l.bf16 %v3360_v20 }
 0x2f5   : > { %v657_v63 = vsel %vm377_vm2, %v3356_v21, %v3361_v0  ;;  %v658_v2 = vsel %vm377_vm2, %v3357_v36, %v3362_v37  ;;  %v661_v3 = vsel %vm377_vm2, %v3361_v0, %v3356_v21  ;;  %v662_v5 = vsel %vm377_vm2, %v3362_v37, %v3357_v36 }
 0x2f6   : > { %v3365_v45 = vpop.permute.xlu0 %3364  ;;  %v3375_v22 = vpop.permute.xlu1 %3374 }
 0x2f7   : > { %v3367_v57 = vunpack.i.h.bf16 %v3365_v45  ;;  %v3366_v1 = vunpack.i.l.bf16 %v3365_v45  ;;  %v3377_v23 = vunpack.i.h.bf16 %v3375_v22  ;;  %v3376_v62 = vunpack.i.l.bf16 %v3375_v22 }
 0x2f9   : > { %v685_v17 = vsel %vm384_vm3, %v3376_v62, %v3366_v1  ;;  %v686_v31 = vsel %vm384_vm3, %v3377_v23, %v3367_v57  ;;  %v681_v20 = vsel %vm384_vm3, %v3366_v1, %v3376_v62  ;;  %v682_v45 = vsel %vm384_vm3, %v3367_v57, %v3377_v23 }
 0x2fa   : > { %v4671_v22 = vpop.permute.xlu0 %3369  ;;  %v4673_v19 = vpop.permute.xlu1 %3379  ;;  %v692_v21 = vsel %vm4310_vm8, %v685_v17, %v657_v63  ;;  %v694_v36 = vsel %vm4310_vm8, %v686_v31, %v658_v2  ;;  %v691_v37 = vsel %vm4302_vm6, %v681_v20, %v661_v3  ;;  %v693_v0 = vsel %vm4302_vm6, %v682_v45, %v662_v5 }
 0x2fb   : > { %v3347_v1 = vunpack.i.h.bf16 %v3345_v28  ;;  %v3346_v62 = vunpack.i.l.bf16 %v3345_v28  ;;  %v3351_v57 = vunpack.i.l.bf16 %v3350_v18  ;;  %v3292_v23 = vunpack.i.h.bf16 %v4619_v59 }
 0x2fc   : > { %v2902_v14 = vpack.c.bf16 %v694_v36, %v692_v21  ;;  %v2904_v35 = vpack.c.bf16 %v693_v0, %v691_v37  ;;  %v3337_v63 = vunpack.i.h.bf16 %v4641_v41  ;;  %v3336_v2 = vunpack.i.l.bf16 %v4641_v41 }
 0x2fd   : > { %v3342_v17 = vunpack.i.h.bf16 %v4643_v42  ;;  %v3341_v3 = vunpack.i.l.bf16 %v4643_v42  ;;  %v6576_v5 = vunpack.i.h.bf16 %v4502_v10  ;;  %v3286_v28 = vunpack.i.l.bf16 %v4502_v10 }
 0x2fe   : > { %v3297_v18 = vunpack.i.h.bf16 %v4526_v27  ;;  %v3296_v31 = vunpack.i.l.bf16 %v4526_v27  ;;  %2903 = vmatprep.subr.bf16.mxu1 %v2902_v14  ;;  %v4693_v59 = vpop.permute.xlu0 %3384  ;;  %v4695_v20 = vpop.permute.xlu1 %3389  ;;  %v735_v41 = vsel %vm400_vm5, %v3346_v62, %v3351_v57  ;;  %v736_v42 = vsel %vm400_vm5, %v3347_v1, %v3352_v16 }
 0x2ff   : > { %2905 = vmatpush1.bf16.msra.mxu1 %v2904_v35  ;;  %v739_v45 = vsel %vm400_vm5, %v3351_v57, %v3346_v62  ;;  %v740_v21 = vsel %vm400_vm5, %v3352_v16, %v3347_v1  ;;  %v4714_v27 = vsel %vm377_vm2, %v3281_v56, %v3286_v28  ;;  %v4722_v35 = vsel %vm377_vm2, %v3282_v38, %v6576_v5 }
 0x300   : > { %2907 = vmatprep.subr.bf16.mxu1 %v2906_v13  ;;  %v4726_v16 = vsel %vm384_vm3, %v3296_v31, %v3291_v55  ;;  %v4730_v49 = vsel %vm384_vm3, %v3297_v18, %v3292_v23  ;;  %v715_v50 = vsel %vm393_vm4, %v3341_v3, %v3336_v2  ;;  %v716_v13 = vsel %vm393_vm4, %v3342_v17, %v3337_v63 }
 0x301   : > { %v711_v14 = vsel %vm393_vm4, %v3336_v2, %v3341_v3  ;;  %v712_v36 = vsel %vm393_vm4, %v3337_v63, %v3342_v17  ;;  %v744_v1 = vsel %vm4314_vm9, %v735_v41, %v715_v50  ;;  %v746_v62 = vsel %vm4314_vm9, %v736_v42, %v716_v13 }
 0x302   : > { %v3395_v37 = vpop.permute.xlu0 %3394  ;;  %v3400_v0 = vpop.permute.xlu1 %3399  ;;  %v743_v57 = vsel %vm4306_vm7, %v739_v45, %v711_v14  ;;  %v745_v34 = vsel %vm4306_vm7, %v740_v21, %v712_v36  ;;  %v3302_v5 = vunpack.i.h.bf16 %v4621_v60  ;;  %v3301_v2 = vunpack.i.l.bf16 %v4621_v60 }
 0x303   : > { %v3312_v63 = vunpack.i.h.bf16 %v4623_v61  ;;  %2909 = vmatpush1.bf16.msra.mxu1 %v2908_v54  ;;  %v791_v17 = vsel %vm384_vm3, %v3291_v55, %v3296_v31  ;;  %v3397_v3 = vunpack.i.h.bf16 %v3395_v37  ;;  %v3396_v41 = vunpack.i.l.bf16 %v3395_v37 }
 0x304   : > { %v3402_v42 = vunpack.i.h.bf16 %v3400_v0  ;;  %v3401_v45 = vunpack.i.l.bf16 %v3400_v0  ;;  %2911 = vmatprep.subr.bf16.mxu1 %v2910_v25  ;;  %v3311_v21 = vunpack.i.l.bf16 %v4623_v61  ;;  %v2914_v50 = vpack.c.bf16 %v746_v62, %v744_v1 }
 0x305   : > { %v2916_v13 = vpack.c.bf16 %v745_v34, %v743_v57  ;;  %v792_v14 = vsel %vm384_vm3, %v3292_v23, %v3297_v18  ;;  %v3372_v51 = vunpack.i.h.bf16 %v4671_v22  ;;  %v3371_v52 = vunpack.i.l.bf16 %v4671_v22 }
 0x306   : > { %v3382_v54 = vunpack.i.h.bf16 %v4673_v19  ;;  %v3381_v55 = vunpack.i.l.bf16 %v4673_v19  ;;  %v3405_v31 = vpop.permute.xlu0 %3404  ;;  %v3415_v36 = vpop.permute.xlu1 %3414  ;;  %v717_v34 = vsel %vm393_vm4, %v3401_v45, %v3396_v41  ;;  %v718_v22 = vsel %vm393_vm4, %v3402_v42, %v3397_v3 }
 0x307   : > { %v3407_v37 = vunpack.i.h.bf16 %v3405_v31  ;;  %v3406_v6 = vunpack.i.l.bf16 %v3405_v31  ;;  %v3417_v7 = vunpack.i.h.bf16 %v3415_v36  ;;  %v3416_v25 = vunpack.i.l.bf16 %v3415_v36  ;;  %2913 = vmatpush1.bf16.msra.mxu1 %v2912_v26 }
 0x308   : > { %2915 = vmatprep.subr.bf16.mxu1 %v2914_v50  ;;  %v713_v19 = vsel %vm393_vm4, %v3396_v41, %v3401_v45  ;;  %v714_v23 = vsel %vm393_vm4, %v3397_v3, %v3402_v42  ;;  %v800_v42 = vsel %vm4310_vm8, %v4726_v16, %v4714_v27  ;;  %v802_v45 = vsel %vm4310_vm8, %v4730_v49, %v4722_v35 }
 0x309   : > { %v737_v18 = vsel %vm400_vm5, %v3406_v6, %v3416_v25  ;;  %v738_v8 = vsel %vm400_vm5, %v3407_v37, %v3417_v7  ;;  %v741_v9 = vsel %vm400_vm5, %v3416_v25, %v3406_v6  ;;  %v742_v26 = vsel %vm400_vm5, %v3417_v7, %v3407_v37 }
 0x30a   : > { %v4785_v0 = vpop.permute.xlu0 %3409  ;;  %v4787_v1 = vpop.permute.xlu1 %3419  ;;  %v748_v62 = vsel %vm4314_vm9, %v737_v18, %v717_v34  ;;  %v750_v57 = vsel %vm4314_vm9, %v738_v8, %v718_v22  ;;  %v747_v3 = vsel %vm4306_vm7, %v741_v9, %v713_v19  ;;  %v749_v41 = vsel %vm4306_vm7, %v742_v26, %v714_v23 }
 0x30b   : > { %2917 = vmatpush1.bf16.msra.mxu1 %v2916_v13  ;;  %v771_v50 = vsel %vm377_vm2, %v3286_v28, %v3281_v56  ;;  %v6590_v13 = vunpack.i.h.bf16 %v4502_v10  ;;  %v2918_v27 = vpack.c.bf16 %v750_v57, %v748_v62  ;;  %v2920_v16 = vpack.c.bf16 %v749_v41, %v747_v3 }
 0x30c   : > { %v797_v36 = vsel %vm384_vm3, %v3381_v55, %v3371_v52  ;;  %v798_v35 = vsel %vm384_vm3, %v3382_v54, %v3372_v51  ;;  %v799_v49 = vsel %vm4302_vm6, %v791_v17, %v771_v50  ;;  %v769_v28 = vsel %vm377_vm2, %v3301_v2, %v3311_v21 }
 0x30d   : > { %v772_v31 = vsel %vm377_vm2, %v6590_v13, %v3282_v38  ;;  %2919 = vmatprep.subr.bf16.mxu1 %v2918_v27  ;;  %v2922_v38 = vpack.c.bf16 %v802_v45, %v800_v42  ;;  %v770_v17 = vsel %vm377_vm2, %v3302_v5, %v3312_v63  ;;  %v793_v6 = vsel %vm384_vm3, %v3371_v52, %v3381_v55 }
 0x30e   : > { %v801_v56 = vsel %vm4302_vm6, %v792_v14, %v772_v31  ;;  %v4825_v58 = vpop.permute.xlu0 %3424  ;;  %v4827_v10 = vpop.permute.xlu1 %3429  ;;  %v804_v14 = vsel %vm4310_vm8, %v797_v36, %v769_v28  ;;  %v806_v37 = vsel %vm4310_vm8, %v798_v35, %v770_v17  ;;  %v794_v7 = vsel %vm384_vm3, %v3372_v51, %v3382_v54 }
 0x30f   : > { %2921 = vmatpush1.bf16.msra.mxu1 %v2920_v16  ;;  %v2924_v25 = vpack.c.bf16 %v801_v56, %v799_v49  ;;  %v773_v34 = vsel %vm377_vm2, %v3311_v21, %v3301_v2  ;;  %v774_v22 = vsel %vm377_vm2, %v3312_v63, %v3302_v5  ;;  %v3412_v19 = vunpack.i.h.bf16 %v4785_v0 }
 0x310   : > { %2923 = vmatprep.subr.bf16.mxu1 %v2922_v38  ;;  %v3411_v52 = vunpack.i.l.bf16 %v4785_v0  ;;  %v3422_v51 = vunpack.i.h.bf16 %v4787_v1  ;;  %v3421_v54 = vunpack.i.l.bf16 %v4787_v1  ;;  %v2926_v18 = vpack.c.bf16 %v806_v37, %v804_v14 }
 0x311   : > { %v803_v2 = vsel %vm4302_vm6, %v793_v6, %v773_v34  ;;  %v805_v60 = vsel %vm4302_vm6, %v794_v7, %v774_v22  ;;  %v3387_v61 = vunpack.i.h.bf16 %v4693_v59  ;;  %v3386_v5 = vunpack.i.l.bf16 %v4693_v59 }
 0x312   : > { %v3435_v55 = vpop.permute.xlu0 %3434  ;;  %v3440_v23 = vpop.permute.xlu1 %3439  ;;  %v3392_v63 = vunpack.i.h.bf16 %v4695_v20  ;;  %v3391_v21 = vunpack.i.l.bf16 %v4695_v20  ;;  %v2928_v1 = vpack.c.bf16 %v805_v60, %v803_v2  ;;  %v847_v62 = vsel %vm400_vm5, %v3411_v52, %v3421_v54 }
 0x313   : > { %2925 = vmatpush1.bf16.msra.mxu1 %v2924_v25  ;;  %v3437_v8 = vunpack.i.h.bf16 %v3435_v55  ;;  %v3436_v9 = vunpack.i.l.bf16 %v3435_v55  ;;  %v3442_v26 = vunpack.i.h.bf16 %v3440_v23  ;;  %v3441_v0 = vunpack.i.l.bf16 %v3440_v23 }
 0x314   : > { %2927 = vmatprep.subr.bf16.mxu1 %v2926_v18  ;;  %v848_v57 = vsel %vm400_vm5, %v3412_v19, %v3422_v51  ;;  %v3427_v3 = vunpack.i.h.bf16 %v4825_v58  ;;  %v3426_v59 = vunpack.i.l.bf16 %v4825_v58  ;;  %v3432_v41 = vunpack.i.h.bf16 %v4827_v10 }
 0x315   : > { %v3431_v20 = vunpack.i.l.bf16 %v4827_v10  ;;  %v851_v50 = vsel %vm400_vm5, %v3421_v54, %v3411_v52  ;;  %v852_v13 = vsel %vm400_vm5, %v3422_v51, %v3412_v19  ;;  %v827_v31 = vsel %vm393_vm4, %v3391_v21, %v3386_v5 }
 0x316   : > { %v3445_v42 = vpop.permute.xlu0 %3444  ;;  %v3450_v45 = vpop.permute.xlu1 %3449  ;;  %v828_v27 = vsel %vm393_vm4, %v3392_v63, %v3387_v61  ;;  %v849_v16 = vsel %vm400_vm5, %v3436_v9, %v3441_v0  ;;  %v850_v36 = vsel %vm400_vm5, %v3437_v8, %v3442_v26  ;;  %v856_v35 = vsel %vm4314_vm9, %v847_v62, %v827_v31 }
 0x317   : > { %2929 = vmatpush1.bf16.msra.mxu1 %v2928_v1  ;;  %v858_v49 = vsel %vm4314_vm9, %v848_v57, %v828_v27  ;;  %v824_v56 = vsel %vm393_vm4, %v3387_v61, %v3392_v63  ;;  %v829_v17 = vsel %vm393_vm4, %v3431_v20, %v3426_v59  ;;  %v830_v14 = vsel %vm393_vm4, %v3432_v41, %v3427_v3 }
 0x318   : > { %2931 = vmatprep.subr.bf16.mxu1 %v4420_v32  ;;  %v823_v32 = vsel %vm393_vm4, %v3386_v5, %v3391_v21  ;;  %v857_v28 = vsel %vm4306_vm7, %v852_v13, %v824_v56  ;;  %v860_v37 = vsel %vm4314_vm9, %v849_v16, %v829_v17  ;;  %v862_v6 = vsel %vm4314_vm9, %v850_v36, %v830_v14 }
 0x319   : > { %v855_v38 = vsel %vm4306_vm7, %v851_v50, %v823_v32  ;;  %v853_v7 = vsel %vm400_vm5, %v3441_v0, %v3436_v9  ;;  %v854_v25 = vsel %vm400_vm5, %v3442_v26, %v3437_v8  ;;  %v3447_v51 = vunpack.i.h.bf16 %v3445_v42 }
 0x31a   : > { %v3455_v58 = vpop.permute.xlu0 %3454  ;;  %v3460_v10 = vpop.permute.xlu1 %3459  ;;  %v3452_v54 = vunpack.i.h.bf16 %v3450_v45  ;;  %v3451_v55 = vunpack.i.l.bf16 %v3450_v45  ;;  %v2938_v2 = vpack.c.bf16 %v858_v49, %v856_v35  ;;  %v825_v60 = vsel %vm393_vm4, %v3426_v59, %v3431_v20 }
 0x31b   : > { %2933 = vmatpush1.bf16.msra.mxu1 %v4422_v33  ;;  %v3457_v34 = vunpack.i.h.bf16 %v3455_v58  ;;  %v3456_v22 = vunpack.i.l.bf16 %v3455_v58  ;;  %v3462_v19 = vunpack.i.h.bf16 %v3460_v10  ;;  %v3461_v52 = vunpack.i.l.bf16 %v3460_v10 }
 0x31c   : > { %2935 = vmatprep.subr.bf16.mxu1 %v4432_v43  ;;  %v3446_v33 = vunpack.i.l.bf16 %v3445_v42  ;;  %v826_v61 = vsel %vm393_vm4, %v3427_v3, %v3432_v41  ;;  %v2940_v5 = vpack.c.bf16 %v857_v28, %v855_v38  ;;  %v2942_v63 = vpack.c.bf16 %v862_v6, %v860_v37 }
 0x31d   : > { %v859_v43 = vsel %vm4306_vm7, %v853_v7, %v825_v60  ;;  %v861_v21 = vsel %vm4306_vm7, %v854_v25, %v826_v61  ;;  %v907_v8 = vsel %vm384_vm3, %v3461_v52, %v3456_v22  ;;  %v908_v9 = vsel %vm384_vm3, %v3462_v19, %v3457_v34 }
 0x31e   : > { %v4916_v23 = vpop.permute.xlu0 %3464  ;;  %v4918_v18 = vpop.permute.xlu1 %3469  ;;  %v903_v26 = vsel %vm384_vm3, %v3456_v22, %v3461_v52  ;;  %v879_v0 = vsel %vm377_vm2, %v3446_v33, %v3451_v55  ;;  %v880_v1 = vsel %vm377_vm2, %v3447_v51, %v3452_v54  ;;  %v883_v62 = vsel %vm377_vm2, %v3451_v55, %v3446_v33 }
 0x31f   : > { %2937 = vmatpush1.bf16.msra.mxu1 %v4434_v44  ;;  %v904_v44 = vsel %vm384_vm3, %v3457_v34, %v3462_v19  ;;  %v884_v57 = vsel %vm377_vm2, %v3452_v54, %v3447_v51  ;;  %v3467_v3 = vunpack.i.h.bf16 %v4916_v23  ;;  %v3466_v59 = vunpack.i.l.bf16 %v4916_v23 }
 0x320   : > { %2939 = vmatprep.subr.bf16.mxu1 %v2938_v2  ;;  %v3472_v41 = vunpack.i.h.bf16 %v4918_v18  ;;  %v3471_v20 = vunpack.i.l.bf16 %v4918_v18  ;;  %v912_v50 = vsel %vm4310_vm8, %v907_v8, %v879_v0  ;;  %v914_v13 = vsel %vm4310_vm8, %v908_v9, %v880_v1 }
 0x321   : > { %v911_v31 = vsel %vm4302_vm6, %v903_v26, %v883_v62  ;;  %v913_v27 = vsel %vm4302_vm6, %v904_v44, %v884_v57  ;;  %v2944_v32 = vpack.c.bf16 %v861_v21, %v859_v43  ;;  %v2946_v28 = vpack.c.bf16 %v914_v13, %v912_v50 }
 0x322   : > { %v3475_v42 = vpop.permute.xlu0 %3474  ;;  %v3480_v45 = vpop.permute.xlu1 %3479  ;;  %v936_v56 = vsel %vm393_vm4, %v3467_v3, %v3472_v41  ;;  %v935_v58 = vsel %vm393_vm4, %v3466_v59, %v3471_v20  ;;  %v2948_v17 = vpack.c.bf16 %v913_v27, %v911_v31  ;;  %v939_v26 = vsel %vm393_vm4, %v3471_v20, %v3466_v59 }
 0x323   : > { %2941 = vmatpush1.bf16.msra.mxu1 %v2940_v5  ;;  %v3477_v16 = vunpack.i.h.bf16 %v3475_v42  ;;  %v3476_v36 = vunpack.i.l.bf16 %v3475_v42  ;;  %v3482_v35 = vunpack.i.h.bf16 %v3480_v45  ;;  %v3481_v49 = vunpack.i.l.bf16 %v3480_v45 }
 0x324   : > { %2943 = vmatprep.subr.bf16.mxu1 %v2942_v63  ;;  %v940_v44 = vsel %vm393_vm4, %v3472_v41, %v3467_v3 }
 0x325   : > { %v881_v25 = vsel %vm377_vm2, %v3476_v36, %v3481_v49  ;;  %v882_v34 = vsel %vm377_vm2, %v3477_v16, %v3482_v35  ;;  %v885_v22 = vsel %vm377_vm2, %v3481_v49, %v3476_v36  ;;  %v886_v19 = vsel %vm377_vm2, %v3482_v35, %v3477_v16 }
 0x326   : > { %v3485_v10 = vpop.permute.xlu0 %3484  ;;  %v3495_v38 = vpop.permute.xlu1 %3494  ;;  %v6591_v16 = vpack.c.bf16 %v4518_v24, %v4514_v15  ;;  %v6593_v24 = vpack.c.bf16 %v4558_v53, %v4554_v48 }
 0x327   : > { %v3487_v14 = vunpack.i.h.bf16 %v3485_v10  ;;  %v3486_v37 = vunpack.i.l.bf16 %v3485_v10  ;;  %v3497_v6 = vunpack.i.h.bf16 %v3495_v38  ;;  %v3496_v7 = vunpack.i.l.bf16 %v3495_v38  ;;  %2945 = vmatpush1.bf16.msra.mxu1 %v2944_v32 }
 0x328   : > { %2947 = vmatprep.subr.bf16.mxu1 %v2946_v28 }
 0x329   : > { %v909_v52 = vsel %vm384_vm3, %v3496_v7, %v3486_v37  ;;  %v910_v51 = vsel %vm384_vm3, %v3497_v6, %v3487_v14  ;;  %v905_v33 = vsel %vm384_vm3, %v3486_v37, %v3496_v7  ;;  %v906_v54 = vsel %vm384_vm3, %v3487_v14, %v3497_v6 }
 0x32a   : > { %v3490_v55 = vpop.permute.xlu0 %3489  ;;  %v3500_v23 = vpop.permute.xlu1 %3499  ;;  %v916_v18 = vsel %vm4310_vm8, %v909_v52, %v881_v25  ;;  %v918_v2 = vsel %vm4310_vm8, %v910_v51, %v882_v34  ;;  %v915_v60 = vsel %vm4302_vm6, %v905_v33, %v885_v22  ;;  %v917_v61 = vsel %vm4302_vm6, %v906_v54, %v886_v19  ;;  %v343_v51 = vld [vmem:[%s6563_s2] sm:$0xff]  ;;  %v345_v54 = vld [vmem:[%s6563_s2 + $0x10] sm:$0xff] }
 0x32b   : > { %v3492_v5 = vunpack.i.h.bf16 %v3490_v55  ;;  %v3491_v63 = vunpack.i.l.bf16 %v3490_v55  ;;  %v3502_v43 = vunpack.i.h.bf16 %v3500_v23  ;;  %v3501_v21 = vunpack.i.l.bf16 %v3500_v23  ;;  %2949 = vmatpush1.bf16.msra.mxu1 %v2948_v17  ;;  %v347_v33 = vld [vmem:[%s6563_s2 + $0x20] sm:$0xff]  ;;  %v350_v55 = vld [vmem:[%s6563_s2 + $0x38] sm:$0xff] }
 0x32c   : > { %v2950_v8 = vpack.c.bf16 %v918_v2, %v916_v18  ;;  %v2952_v9 = vpack.c.bf16 %v917_v61, %v915_v60  ;;  %v6594_v22 = vpack.c.bf16 %v4550_v47, %v4546_v46  ;;  %v346_v46 = vld [vmem:[%s6563_s2 + $0x18] sm:$0xff]  ;;  %v4123_v47 = vld [vmem:[%s4212_s10 + $0x8] sm:$0xff]  ;;  %v6595_v23 = vmov 0.0   ;;  %v349_v2 = vld [vmem:[%s6563_s2 + $0x30] sm:$0xff] }
 0x32d   : > { %v964_v0 = vsel %vm400_vm5, %v3502_v43, %v3492_v5  ;;  %v963_v1 = vsel %vm400_vm5, %v3501_v21, %v3491_v63  ;;  %v959_v62 = vsel %vm400_vm5, %v3491_v63, %v3501_v21  ;;  %v960_v57 = vsel %vm400_vm5, %v3492_v5, %v3502_v43  ;;  %v348_v18 = vld [vmem:[%s6563_s2 + $0x28] sm:$0xff]  ;;  %v4124_v60 = vld [vmem:[%s4212_s10] sm:$0xff]  ;;  %v353_v61 = vld [vmem:[%s6563_s2 + $0x50] sm:$0xff] }
 0x32e   : > { %2951 = vmatprep.subr.bf16.mxu1 %v2950_v8  ;;  %v3505_v42 = vpop.permute.xlu0 %3504  ;;  %v3510_v45 = vpop.permute.xlu1 %3509  ;;  %v968_v59 = vsel %vm4314_vm9, %v959_v62, %v939_v26  ;;  %v970_v3 = vsel %vm4314_vm9, %v960_v57, %v940_v44  ;;  %v967_v41 = vsel %vm4306_vm7, %v963_v1, %v935_v58  ;;  %v969_v20 = vsel %vm4306_vm7, %v964_v0, %v936_v56  ;;  %v351_v5 = vld [vmem:[%s6563_s2 + $0x40] sm:$0xff]  ;;  %v352_v63 = vld [vmem:[%s6563_s2 + $0x48] sm:$0xff]  ;;  %v354_v43 = vld [vmem:[%s6563_s2 + $0x58] sm:$0xff] }
 0x32f   : > { %v3507_v50 = vunpack.i.h.bf16 %v3505_v42  ;;  %v3506_v13 = vunpack.i.l.bf16 %v3505_v42  ;;  %2953 = vmatpush1.bf16.msra.mxu1 %v2952_v9  ;;  %v3512_v31 = vunpack.i.h.bf16 %v3510_v45  ;;  %v3511_v27 = vunpack.i.l.bf16 %v3510_v45 }
 0x330   : > { %2955 = vmatprep.subr.bf16.mxu1 %v6591_v16  ;;  %v2962_v36 = vpack.c.bf16 %v970_v3, %v968_v59  ;;  %v2964_v35 = vpack.c.bf16 %v969_v20, %v967_v41  ;;  %v6592_v56 = vpack.c.bf16 %v4510_v12, %v4506_v11 }
 0x331   : > { %v938_v17 = vsel %vm393_vm4, %v3507_v50, %v3512_v31  ;;  %v937_v15 = vsel %vm393_vm4, %v3506_v13, %v3511_v27  ;;  %v941_v14 = vsel %vm393_vm4, %v3511_v27, %v3506_v13  ;;  %v942_v37 = vsel %vm393_vm4, %v3512_v31, %v3507_v50 }
 0x332   : > { %2963 = vmatprep.subr.bf16.mxu0 %v2962_v36  ;;  %v3515_v49 = vpop.permute.xlu0 %3514  ;;  %v3520_v32 = vpop.permute.xlu1 %3519 }
 0x333   : > { %v3517_v10 = vunpack.i.h.bf16 %v3515_v49  ;;  %v3516_v38 = vunpack.i.l.bf16 %v3515_v49  ;;  %v3522_v58 = vunpack.i.h.bf16 %v3520_v32  ;;  %v3521_v28 = vunpack.i.l.bf16 %v3520_v32  ;;  %2957 = vmatpush1.bf16.msra.mxu1 %v6592_v56  ;;  %2965 = vmatpush1.bf16.msra.mxu0 %v2964_v35 }
 0x334   : > { %2959 = vmatprep.subr.bf16.mxu1 %v6593_v24 }
 0x335   : > { %v966_v11 = vsel %vm400_vm5, %v3522_v58, %v3517_v10  ;;  %v965_v12 = vsel %vm400_vm5, %v3521_v28, %v3516_v38  ;;  %v961_v6 = vsel %vm400_vm5, %v3516_v38, %v3521_v28  ;;  %v962_v7 = vsel %vm400_vm5, %v3517_v10, %v3522_v58 }
 0x336   : > { %v972_v48 = vsel %vm4314_vm9, %v961_v6, %v941_v14  ;;  %v974_v53 = vsel %vm4314_vm9, %v962_v7, %v942_v37  ;;  %v971_v25 = vsel %vm4306_vm7, %v965_v12, %v937_v15  ;;  %v973_v34 = vsel %vm4306_vm7, %v966_v11, %v938_v17 }
 0x337   : > { %2961 = vmatpush1.bf16.msra.mxu1 %v6594_v22  ;;  %v2966_v19 = vpack.c.bf16 %v974_v53, %v972_v48  ;;  %v2968_v52 = vpack.c.bf16 %v973_v34, %v971_v25 }
 0x339   : > { %2967 = vmatprep.subr.bf16.mxu0 %v2966_v19 }
 0x33a   : > { %2969 = vmatpush1.bf16.msra.mxu0 %v2968_v52  ;;  %1069 = vmatmul.mubr.f32.vlgmr.msra.gmra.mrb[0].mxu1 %v343_v51 }
 0x33b   : > { %1074 = vmatprep.mubr.f32.mxu1 %v347_v33  ;;  %1319 = vmatprep.subr.mxu0 %v4123_v47 }
 0x33d   : > { %2854 = vmatmul.mubr.msk.f32.vlgmr.msra.gmra.mrb[8].mxu0 %vm991_vm11, %v345_v54 }
 0x33e   : > { %1075 = vmatmul.mubr.f32.gmra.mrb[2].mxu1 %v346_v46  ;;  %1163 = vmatprep.mubr.f32.mxu0 %v6595_v23 }
 0x33f   : > { %1080 = vmatprep.mubr.f32.mxu1 %v350_v55  ;;  %1320 = vmatpush1.msra.mxu0 %v4124_v60 }
 0x341   : > { %2855 = vmatmul.mubr.msk.f32.gmra.mrb[10].mxu0 %vm991_vm11, %v348_v18 }
 0x342   : > { %1081 = vmatmul.mubr.f32.gmra.mrb[4].mxu1 %v349_v2  ;;  %1169 = vmatprep.mubr.f32.mxu0 %v6595_v23  ;;  %v5127_v2 = vld [vmem:[%s6564_s3 + $0x8] sm:$0xff] }
 0x343   : > { %1086 = vmatprep.mubr.f32.mxu1 %v353_v61  ;;  %v977_v21 = vpop.permute.xlu0 %976  ;;  %v981_v9 = vpop.permute.xlu1 %980 }
 0x345   : > { %2856 = vmatmul.mubr.msk.f32.gmra.mrb[12].mxu0 %vm991_vm11, %v351_v5  ;;  %v4126_v5 = vld [vmem:[%s6564_s3] sm:$0xff] }
 0x346   : > { %1087 = vmatmul.mubr.f32.gmra.mrb[6].mxu1 %v352_v63  ;;  %1175 = vmatprep.mubr.f32.mxu0 %v6595_v23 }
 0x347   : > { %v985_v50 = vpop.permute.xlu1 %984  ;;  %v989_v17 = vpop.permute.xlu0 %988 }
 0x349   : > { %2857 = vmatmul.mubr.msk.f32.gmra.mrb[14].mxu0 %vm991_vm11, %v354_v43 }
 0x34a   : > { %1383 = vmatprep.mubr.f32.mxu0 %v6595_v23 }
 0x40d   : > { %v1070_v8 = vpop.f32.mrb[0].mxu1 }
 0x40e   : > { %v1072_v26 = vpop.f32.mrb[1].mxu1  ;;  %v1071_v44 = vadd.f32 %v1070_v8, %v977_v21  ;;  %v4127_v8 = vld [vmem:[%s6564_s3 + $0x10] sm:$0xff] }
 0x40f   : > { %v1073_v0 = vadd.f32 %v1072_v26, %v977_v21 }
 0x410   : > { %v1159_v1 = vpop.f32.mrb[8].mxu0 }
 0x411   : > { %v1076_v62 = vpop.f32.mrb[2].mxu1  ;;  %v5084_v57 = vadd.f32 %v1159_v1, %v1071_v44  ;;  %v1161_v42 = vpop.f32.mrb[9].mxu0 }
 0x412   : > { %v1078_v45 = vpop.f32.mrb[3].mxu1  ;;  %v5086_v59 = vadd.f32 %v1161_v42, %v1073_v0  ;;  %v1077_v3 = vadd.f32 %v1076_v62, %v981_v9  ;;  %v4128_v42 = vld [vmem:[%s6564_s3 + $0x18] sm:$0xff] }
 0x413   : > { %v1182_v41 = vmax.f32 %v5084_v57, 0.0  ;;  %v1079_v20 = vadd.f32 %v1078_v45, %v981_v9 }
 0x414   : > { %v1183_v13 = vmax.f32 %v5086_v59, 0.0  ;;  %v1165_v31 = vpop.f32.mrb[10].mxu0 }
 0x415   : > { %v5090_v27 = vadd.f32 %v1165_v31, %v1077_v3  ;;  %v1167_v16 = vpop.f32.mrb[11].mxu0  ;;  %v1082_v36 = vpop.f32.mrb[4].mxu1 }
 0x416   : > { %v5092_v35 = vadd.f32 %v1167_v16, %v1079_v20  ;;  %v1084_v49 = vpop.f32.mrb[5].mxu1  ;;  %v1083_v32 = vadd.f32 %v1082_v36, %v985_v50  ;;  %v1190_v10 = vadd.f32 %v1183_v13, %v1182_v41  ;;  %v1286_v36 = vld [vmem:[%s6565_s4] sm:$0xff] }
 0x417   : > { %v1184_v38 = vmax.f32 %v5090_v27, 0.0  ;;  %v1085_v28 = vadd.f32 %v1084_v49, %v985_v50  ;;  %2862 = vmatmul.mubr.msk.f32.vlgmr.msra.gmra.mrb[16].mxu0 %vm1306_vm13, %v1286_v36 }
 0x418   : > { %v1185_v58 = vmax.f32 %v5092_v35, 0.0  ;;  %v1171_v56 = vpop.f32.mrb[12].mxu0  ;;  %1191 = vadd.xlane.f32.xlu1 %v1190_v10  ;;  %1389 = vmatprep.mubr.f32.mxu0 %v6595_v23 }
 0x419   : > { %v5100_v15 = vadd.f32 %v1171_v56, %v1083_v32  ;;  %v1173_v24 = vpop.f32.mrb[13].mxu0  ;;  %v1088_v14 = vpop.f32.mrb[6].mxu1  ;;  %v1287_v56 = vld [vmem:[%s6565_s4 + $0x8] sm:$0xff] }
 0x41a   : > { %v5102_v37 = vadd.f32 %v1173_v24, %v1085_v28  ;;  %v1090_v11 = vpop.f32.mrb[7].mxu1  ;;  %v1193_v12 = vadd.f32 %v1185_v58, %v1184_v38  ;;  %v1089_v7 = vadd.f32 %v1088_v14, %v989_v17  ;;  %v4150_v24 = vmov 6   ;;  %v1288_v14 = vld [vmem:[%s6565_s4 + $0x10] sm:$0xff] }
 0x41b   : > { %v1186_v6 = vmax.f32 %v5100_v15, 0.0  ;;  %v1091_v53 = vadd.f32 %v1090_v11, %v989_v17  ;;  %2863 = vmatmul.mubr.msk.f32.gmra.mrb[18].mxu0 %vm1306_vm13, %v1287_v56  ;;  %3525 = vset.pattern.permute.xlu1 %v4150_v24  ;;  %v1289_v11 = vld [vmem:[%s6565_s4 + $0x18] sm:$0xff] }
 0x41c   : > { %v1187_v48 = vmax.f32 %v5102_v37, 0.0  ;;  %v1177_v25 = vpop.f32.mrb[14].mxu0  ;;  %1194 = vadd.xlane.f32.xlu0 %v1193_v12  ;;  %1395 = vmatprep.mubr.f32.mxu0 %v6595_v23 }
 0x41d   : > { %v5110_v34 = vadd.f32 %v1177_v25, %v1089_v7  ;;  %v1179_v22 = vpop.f32.mrb[15].mxu0  ;;  %3526 = vset.pattern.permute.xlu0 %v4150_v24 }
 0x41e   : > { %v5112_v19 = vadd.f32 %v1179_v22, %v1091_v53  ;;  %v1196_v52 = vadd.f32 %v1187_v48, %v1186_v6 }
 0x41f   : > { %v1188_v51 = vmax.f32 %v5110_v34, 0.0  ;;  %2864 = vmatmul.mubr.msk.f32.gmra.mrb[20].mxu0 %vm1306_vm13, %v1288_v14 }
 0x420   : > { %v1189_v33 = vmax.f32 %v5112_v19, 0.0  ;;  %1197 = vadd.xlane.f32.xlu0 %v1196_v52  ;;  %1401 = vmatprep.mubr.f32.mxu0 %v6595_v23 }
 0x422   : > { %v1199_v54 = vadd.f32 %v1189_v33, %v1188_v51 }
 0x423   : > { %2865 = vmatmul.mubr.msk.f32.gmra.mrb[22].mxu0 %vm1306_vm13, %v1289_v11 }
 0x424   : > { %1200 = vadd.xlane.f32.xlu1 %v1199_v54 }
 0x4a5   : > { %v1192_v46 = vpop.xlane.xlu1 %1191 }
 0x4a6   : > { %v1202_v55 = vmul.f32 0.00390625, %v1192_v46 }
 0x4a8   : > { %v1206_v63 = vmul.f32 %v4126_v5, %v1202_v55 }
 0x4a9   : > { %v1195_v47 = vpop.xlane.xlu0 %1194 }
 0x4aa   : > { %v1203_v18 = vmul.f32 0.00390625, %v1195_v47  ;;  %v1211_v44 = vsel %vm1210_vm12, %v1206_v63, 0.0 }
 0x4ac   : > { %v1207_v60 = vmul.f32 %v5127_v2, %v1203_v18 }
 0x4ad   : > { %v1198_v61 = vpop.xlane.xlu0 %1197 }
 0x4ae   : > { %v1204_v43 = vmul.f32 0.00390625, %v1198_v61  ;;  %v1212_v21 = vsel %vm1210_vm12, %v1207_v60, 0.0 }
 0x4af   : > { %v1213_v62 = vadd.f32 %v1212_v21, %v1211_v44  ;;  %v6596_v44 = vmov 0  }
 0x4b0   : > { %v1208_v9 = vmul.f32 %v4127_v8, %v1204_v43 }
 0x4b1   : > { %v1201_v26 = vpop.xlane.xlu1 %1200 }
 0x4b2   : > { %v1214_v0 = vsel %vm1210_vm12, %v1208_v9, 0.0  ;;  %v1205_v1 = vmul.f32 0.00390625, %v1201_v26 }
 0x4b3   : > { %v1215_v3 = vadd.f32 %v1214_v0, %v1213_v62 }
 0x4b4   : > { %v1209_v45 = vmul.f32 %v4128_v42, %v1205_v1 }
 0x4b6   : > { %v1216_v20 = vsel %vm1210_vm12, %v1209_v45, 0.0 }
 0x4b7   : > { %v1217_v50 = vadd.f32 %v1216_v20, %v1215_v3 }
 0x4b9   : > { %v1218_v31 = vrot.slane %v1217_v50, 4 }
 0x4bb   : > { %v1219_v16 = vadd.f32 %v1218_v31, %v1217_v50 }
 0x4bd   : > { %v1220_v49 = vrot.slane %v1219_v16, 2 }
 0x4bf   : > { %v1221_v32 = vadd.f32 %v1220_v49, %v1219_v16 }
 0x4c1   : > { %v1222_v10 = vrot.slane %v1221_v32, 1 }
 0x4c3   : > { %v1223_v28 = vadd.f32 %v1222_v10, %v1221_v32 }
 0x4c5   : > { %v1224_v17 = vmax.f32 %v1223_v28, 0.0 }
 0x4c7   : > { %1226 = vrot.lane.b32.xlu0 %v1224_v17, %s4151_s17 }
 0x4ea   : > { %v1385_v52 = vpop.f32.mrb[16].mxu0 }
 0x4eb   : > { %v5168_v54 = vpop.f32.mrb[17].mxu0 }
 0x539   : > { %v1227_v12 = vpop.permute.xlu0 %1226 }
 0x53a   : > { %v1231_v7 = vmul.f32 %v4127_v8, %v1227_v12  ;;  %v1229_v53 = vmul.f32 %v4126_v5, %v1227_v12  ;;  %v1230_v25 = vmul.f32 %v5127_v2, %v1227_v12  ;;  %v1232_v22 = vmul.f32 %v4128_v42, %v1227_v12 }
 0x53c   : > { %1241 = vrot.lane.b32.xlu0 %v1231_v7, %s4152_s20  ;;  %1237 = vrot.lane.b32.xlu1 %v1229_v53, %s4152_s20 }
 0x540   : > { %1239 = vrot.lane.b32.xlu1 %v1230_v25, %s4152_s20 }
 0x544   : > { %1243 = vrot.lane.b32.xlu1 %v1232_v22, %s4152_s20 }
 0x548   : > { %1291 = vperm.xlu1 %3525, %v4126_v5   ;;  %v1391_v5 = vpop.f32.mrb[18].mxu0 }
 0x549   : > { %v1393_v21 = vpop.f32.mrb[19].mxu0 }
 0x54a   : > { %v1397_v9 = vpop.f32.mrb[20].mxu0 }
 0x54b   : > { %v5174_v26 = vpop.f32.mrb[21].mxu0 }
 0x54c   : > { %v1403_v0 = vpop.f32.mrb[22].mxu0 }
 0x54d   : > { %v1405_v1 = vpop.f32.mrb[23].mxu0 }
 0x5ae   : > { %v1238_v46 = vpop.permute.xlu1 %1237  ;;  %v1242_v55 = vpop.permute.xlu0 %1241 }
 0x5af   : > { %v1250_v47 = vsel %vm1249_vm14, %v1238_v46, 0.0  ;;  %v1256_v60 = vsel %vm1249_vm14, %v1242_v55, 0.0 }
 0x5b0   : > { %1251 = vadd.xlane.f32.xlu0 %v1250_v47 }
 0x5b2   : > { %v1240_v18 = vpop.permute.xlu1 %1239 }
 0x5b3   : > { %v1253_v61 = vsel %vm1249_vm14, %v1240_v18, 0.0 }
 0x5b4   : > { %1257 = vadd.xlane.f32.xlu0 %v1256_v60  ;;  %1254 = vadd.xlane.f32.xlu1 %v1253_v61 }
 0x5b6   : > { %v1244_v63 = vpop.permute.xlu1 %1243 }
 0x5b7   : > { %v1259_v43 = vsel %vm1249_vm14, %v1244_v63, 0.0 }
 0x5b8   : > { %1260 = vadd.xlane.f32.xlu0 %v1259_v43 }
 0x5c5   : > { %1299 = vperm.xlu1 %3525, %v4127_v8  }
 0x5c7   : > { %v1292_v62 = vpop.permute.xlu1 %1291 }
 0x5c8   : > { %v1386_v53 = vadd.f32 %v1385_v52, %v1292_v62  ;;  %v1388_v52 = vadd.f32 %v5168_v54, %v1292_v62 }
 0x5c9   : > { %1303 = vperm.xlu1 %3525, %v4128_v42  }
 0x5cd   : > { %3808 = vset.pattern.permute.xlu1 %v6596_v44 }
 0x5ce   : > { %1295 = vperm.xlu0 %3526, %v5127_v2  }
 0x5d2   : > { %3807 = vset.pattern.permute.xlu0 %v6596_v44 }
 0x63d   : > { %v1252_v45 = vpop.xlane.xlu0 %1251 }
 0x63e   : > { %v2858_v3 = vmul.f32 -1.442695, %v1252_v45 }
 0x640   : > { %4091 = vpow2.f32 %v2858_v3 }
 0x641   : > { %v1258_v20 = vpop.xlane.xlu0 %1257  ;;  %v1255_v8 = vpop.xlane.xlu1 %1254 }
 0x642   : > { %v2860_v42 = vmul.f32 -1.442695, %v1258_v20  ;;  %v2859_v50 = vmul.f32 -1.442695, %v1255_v8 }
 0x644   : > { %4093 = vpow2.f32 %v2860_v42 }
 0x645   : > { %4095 = vpow2.f32 %v2859_v50  ;;  %v1261_v31 = vpop.xlane.xlu0 %1260  ;;  %v1300_v14 = vpop.permute.xlu1 %1299 }
 0x646   : > { %v2861_v16 = vmul.f32 -1.442695, %v1261_v31 }
 0x648   : > { %4097 = vpow2.f32 %v2861_v16 }
 0x649   : > { %v1304_v60 = vpop.permute.xlu1 %1303 }
 0x64a   : > { %v4092_v36 = vpop.eup %4091  ;;  %v1404_v59 = vadd.f32 %v1403_v0, %v1304_v60  ;;  %v1406_v0 = vadd.f32 %v1405_v1, %v1304_v60 }
 0x64b   : > { %v1274_v49 = vadd.f32 1.0, %v4092_v36 }
 0x64d   : > { %4099 = vrcp.f32 %v1274_v49  ;;  %v1296_v11 = vpop.permute.xlu0 %1295 }
 0x64e   : > { %v4094_v2 = vpop.eup %4093  ;;  %v1392_v25 = vadd.f32 %v1391_v5, %v1296_v11  ;;  %v1394_v22 = vadd.f32 %v1393_v21, %v1296_v11 }
 0x64f   : > { %v4096_v32 = vpop.eup %4095  ;;  %v1276_v10 = vadd.f32 1.0, %v4094_v2 }
 0x650   : > { %v1275_v28 = vadd.f32 1.0, %v4096_v32 }
 0x651   : > { %4101 = vrcp.f32 %v1276_v10 }
 0x652   : > { %v4098_v56 = vpop.eup %4097  ;;  %4103 = vrcp.f32 %v1275_v28 }
 0x653   : > { %v1277_v17 = vadd.f32 1.0, %v4098_v56 }
 0x655   : > { %4105 = vrcp.f32 %v1277_v17 }
 0x657   : > { %v4100_v24 = vpop.eup %4099 }
 0x658   : > { %v1408_v12 = vmul.f32 %v4100_v24, %v1182_v41  ;;  %v1409_v55 = vmul.f32 %v4100_v24, %v1183_v13  ;;  %v1398_v41 = vadd.f32 %v1397_v9, %v1300_v14 }
 0x65a   : > { %v1416_v18 = vadd.f32 %v1408_v12, %v1386_v53  ;;  %v1417_v13 = vadd.f32 %v1409_v55, %v1388_v52 }
 0x65b   : > { %v4102_v7 = vpop.eup %4101 }
 0x65c   : > { %v4104_v46 = vpop.eup %4103  ;;  %v1412_v47 = vmul.f32 %v4102_v7, %v1186_v6  ;;  %v5192_v6 = vmax.f32 %v1416_v18, 0.0  ;;  %v1413_v9 = vmul.f32 %v4102_v7, %v1187_v48 }
 0x65d   : > { %v1410_v61 = vmul.f32 %v4104_v46, %v1184_v38  ;;  %v1411_v57 = vmul.f32 %v4104_v46, %v1185_v58 }
 0x65e   : > { %v1420_v21 = vadd.f32 %v1412_v47, %v1398_v41 }
 0x65f   : > { %v4106_v63 = vpop.eup %4105  ;;  %v1418_v43 = vadd.f32 %v1410_v61, %v1392_v25  ;;  %v1419_v5 = vadd.f32 %v1411_v57, %v1394_v22 }
 0x660   : > { %v1414_v15 = vmul.f32 %v4106_v63, %v1188_v51  ;;  %v1415_v35 = vmul.f32 %v4106_v63, %v1189_v33  ;;  %v5204_v54 = vmax.f32 %v1420_v21, 0.0  ;;  %v5208_v51 = vmax.f32 %v1417_v13, 0.0 }
 0x661   : > { %v5194_v44 = vmax.f32 %v1418_v43, 0.0  ;;  %v5198_v38 = vmax.f32 %v1419_v5, 0.0  ;;  %v1400_v33 = vadd.f32 %v5174_v26, %v1300_v14 }
 0x662   : > { %v1422_v27 = vadd.f32 %v1414_v15, %v1404_v59  ;;  %6597 = vst [vmem:[#allocation2_spill] sm:$0xff] %v5204_v54  ;;  %v1423_v62 = vadd.f32 %v1415_v35, %v1406_v0 }
 0x663   : > { %v5202_v58 = vpack.i.bf16 %v5194_v44, %v5192_v6  ;;  %v5221_v45 = vpack.i.bf16 %v5198_v38, %v5208_v51  ;;  %v1421_v37 = vadd.f32 %v1413_v9, %v1400_v33 }
 0x664   : > { %v5206_v34 = vmax.f32 %v1422_v27, 0.0  ;;  %v5227_v48 = vmax.f32 %v1423_v62, 0.0 }
 0x665   : > { %3528 = vrot.lane.b32.xlu1 %v5202_v58, %s4142_s12  ;;  %v5231_v1 = vmax.f32 %v1421_v37, 0.0 }
 0x666   : > { %6598 = vst [vmem:[#allocation3_spill] sm:$0xff] %v5206_v34  ;;  %v5216_v19 = vpack.i.bf16 %v5206_v34, %v5204_v54  ;;  %6599 = vst [vmem:[#allocation4_spill] sm:$0xff] %v5227_v48 }
 0x667   : > { %6600 = vst [vmem:[#allocation5_spill] sm:$0xff] %v5231_v1  ;;  %v5237_v26 = vpack.i.bf16 %v5227_v48, %v5231_v1 }
 0x668   : > { %3558 = vrot.lane.b32.xlu0 %v5216_v19, %s4141_s11 }
 0x669   : > { %3533 = vrot.lane.b32.xlu1 %v5221_v45, %s4142_s12 }
 0x66c   : > { %3568 = vrot.lane.b32.xlu0 %v5202_v58, %s4143_s13 }
 0x66d   : > { %3538 = vrot.lane.b32.xlu1 %v5216_v19, %s4142_s12 }
 0x670   : > { %3578 = vrot.lane.b32.xlu0 %v5202_v58, %s4144_s14 }
 0x671   : > { %3543 = vrot.lane.b32.xlu1 %v5237_v26, %s4142_s12 }
 0x674   : > { %3588 = vrot.lane.b32.xlu0 %v5216_v19, %s4143_s13 }
 0x675   : > { %3548 = vrot.lane.b32.xlu1 %v5202_v58, %s4141_s11 }
 0x678   : > { %3598 = vrot.lane.b32.xlu0 %v5216_v19, %s4144_s14 }
 0x679   : > { %3553 = vrot.lane.b32.xlu1 %v5221_v45, %s4141_s11 }
 0x67d   : > { %3563 = vrot.lane.b32.xlu1 %v5237_v26, %s4141_s11 }
 0x681   : > { %3573 = vrot.lane.b32.xlu1 %v5221_v45, %s4143_s13 }
 0x685   : > { %3583 = vrot.lane.b32.xlu1 %v5221_v45, %s4144_s14 }
 0x689   : > { %3593 = vrot.lane.b32.xlu1 %v5237_v26, %s4143_s13 }
 0x68d   : > { %3603 = vrot.lane.b32.xlu1 %v5237_v26, %s4144_s14 }
 0x6d7   : > { %v3529_v3 = vpop.permute.xlu1 %3528 }
 0x6d8   : > { %v3531_v8 = vunpack.i.h.bf16 %v3529_v3  ;;  %v3530_v42 = vunpack.i.l.bf16 %v3529_v3 }
 0x6da   : > { %v3559_v15 = vpop.permute.xlu0 %3558 }
 0x6db   : > { %v3534_v20 = vpop.permute.xlu1 %3533  ;;  %v3561_v9 = vunpack.i.h.bf16 %v3559_v15  ;;  %v3560_v0 = vunpack.i.l.bf16 %v3559_v15 }
 0x6dc   : > { %v3536_v50 = vunpack.i.h.bf16 %v3534_v20  ;;  %v3535_v31 = vunpack.i.l.bf16 %v3534_v20 }
 0x6de   : > { %v5263_v16 = vsel %vm363_vm0, %v3530_v42, %v3535_v31  ;;  %v5267_v36 = vsel %vm363_vm0, %v3531_v8, %v3536_v50  ;;  %v5271_v49 = vsel %vm363_vm0, %v3535_v31, %v3530_v42  ;;  %v5275_v2 = vsel %vm363_vm0, %v3536_v50, %v3531_v8 }
 0x6df   : > { %v3539_v32 = vpop.permute.xlu1 %3538  ;;  %v3607_v10 = vpack.i.bf16 %v5275_v2, %v5271_v49  ;;  %v3612_v28 = vpack.i.bf16 %v5267_v36, %v5263_v16  ;;  %v2978_v56 = vpack.c.bf16 %v5267_v36, %v5263_v16  ;;  %v2980_v17 = vpack.c.bf16 %v5275_v2, %v5271_v49 }
 0x6e0   : > { %v3541_v14 = vunpack.i.h.bf16 %v3539_v32  ;;  %v3540_v11 = vunpack.i.l.bf16 %v3539_v32 }
 0x6e1   : > { %3608 = vrot.lane.b32.xlu0 %v3607_v10, %s4143_s13  ;;  %3613 = vrot.lane.b32.xlu1 %v3612_v28, %s4143_s13 }
 0x6e3   : > { %v3544_v24 = vpop.permute.xlu1 %3543 }
 0x6e4   : > { %v3546_v12 = vunpack.i.h.bf16 %v3544_v24  ;;  %v3545_v7 = vunpack.i.l.bf16 %v3544_v24  ;;  %v1456_v24 = vld [vmem:[%s6568_s7] sm:$0xff] }
 0x6e5   : > { %3618 = vrot.lane.b32.xlu0 %v3607_v10, %s4144_s14  ;;  %3623 = vrot.lane.b32.xlu1 %v3612_v28, %s4144_s14 }
 0x6e6   : > { %v5291_v53 = vsel %vm363_vm0, %v3540_v11, %v3545_v7  ;;  %v5295_v25 = vsel %vm363_vm0, %v3541_v14, %v3546_v12  ;;  %v5299_v22 = vsel %vm363_vm0, %v3545_v7, %v3540_v11  ;;  %v5303_v46 = vsel %vm363_vm0, %v3546_v12, %v3541_v14  ;;  %v1457_v14 = vld [vmem:[%s6568_s7 + $0x8] sm:$0xff]  ;;  %v1458_v11 = vld [vmem:[%s6568_s7 + $0x10] sm:$0xff]  ;;  %v1459_v12 = vld [vmem:[%s6568_s7 + $0x18] sm:$0xff] }
 0x6e7   : > { %v3549_v47 = vpop.permute.xlu1 %3548  ;;  %v3627_v55 = vpack.i.bf16 %v5303_v46, %v5299_v22  ;;  %v3632_v18 = vpack.i.bf16 %v5295_v25, %v5291_v53  ;;  %v2982_v60 = vpack.c.bf16 %v5295_v25, %v5291_v53 }
 0x6e8   : > { %v3551_v41 = vunpack.i.h.bf16 %v3549_v47  ;;  %v3550_v63 = vunpack.i.l.bf16 %v3549_v47 }
 0x6e9   : > { %3628 = vrot.lane.b32.xlu0 %v3627_v55, %s4143_s13  ;;  %3633 = vrot.lane.b32.xlu1 %v3632_v18, %s4143_s13 }
 0x6eb   : > { %v3554_v57 = vpop.permute.xlu1 %3553 }
 0x6ec   : > { %v3556_v52 = vunpack.i.h.bf16 %v3554_v57  ;;  %v3555_v43 = vunpack.i.l.bf16 %v3554_v57 }
 0x6ed   : > { %3638 = vrot.lane.b32.xlu0 %v3627_v55, %s4144_s14  ;;  %3643 = vrot.lane.b32.xlu1 %v3632_v18, %s4144_s14 }
 0x6ee   : > { %v5319_v5 = vsel %vm370_vm1, %v3555_v43, %v3550_v63  ;;  %v5323_v21 = vsel %vm370_vm1, %v3556_v52, %v3551_v41  ;;  %v5331_v33 = vsel %vm370_vm1, %v3550_v63, %v3555_v43  ;;  %v5335_v62 = vsel %vm370_vm1, %v3551_v41, %v3556_v52 }
 0x6ef   : > { %v3564_v59 = vpop.permute.xlu1 %3563  ;;  %v3727_v32 = vpack.i.bf16 %v5335_v62, %v5331_v33 }
 0x6f0   : > { %v3566_v13 = vunpack.i.h.bf16 %v3564_v59  ;;  %v3565_v27 = vunpack.i.l.bf16 %v3564_v59 }
 0x6f1   : > { %3648 = vrot.lane.b32.xlu0 %v3607_v10, %s4146_s16  ;;  %3653 = vrot.lane.b32.xlu1 %v3612_v28, %s4146_s16 }
 0x6f2   : > { %v5339_v37 = vsel %vm370_vm1, %v3561_v9, %v3566_v13  ;;  %v5343_v3 = vsel %vm370_vm1, %v3566_v13, %v3561_v9  ;;  %v5347_v20 = vsel %vm370_vm1, %v3560_v0, %v3565_v27  ;;  %v5351_v8 = vsel %vm370_vm1, %v3565_v27, %v3560_v0 }
 0x6f5   : > { %3658 = vrot.lane.b32.xlu0 %v3607_v10, %s4145_s15  ;;  %3663 = vrot.lane.b32.xlu1 %v3612_v28, %s4145_s15  ;;  %v5408_v10 = vpop.permute.xlu0 %3568  ;;  %v5410_v28 = vpop.permute.xlu1 %3573 }
 0x6f6   : > { %v6577_v35 = vunpack.i.h.bf16 %v5410_v28 }
 0x6f9   : > { %3668 = vrot.lane.b32.xlu0 %v3627_v55, %s4146_s16  ;;  %3673 = vrot.lane.b32.xlu1 %v3632_v18, %s4146_s16  ;;  %v5424_v7 = vpop.permute.xlu0 %3578  ;;  %v5426_v47 = vpop.permute.xlu1 %3583 }
 0x6fd   : > { %3678 = vrot.lane.b32.xlu0 %v3627_v55, %s4145_s15  ;;  %3688 = vrot.lane.b32.xlu1 %v3632_v18, %s4145_s15  ;;  %v6601_v55 = vmov 1   ;;  %v5430_v18 = vpop.permute.xlu0 %3588  ;;  %v5432_v57 = vpop.permute.xlu1 %3593 }
 0x6fe   : > { %v3596_v49 = vunpack.i.h.bf16 %v5432_v57  ;;  %v3595_v2 = vunpack.i.l.bf16 %v5432_v57 }
 0x701   : > { %3683 = vrot.lane.b32.xlu0 %v5202_v58, %s4146_s16  ;;  %3693 = vrot.lane.b32.xlu1 %v5221_v45, %s4146_s16  ;;  %v5434_v41 = vpop.permute.xlu0 %3598  ;;  %v5436_v63 = vpop.permute.xlu1 %3603 }
 0x705   : > { %3698 = vrot.lane.b32.xlu0 %v5202_v58, %s4145_s15  ;;  %3703 = vrot.lane.b32.xlu1 %v5221_v45, %s4145_s15  ;;  %v3732_v58 = vpack.i.bf16 %v5323_v21, %v5319_v5  ;;  %v3752_v45 = vpack.i.bf16 %v5343_v3, %v5351_v8 }
 0x709   : > { %3708 = vrot.lane.b32.xlu0 %v5216_v19, %s4146_s16  ;;  %3713 = vrot.lane.b32.xlu1 %v5237_v26, %s4146_s16 }
 0x70d   : > { %3718 = vrot.lane.b32.xlu0 %v5216_v19, %s4145_s15  ;;  %3723 = vrot.lane.b32.xlu1 %v5237_v26, %s4145_s15  ;;  %v3747_v19 = vpack.i.bf16 %v5339_v37, %v5347_v20  ;;  %v1433_v26 = vld [vmem:[%s6566_s5 + $0x8] sm:$0xff] }
 0x70e   : > { %1940 = vmatprep.mubr.f32.mxu0 %v1433_v26 }
 0x711   : > { %3728 = vrot.lane.b32.xlu0 %v3727_v32, %s4143_s13  ;;  %3733 = vrot.lane.b32.xlu1 %v3732_v58, %s4143_s13 }
 0x715   : > { %3738 = vrot.lane.b32.xlu0 %v3727_v32, %s4144_s14  ;;  %3743 = vrot.lane.b32.xlu1 %v3732_v58, %s4144_s14 }
 0x719   : > { %3748 = vrot.lane.b32.xlu0 %v3747_v19, %s4143_s13  ;;  %3753 = vrot.lane.b32.xlu1 %v3752_v45, %s4143_s13 }
 0x71d   : > { %3758 = vrot.lane.b32.xlu0 %v3747_v19, %s4144_s14  ;;  %3763 = vrot.lane.b32.xlu1 %v3752_v45, %s4144_s14 }
 0x721   : > { %3768 = vrot.lane.b32.xlu0 %v3727_v32, %s4146_s16  ;;  %3773 = vrot.lane.b32.xlu1 %v3732_v58, %s4146_s16 }
 0x725   : > { %3778 = vrot.lane.b32.xlu0 %v3727_v32, %s4145_s15  ;;  %3783 = vrot.lane.b32.xlu1 %v3732_v58, %s4145_s15 }
 0x729   : > { %3788 = vrot.lane.b32.xlu0 %v3747_v19, %s4146_s16  ;;  %3793 = vrot.lane.b32.xlu1 %v3752_v45, %s4146_s16 }
 0x72d   : > { %3798 = vrot.lane.b32.xlu0 %v3747_v19, %s4145_s15  ;;  %3803 = vrot.lane.b32.xlu1 %v3752_v45, %s4145_s15 }
 0x731   : > { %1846 = vperm.xlu0 %3807, %v1456_v24   ;;  %1851 = vperm.xlu1 %3808, %v1457_v14  }
 0x735   : > { %1856 = vperm.xlu1 %3808, %v1458_v11   ;;  %1861 = vperm.xlu0 %3807, %v1459_v12  }
 0x739   : > { %4089 = vset.pattern.permute.xlu1 %v6601_v55  ;;  %4090 = vset.pattern.permute.xlu0 %v6601_v55 }
 0x753   : > { %v3609_v52 = vpop.permute.xlu0 %3608  ;;  %v3614_v43 = vpop.permute.xlu1 %3613 }
 0x754   : > { %v3611_v15 = vunpack.i.h.bf16 %v3609_v52  ;;  %v3610_v59 = vunpack.i.l.bf16 %v3609_v52  ;;  %v3616_v13 = vunpack.i.h.bf16 %v3614_v43  ;;  %v3615_v27 = vunpack.i.l.bf16 %v3614_v43 }
 0x756   : > { %v1529_v26 = vsel %vm377_vm2, %v3616_v13, %v3611_v15  ;;  %v1528_v24 = vsel %vm377_vm2, %v3615_v27, %v3610_v59  ;;  %v1524_v14 = vsel %vm377_vm2, %v3610_v59, %v3615_v27  ;;  %v1525_v11 = vsel %vm377_vm2, %v3611_v15, %v3616_v13 }
 0x757   : > { %v3619_v9 = vpop.permute.xlu0 %3618  ;;  %v3624_v0 = vpop.permute.xlu1 %3623 }
 0x758   : > { %v3621_v32 = vunpack.i.h.bf16 %v3619_v9  ;;  %v3620_v58 = vunpack.i.l.bf16 %v3619_v9  ;;  %v3626_v19 = vunpack.i.h.bf16 %v3624_v0  ;;  %v3625_v45 = vunpack.i.l.bf16 %v3624_v0 }
 0x75a   : > { %v1549_v12 = vsel %vm384_vm3, %v3621_v32, %v3626_v19  ;;  %v1548_v55 = vsel %vm384_vm3, %v3620_v58, %v3625_v45  ;;  %v1552_v52 = vsel %vm384_vm3, %v3625_v45, %v3620_v58  ;;  %v1553_v43 = vsel %vm384_vm3, %v3626_v19, %v3621_v32 }
 0x75b   : > { %v3629_v9 = vpop.permute.xlu0 %3628  ;;  %v3634_v0 = vpop.permute.xlu1 %3633  ;;  %v1557_v59 = vsel %vm4310_vm8, %v1552_v52, %v1524_v14  ;;  %v1559_v15 = vsel %vm4310_vm8, %v1553_v43, %v1525_v11  ;;  %v1556_v13 = vsel %vm4302_vm6, %v1548_v55, %v1528_v24  ;;  %v1558_v27 = vsel %vm4302_vm6, %v1549_v12, %v1529_v26 }
 0x75c   : > { %v3631_v31 = vunpack.i.h.bf16 %v3629_v9  ;;  %v3630_v50 = vunpack.i.l.bf16 %v3629_v9  ;;  %v3636_v58 = vunpack.i.h.bf16 %v3634_v0  ;;  %v3635_v45 = vunpack.i.l.bf16 %v3634_v0 }
 0x75d   : > { %v2970_v42 = vpack.c.bf16 %v1559_v15, %v1557_v59  ;;  %v2972_v32 = vpack.c.bf16 %v1558_v27, %v1556_v13  ;;  %v3571_v19 = vunpack.i.h.bf16 %v5408_v10  ;;  %v3575_v14 = vunpack.i.l.bf16 %v5410_v28 }
 0x75e   : > { %v1531_v26 = vsel %vm377_vm2, %v3636_v58, %v3631_v31  ;;  %v1530_v12 = vsel %vm377_vm2, %v3635_v45, %v3630_v50  ;;  %v1526_v9 = vsel %vm377_vm2, %v3630_v50, %v3635_v45  ;;  %v1527_v0 = vsel %vm377_vm2, %v3631_v31, %v3636_v58 }
 0x75f   : > { %2971 = vmatprep.subr.bf16.mxu0 %v2970_v42  ;;  %v3639_v11 = vpop.permute.xlu0 %3638  ;;  %v3644_v52 = vpop.permute.xlu1 %3643 }
 0x760   : > { %v3641_v43 = vunpack.i.h.bf16 %v3639_v11  ;;  %v3640_v24 = vunpack.i.l.bf16 %v3639_v11  ;;  %v3646_v55 = vunpack.i.h.bf16 %v3644_v52  ;;  %v3645_v61 = vunpack.i.l.bf16 %v3644_v52  ;;  %2973 = vmatpush1.bf16.msra.mxu0 %v2972_v32 }
 0x761   : > { %v3570_v11 = vunpack.i.l.bf16 %v5408_v10  ;;  %v3580_v52 = vunpack.i.l.bf16 %v5424_v7  ;;  %v6606_v10 = vunpack.i.h.bf16 %v5430_v18 }
 0x762   : > { %v1551_v42 = vsel %vm384_vm3, %v3641_v43, %v3646_v55  ;;  %v1550_v59 = vsel %vm384_vm3, %v3640_v24, %v3645_v61  ;;  %v1554_v15 = vsel %vm384_vm3, %v3645_v61, %v3640_v24  ;;  %v1555_v13 = vsel %vm384_vm3, %v3646_v55, %v3641_v43 }
 0x763   : > { %v3649_v27 = vpop.permute.xlu0 %3648  ;;  %v3654_v32 = vpop.permute.xlu1 %3653  ;;  %v1561_v50 = vsel %vm4310_vm8, %v1554_v15, %v1526_v9  ;;  %v1563_v31 = vsel %vm4310_vm8, %v1555_v13, %v1527_v0  ;;  %v1560_v58 = vsel %vm4302_vm6, %v1550_v59, %v1530_v12  ;;  %v1562_v45 = vsel %vm4302_vm6, %v1551_v42, %v1531_v26 }
 0x764   : > { %v3581_v61 = vunpack.i.h.bf16 %v5424_v7  ;;  %v3586_v24 = vunpack.i.h.bf16 %v5426_v47  ;;  %v3585_v55 = vunpack.i.l.bf16 %v5426_v47  ;;  %v2974_v9 = vpack.c.bf16 %v1563_v31, %v1561_v50 }
 0x765   : > { %v2976_v0 = vpack.c.bf16 %v1562_v45, %v1560_v58  ;;  %v5503_v26 = vsel %vm377_vm2, %v3570_v11, %v3575_v14  ;;  %v5511_v7 = vsel %vm377_vm2, %v3571_v19, %v6577_v35  ;;  %v3651_v47 = vunpack.i.h.bf16 %v3649_v27 }
 0x766   : > { %v3650_v42 = vunpack.i.l.bf16 %v3649_v27  ;;  %v3656_v59 = vunpack.i.h.bf16 %v3654_v32  ;;  %v3655_v13 = vunpack.i.l.bf16 %v3654_v32  ;;  %2975 = vmatprep.subr.bf16.mxu0 %v2974_v9  ;;  %v5515_v12 = vsel %vm384_vm3, %v3581_v61, %v3586_v24 }
 0x767   : > { %v3659_v50 = vpop.permute.xlu0 %3658  ;;  %v3664_v31 = vpop.permute.xlu1 %3663  ;;  %2977 = vmatpush1.bf16.msra.mxu0 %v2976_v0  ;;  %v5519_v35 = vsel %vm384_vm3, %v3580_v52, %v3585_v55  ;;  %v1664_v27 = vsel %vm384_vm3, %v3585_v55, %v3580_v52  ;;  %v1665_v32 = vsel %vm384_vm3, %v3586_v24, %v3581_v61 }
 0x768   : > { %v3661_v58 = vunpack.i.h.bf16 %v3659_v50  ;;  %v3660_v45 = vunpack.i.l.bf16 %v3659_v50  ;;  %v3666_v43 = vunpack.i.h.bf16 %v3664_v31  ;;  %v3665_v15 = vunpack.i.l.bf16 %v3664_v31  ;;  %2979 = vmatprep.subr.bf16.mxu0 %v2978_v56 }
 0x769   : > { %v1581_v16 = vsel %vm393_vm4, %v3651_v47, %v3656_v59  ;;  %v1580_v36 = vsel %vm393_vm4, %v3650_v42, %v3655_v13  ;;  %v1584_v52 = vsel %vm393_vm4, %v3655_v13, %v3650_v42  ;;  %v1585_v24 = vsel %vm393_vm4, %v3656_v59, %v3651_v47 }
 0x76a   : > { %v1609_v9 = vsel %vm400_vm5, %v3666_v43, %v3661_v58  ;;  %v1608_v0 = vsel %vm400_vm5, %v3665_v15, %v3660_v45  ;;  %v1604_v50 = vsel %vm400_vm5, %v3660_v45, %v3665_v15  ;;  %v1605_v31 = vsel %vm400_vm5, %v3661_v58, %v3666_v43 }
 0x76b   : > { %v3669_v56 = vpop.permute.xlu0 %3668  ;;  %v3674_v61 = vpop.permute.xlu1 %3673  ;;  %2981 = vmatpush1.bf16.msra.mxu0 %v2980_v17  ;;  %v1613_v43 = vsel %vm4314_vm9, %v1604_v50, %v1584_v52  ;;  %v1615_v55 = vsel %vm4314_vm9, %v1605_v31, %v1585_v24  ;;  %v1612_v15 = vsel %vm4306_vm7, %v1608_v0, %v1580_v36  ;;  %v1614_v58 = vsel %vm4306_vm7, %v1609_v9, %v1581_v16 }
 0x76c   : > { %v3671_v42 = vunpack.i.h.bf16 %v3669_v56  ;;  %v3670_v13 = vunpack.i.l.bf16 %v3669_v56  ;;  %v3676_v45 = vunpack.i.h.bf16 %v3674_v61  ;;  %v3675_v47 = vunpack.i.l.bf16 %v3674_v61  ;;  %2983 = vmatprep.subr.bf16.mxu0 %v2982_v60 }
 0x76d   : > { %v1669_v17 = vsel %vm4310_vm8, %v1664_v27, %v5503_v26  ;;  %v1671_v59 = vsel %vm4310_vm8, %v1665_v32, %v5511_v7  ;;  %v3606_v9 = vunpack.i.h.bf16 %v5436_v63  ;;  %v3605_v0 = vunpack.i.l.bf16 %v5436_v63 }
 0x76e   : > { %v2986_v53 = vpack.c.bf16 %v1615_v55, %v1613_v43  ;;  %v2988_v25 = vpack.c.bf16 %v1614_v58, %v1612_v15  ;;  %v6602_v56 = vpack.c.bf16 %v5303_v46, %v5299_v22  ;;  %v1583_v26 = vsel %vm393_vm4, %v3671_v42, %v3676_v45 }
 0x76f   : > { %v3679_v50 = vpop.permute.xlu0 %3678  ;;  %v3689_v31 = vpop.permute.xlu1 %3688  ;;  %v1582_v7 = vsel %vm393_vm4, %v3670_v13, %v3675_v47  ;;  %v1586_v63 = vsel %vm393_vm4, %v3675_v47, %v3670_v13  ;;  %v1587_v27 = vsel %vm393_vm4, %v3676_v45, %v3671_v42  ;;  %v3590_v42 = vunpack.i.l.bf16 %v5430_v18 }
 0x770   : > { %v3681_v60 = vunpack.i.h.bf16 %v3679_v50  ;;  %v3680_v16 = vunpack.i.l.bf16 %v3679_v50  ;;  %v3691_v36 = vunpack.i.h.bf16 %v3689_v31  ;;  %v3690_v57 = vunpack.i.l.bf16 %v3689_v31  ;;  %2985 = vmatpush1.bf16.msra.mxu0 %v6602_v56 }
 0x771   : > { %2987 = vmatprep.subr.bf16.mxu0 %v2986_v53  ;;  %v1640_v13 = vsel %vm377_vm2, %v3575_v14, %v3570_v11  ;;  %v6603_v45 = vunpack.i.l.bf16 %v5434_v41  ;;  %v6604_v50 = vunpack.i.h.bf16 %v5434_v41  ;;  %v6605_v53 = vunpack.i.h.bf16 %v5410_v28 }
 0x772   : > { %v1611_v32 = vsel %vm400_vm5, %v3691_v36, %v3681_v60  ;;  %v1610_v22 = vsel %vm400_vm5, %v3690_v57, %v3680_v16  ;;  %v1606_v46 = vsel %vm400_vm5, %v3680_v16, %v3690_v57  ;;  %v1607_v61 = vsel %vm400_vm5, %v3681_v60, %v3691_v36 }
 0x773   : > { %v5587_v52 = vpop.permute.xlu0 %3683  ;;  %v5589_v24 = vpop.permute.xlu1 %3693  ;;  %v1617_v43 = vsel %vm4314_vm9, %v1606_v46, %v1586_v63  ;;  %v1619_v55 = vsel %vm4314_vm9, %v1607_v61, %v1587_v27  ;;  %v1616_v15 = vsel %vm4306_vm7, %v1610_v22, %v1582_v7  ;;  %v1618_v58 = vsel %vm4306_vm7, %v1611_v32, %v1583_v26 }
 0x774   : > { %2989 = vmatpush1.bf16.msra.mxu0 %v2988_v25  ;;  %v1666_v47 = vsel %vm384_vm3, %v3605_v0, %v6603_v45  ;;  %v1667_v31 = vsel %vm384_vm3, %v3606_v9, %v6604_v50  ;;  %v1641_v60 = vsel %vm377_vm2, %v6605_v53, %v3571_v19  ;;  %v2990_v16 = vpack.c.bf16 %v1619_v55, %v1617_v43 }
 0x775   : > { %v2992_v14 = vpack.c.bf16 %v1618_v58, %v1616_v15  ;;  %v1668_v11 = vsel %vm4302_vm6, %v5519_v35, %v1640_v13  ;;  %v2994_v25 = vpack.c.bf16 %v1671_v59, %v1669_v17  ;;  %v1670_v36 = vsel %vm4302_vm6, %v5515_v12, %v1641_v60 }
 0x776   : > { %v1638_v57 = vsel %vm377_vm2, %v3590_v42, %v3595_v2  ;;  %v1639_v28 = vsel %vm377_vm2, %v6606_v10, %v3596_v49  ;;  %v6607_v19 = vmov %v6604_v50  ;;  %v6608_v35 = vmov %v6603_v45  ;;  %2991 = vmatprep.subr.bf16.mxu0 %v2990_v16 }
 0x777   : > { %v1663_v56 = vsel %vm384_vm3, %v6607_v19, %v3606_v9  ;;  %v1662_v17 = vsel %vm384_vm3, %v6608_v35, %v3605_v0  ;;  %v3699_v12 = vpop.permute.xlu0 %3698  ;;  %v3704_v59 = vpop.permute.xlu1 %3703  ;;  %v1673_v26 = vsel %vm4310_vm8, %v1666_v47, %v1638_v57  ;;  %v1675_v7 = vsel %vm4310_vm8, %v1667_v31, %v1639_v28 }
 0x778   : > { %v3701_v63 = vunpack.i.h.bf16 %v3699_v12  ;;  %v3700_v27 = vunpack.i.l.bf16 %v3699_v12  ;;  %v3706_v32 = vunpack.i.h.bf16 %v3704_v59  ;;  %v3705_v22 = vunpack.i.l.bf16 %v3704_v59  ;;  %2993 = vmatpush1.bf16.msra.mxu0 %v2992_v14 }
 0x779   : > { %v6609_v9 = vmov %v6606_v10  ;;  %v1642_v0 = vsel %vm377_vm2, %v3595_v2, %v3590_v42  ;;  %2995 = vmatprep.subr.bf16.mxu0 %v2994_v25  ;;  %v2996_v46 = vpack.c.bf16 %v1670_v36, %v1668_v11  ;;  %v3686_v61 = vunpack.i.h.bf16 %v5587_v52 }
 0x77a   : > { %v1643_v41 = vsel %vm377_vm2, %v3596_v49, %v6609_v9  ;;  %v3685_v43 = vunpack.i.l.bf16 %v5587_v52  ;;  %v3696_v55 = vunpack.i.h.bf16 %v5589_v24  ;;  %v3695_v15 = vunpack.i.l.bf16 %v5589_v24 }
 0x77b   : > { %v3709_v58 = vpop.permute.xlu0 %3708  ;;  %v3714_v13 = vpop.permute.xlu1 %3713  ;;  %v2998_v45 = vpack.c.bf16 %v1675_v7, %v1673_v26  ;;  %v1672_v18 = vsel %vm4302_vm6, %v1662_v17, %v1642_v0  ;;  %v1674_v49 = vsel %vm4302_vm6, %v1663_v56, %v1643_v41  ;;  %v1716_v2 = vsel %vm400_vm5, %v3700_v27, %v3705_v22 }
 0x77c   : > { %2997 = vmatpush1.bf16.msra.mxu0 %v2996_v46  ;;  %v1717_v52 = vsel %vm400_vm5, %v3701_v63, %v3706_v32  ;;  %v3000_v42 = vpack.c.bf16 %v1674_v49, %v1672_v18  ;;  %v3002_v24 = vpack.c.bf16 %v5198_v38, %v5208_v51  ;;  %v1696_v47 = vsel %vm393_vm4, %v3695_v15, %v3685_v43 }
 0x77d   : > { %2999 = vmatprep.subr.bf16.mxu0 %v2998_v45  ;;  %v1697_v50 = vsel %vm393_vm4, %v3696_v55, %v3686_v61  ;;  %v1721_v31 = vsel %vm400_vm5, %v3706_v32, %v3701_v63  ;;  %v1720_v53 = vsel %vm400_vm5, %v3705_v22, %v3700_v27  ;;  %v1725_v14 = vsel %vm4314_vm9, %v1716_v2, %v1696_v47 }
 0x77e   : > { %v1727_v11 = vsel %vm4314_vm9, %v1717_v52, %v1697_v50  ;;  %v3711_v28 = vunpack.i.h.bf16 %v3709_v58  ;;  %v3710_v19 = vunpack.i.l.bf16 %v3709_v58  ;;  %v3716_v56 = vunpack.i.h.bf16 %v3714_v13 }
 0x77f   : > { %v3719_v60 = vpop.permute.xlu0 %3718  ;;  %v3724_v16 = vpop.permute.xlu1 %3723  ;;  %v3715_v35 = vunpack.i.l.bf16 %v3714_v13  ;;  %v3004_v17 = vpack.c.bf16 %v5194_v44, %v5192_v6  ;;  %v3006_v12 = vpack.c.bf16 %v5227_v48, %v5231_v1  ;;  %v1693_v59 = vsel %vm393_vm4, %v3686_v61, %v3696_v55 }
 0x780   : > { %v3721_v25 = vunpack.i.h.bf16 %v3719_v60  ;;  %v3720_v36 = vunpack.i.l.bf16 %v3719_v60  ;;  %v3726_v57 = vunpack.i.h.bf16 %v3724_v16  ;;  %v3725_v10 = vunpack.i.l.bf16 %v3724_v16  ;;  %3001 = vmatpush1.bf16.msra.mxu0 %v3000_v42 }
 0x781   : > { %3003 = vmatprep.subr.bf16.mxu0 %v3002_v24  ;;  %v1692_v26 = vsel %vm393_vm4, %v3685_v43, %v3695_v15  ;;  %v3008_v22 = vpack.c.bf16 %v5206_v34, %v5204_v54  ;;  %v3010_v9 = vpack.c.bf16 %v1727_v11, %v1725_v14  ;;  %v1726_v0 = vsel %vm4306_vm7, %v1721_v31, %v1693_v59 }
 0x782   : > { %v1719_v7 = vsel %vm400_vm5, %v3721_v25, %v3726_v57  ;;  %v1718_v63 = vsel %vm400_vm5, %v3720_v36, %v3725_v10  ;;  %v1724_v41 = vsel %vm4306_vm7, %v1720_v53, %v1692_v26  ;;  %v1695_v46 = vsel %vm393_vm4, %v3711_v28, %v3716_v56 }
 0x783   : > { %v3729_v27 = vpop.permute.xlu0 %3728  ;;  %v3734_v32 = vpop.permute.xlu1 %3733  ;;  %v1699_v61 = vsel %vm393_vm4, %v3716_v56, %v3711_v28  ;;  %v1694_v43 = vsel %vm393_vm4, %v3710_v19, %v3715_v35  ;;  %v1698_v55 = vsel %vm393_vm4, %v3715_v35, %v3710_v19  ;;  %v1723_v15 = vsel %vm400_vm5, %v3726_v57, %v3721_v25 }
 0x784   : > { %3005 = vmatpush1.bf16.msra.mxu0 %v3004_v17  ;;  %v1722_v58 = vsel %vm400_vm5, %v3725_v10, %v3720_v36  ;;  %v1729_v13 = vsel %vm4314_vm9, %v1718_v63, %v1698_v55  ;;  %v1731_v45 = vsel %vm4314_vm9, %v1719_v7, %v1699_v61  ;;  %v3731_v18 = vunpack.i.h.bf16 %v3729_v27 }
 0x785   : > { %3007 = vmatprep.subr.bf16.mxu0 %v3006_v12  ;;  %v3730_v49 = vunpack.i.l.bf16 %v3729_v27  ;;  %v3736_v2 = vunpack.i.h.bf16 %v3734_v32  ;;  %v3735_v52 = vunpack.i.l.bf16 %v3734_v32  ;;  %v3012_v60 = vpack.c.bf16 %v1726_v0, %v1724_v41 }
 0x786   : > { %v3014_v16 = vpack.c.bf16 %v1731_v45, %v1729_v13  ;;  %v1728_v14 = vsel %vm4306_vm7, %v1722_v58, %v1694_v43  ;;  %v1730_v11 = vsel %vm4306_vm7, %v1723_v15, %v1695_v46 }
 0x787   : > { %v3739_v42 = vpop.permute.xlu0 %3738  ;;  %v3744_v24 = vpop.permute.xlu1 %3743  ;;  %v1749_v28 = vsel %vm377_vm2, %v3731_v18, %v3736_v2  ;;  %v1753_v19 = vsel %vm377_vm2, %v3736_v2, %v3731_v18  ;;  %v1748_v56 = vsel %vm377_vm2, %v3730_v49, %v3735_v52  ;;  %v1752_v35 = vsel %vm377_vm2, %v3735_v52, %v3730_v49 }
 0x788   : > { %v3741_v47 = vunpack.i.h.bf16 %v3739_v42  ;;  %v3740_v50 = vunpack.i.l.bf16 %v3739_v42  ;;  %v3746_v31 = vunpack.i.h.bf16 %v3744_v24  ;;  %v3745_v53 = vunpack.i.l.bf16 %v3744_v24  ;;  %3009 = vmatpush1.bf16.msra.mxu0 %v3008_v22 }
 0x789   : > { %3011 = vmatprep.subr.bf16.mxu0 %v3010_v9  ;;  %v3016_v41 = vpack.c.bf16 %v1730_v11, %v1728_v14 }
 0x78a   : > { %v1773_v25 = vsel %vm384_vm3, %v3741_v47, %v3746_v31  ;;  %v1777_v36 = vsel %vm384_vm3, %v3746_v31, %v3741_v47  ;;  %v1772_v57 = vsel %vm384_vm3, %v3740_v50, %v3745_v53  ;;  %v1776_v10 = vsel %vm384_vm3, %v3745_v53, %v3740_v50 }
 0x78b   : > { %v3749_v17 = vpop.permute.xlu0 %3748  ;;  %v3754_v12 = vpop.permute.xlu1 %3753  ;;  %v1781_v59 = vsel %vm4310_vm8, %v1776_v10, %v1748_v56  ;;  %v1783_v26 = vsel %vm4310_vm8, %v1777_v36, %v1749_v28  ;;  %v1780_v7 = vsel %vm4302_vm6, %v1772_v57, %v1752_v35  ;;  %v1782_v63 = vsel %vm4302_vm6, %v1773_v25, %v1753_v19 }
 0x78c   : > { %3013 = vmatpush1.bf16.msra.mxu0 %v3012_v60  ;;  %v3751_v27 = vunpack.i.h.bf16 %v3749_v17  ;;  %v3750_v32 = vunpack.i.l.bf16 %v3749_v17  ;;  %v3756_v22 = vunpack.i.h.bf16 %v3754_v12  ;;  %v3755_v9 = vunpack.i.l.bf16 %v3754_v12 }
 0x78d   : > { %3015 = vmatprep.subr.bf16.mxu0 %v3014_v16  ;;  %v3018_v61 = vpack.c.bf16 %v1783_v26, %v1781_v59  ;;  %v3020_v43 = vpack.c.bf16 %v1782_v63, %v1780_v7  ;;  %v6610_v26 = vpack.c.bf16 %v5323_v21, %v5319_v5 }
 0x78e   : > { %v1751_v45 = vsel %vm377_vm2, %v3751_v27, %v3756_v22  ;;  %v1755_v18 = vsel %vm377_vm2, %v3756_v22, %v3751_v27  ;;  %v1750_v49 = vsel %vm377_vm2, %v3750_v32, %v3755_v9  ;;  %v1754_v2 = vsel %vm377_vm2, %v3755_v9, %v3750_v32 }
 0x78f   : > { %v3759_v0 = vpop.permute.xlu0 %3758  ;;  %v3764_v46 = vpop.permute.xlu1 %3763 }
 0x790   : > { %v3761_v55 = vunpack.i.h.bf16 %v3759_v0  ;;  %v3760_v15 = vunpack.i.l.bf16 %v3759_v0  ;;  %v3766_v58 = vunpack.i.h.bf16 %v3764_v46  ;;  %v3765_v13 = vunpack.i.l.bf16 %v3764_v46  ;;  %3017 = vmatpush1.bf16.msra.mxu0 %v3016_v41 }
 0x791   : > { %3019 = vmatprep.subr.bf16.mxu0 %v3018_v61  ;;  %v6611_v46 = vpack.c.bf16 %v5335_v62, %v5331_v33  ;;  %v6612_v33 = vpack.c.bf16 %v5343_v3, %v5351_v8 }
 0x792   : > { %v1775_v52 = vsel %vm384_vm3, %v3761_v55, %v3766_v58  ;;  %v1779_v42 = vsel %vm384_vm3, %v3766_v58, %v3761_v55  ;;  %v1774_v24 = vsel %vm384_vm3, %v3760_v15, %v3765_v13  ;;  %v1778_v47 = vsel %vm384_vm3, %v3765_v13, %v3760_v15 }
 0x793   : > { %v3769_v50 = vpop.permute.xlu0 %3768  ;;  %v3774_v31 = vpop.permute.xlu1 %3773  ;;  %v1785_v53 = vsel %vm4310_vm8, %v1778_v47, %v1750_v49  ;;  %v1787_v60 = vsel %vm4310_vm8, %v1779_v42, %v1751_v45  ;;  %v1784_v16 = vsel %vm4302_vm6, %v1774_v24, %v1754_v2  ;;  %v1786_v14 = vsel %vm4302_vm6, %v1775_v52, %v1755_v18 }
 0x794   : > { %3021 = vmatpush1.bf16.msra.mxu0 %v3020_v43  ;;  %v3022_v11 = vpack.c.bf16 %v1787_v60, %v1785_v53  ;;  %v3024_v25 = vpack.c.bf16 %v1786_v14, %v1784_v16  ;;  %v3771_v36 = vunpack.i.h.bf16 %v3769_v50  ;;  %v3770_v57 = vunpack.i.l.bf16 %v3769_v50  ;;  %v1432_v53 = vld [vmem:[%s6566_s5] sm:$0xff] }
 0x795   : > { %v3776_v10 = vunpack.i.h.bf16 %v3774_v31  ;;  %v3775_v28 = vunpack.i.l.bf16 %v3774_v31  ;;  %v6613_v31 = vpack.c.bf16 %v5339_v37, %v5347_v20  ;;  %v1436_v37 = vld [vmem:[%s6566_s5 + $0x20] sm:$0xff] }
 0x796   : > { %3023 = vmatprep.subr.bf16.mxu0 %v3022_v11 }
 0x797   : > { %v3779_v19 = vpop.permute.xlu0 %3778  ;;  %v3784_v56 = vpop.permute.xlu1 %3783  ;;  %v1805_v22 = vsel %vm393_vm4, %v3771_v36, %v3776_v10  ;;  %v1809_v9 = vsel %vm393_vm4, %v3776_v10, %v3771_v36  ;;  %v1804_v5 = vsel %vm393_vm4, %v3770_v57, %v3775_v28  ;;  %v1808_v21 = vsel %vm393_vm4, %v3775_v28, %v3770_v57 }
 0x798   : > { %v3781_v35 = vunpack.i.h.bf16 %v3779_v19  ;;  %v3780_v17 = vunpack.i.l.bf16 %v3779_v19  ;;  %v3786_v12 = vunpack.i.h.bf16 %v3784_v56  ;;  %v3785_v59 = vunpack.i.l.bf16 %v3784_v56  ;;  %3025 = vmatpush1.bf16.msra.mxu0 %v3024_v25  ;;  %v1435_v19 = vld [vmem:[%s6566_s5 + $0x18] sm:$0xff] }
 0x799   : > { %3027 = vmatprep.subr.bf16.mxu0 %v6610_v26  ;;  %v1441_v26 = vld [vmem:[%s6566_s5 + $0x48] sm:$0xff] }
 0x79a   : > { %v1829_v7 = vsel %vm400_vm5, %v3781_v35, %v3786_v12  ;;  %v1833_v63 = vsel %vm400_vm5, %v3786_v12, %v3781_v35  ;;  %v1828_v27 = vsel %vm400_vm5, %v3780_v17, %v3785_v59  ;;  %v1832_v32 = vsel %vm400_vm5, %v3785_v59, %v3780_v17  ;;  %v1439_v17 = vld [vmem:[%s6566_s5 + $0x38] sm:$0xff]  ;;  %v1438_v12 = vld [vmem:[%s6566_s5 + $0x30] sm:$0xff] }
 0x79b   : > { %v3789_v41 = vpop.permute.xlu0 %3788  ;;  %v3794_v0 = vpop.permute.xlu1 %3793  ;;  %v1837_v61 = vsel %vm4314_vm9, %v1828_v27, %v1808_v21  ;;  %v1839_v43 = vsel %vm4314_vm9, %v1829_v7, %v1809_v9  ;;  %v1836_v55 = vsel %vm4306_vm7, %v1832_v32, %v1804_v5  ;;  %v1838_v15 = vsel %vm4306_vm7, %v1833_v63, %v1805_v22  ;;  %v1442_v59 = vld [vmem:[%s6566_s5 + $0x50] sm:$0xff]  ;;  %v1437_v63 = vld [vmem:[%s6566_s5 + $0x28] sm:$0xff]  ;;  %v1440_v27 = vld [vmem:[%s6566_s5 + $0x40] sm:$0xff] }
 0x79c   : > { %3029 = vmatpush1.bf16.msra.mxu0 %v6611_v46  ;;  %v3791_v58 = vunpack.i.h.bf16 %v3789_v41  ;;  %v3790_v13 = vunpack.i.l.bf16 %v3789_v41  ;;  %v3796_v45 = vunpack.i.h.bf16 %v3794_v0  ;;  %v3795_v18 = vunpack.i.l.bf16 %v3794_v0  ;;  %v1434_v7 = vld [vmem:[%s6566_s5 + $0x10] sm:$0xff]  ;;  %v1443_v32 = vld [vmem:[%s6566_s5 + $0x58] sm:$0xff] }
 0x79d   : > { %3031 = vmatprep.subr.bf16.mxu0 %v6612_v33  ;;  %v3034_v2 = vpack.c.bf16 %v1839_v43, %v1837_v61  ;;  %v3036_v52 = vpack.c.bf16 %v1838_v15, %v1836_v55 }
 0x79e   : > { %v1807_v3 = vsel %vm393_vm4, %v3791_v58, %v3796_v45  ;;  %v1811_v8 = vsel %vm393_vm4, %v3796_v45, %v3791_v58  ;;  %v1806_v60 = vsel %vm393_vm4, %v3790_v13, %v3795_v18  ;;  %v1810_v16 = vsel %vm393_vm4, %v3795_v18, %v3790_v13 }
 0x79f   : > { %v3799_v62 = vpop.permute.xlu0 %3798  ;;  %v3804_v49 = vpop.permute.xlu1 %3803 }
 0x7a0   : > { %v3801_v42 = vunpack.i.h.bf16 %v3799_v62  ;;  %v3800_v24 = vunpack.i.l.bf16 %v3799_v62  ;;  %v3806_v47 = vunpack.i.h.bf16 %v3804_v49  ;;  %v3805_v50 = vunpack.i.l.bf16 %v3804_v49  ;;  %3033 = vmatpush1.bf16.msra.mxu0 %v6613_v31 }
 0x7a1   : > { %3035 = vmatprep.subr.bf16.mxu0 %v3034_v2 }
 0x7a2   : > { %v1831_v20 = vsel %vm400_vm5, %v3801_v42, %v3806_v47  ;;  %v1835_v14 = vsel %vm400_vm5, %v3806_v47, %v3801_v42  ;;  %v1830_v11 = vsel %vm400_vm5, %v3800_v24, %v3805_v50  ;;  %v1834_v25 = vsel %vm400_vm5, %v3805_v50, %v3800_v24 }
 0x7a3   : > { %1941 = vmatmul.mubr.f32.vlgmr.msra.gmra.mrb[24].mxu0 %v1432_v53  ;;  %v1841_v36 = vsel %vm4314_vm9, %v1830_v11, %v1810_v16  ;;  %v1843_v57 = vsel %vm4314_vm9, %v1831_v20, %v1811_v8  ;;  %v1840_v10 = vsel %vm4306_vm7, %v1834_v25, %v1806_v60  ;;  %v1842_v28 = vsel %vm4306_vm7, %v1835_v14, %v1807_v3 }
 0x7a4   : > { %3037 = vmatpush1.bf16.msra.mxu0 %v3036_v52  ;;  %1946 = vmatprep.mubr.f32.mxu0 %v1436_v37  ;;  %v3038_v56 = vpack.c.bf16 %v1843_v57, %v1841_v36  ;;  %v3040_v35 = vpack.c.bf16 %v1842_v28, %v1840_v10 }
 0x7a6   : > { %3039 = vmatprep.subr.bf16.mxu0 %v3038_v56 }
 0x7a7   : > { %1947 = vmatmul.mubr.f32.gmra.mrb[26].mxu0 %v1435_v19 }
 0x7a8   : > { %3041 = vmatpush1.bf16.msra.mxu0 %v3040_v35  ;;  %1952 = vmatprep.mubr.f32.mxu0 %v1439_v17 }
 0x7ab   : > { %1953 = vmatmul.mubr.f32.gmra.mrb[28].mxu0 %v1438_v12 }
 0x7ac   : > { %1958 = vmatprep.mubr.f32.mxu0 %v1442_v59 }
 0x7af   : > { %1959 = vmatmul.mubr.f32.gmra.mrb[30].mxu0 %v1441_v26 }
 0x7b0   : > { %2029 = vmatprep.mubr.f32.mxu0 %v6595_v23  ;;  %v1847_v22 = vpop.permute.xlu0 %1846  ;;  %v1852_v0 = vpop.permute.xlu1 %1851 }
 0x7b3   : > { %2866 = vmatmul.mubr.msk.f32.vlgmr.msra.gmra.mrb[24].mxu0 %vm991_vm11, %v1434_v7 }
 0x7b4   : > { %2035 = vmatprep.mubr.f32.mxu0 %v6595_v23  ;;  %v1857_v49 = vpop.permute.xlu1 %1856  ;;  %v1862_v42 = vpop.permute.xlu0 %1861 }
 0x7b7   : > { %2867 = vmatmul.mubr.msk.f32.gmra.mrb[26].mxu0 %vm991_vm11, %v1437_v63 }
 0x7b8   : > { %2041 = vmatprep.mubr.f32.mxu0 %v6595_v23 }
 0x7bb   : > { %2868 = vmatmul.mubr.msk.f32.gmra.mrb[28].mxu0 %vm991_vm11, %v1440_v27 }
 0x7bc   : > { %2047 = vmatprep.mubr.f32.mxu0 %v6595_v23 }
 0x7bf   : > { %2869 = vmatmul.mubr.msk.f32.gmra.mrb[30].mxu0 %vm991_vm11, %v1443_v32 }
 0x7c0   : > { %2627 = vmatprep.mubr.f32.mxu0 %v6595_v23 }
 0x886   : > { %v2031_v9 = vpop.f32.mrb[24].mxu0 }
 0x887   : > { %v2033_v5 = vpop.f32.mrb[25].mxu0  ;;  %v3134_v21 = vadd.f32 %v2031_v9, %v1847_v22 }
 0x888   : > { %v3135_v41 = vadd.f32 %v2033_v5, %v1847_v22 }
 0x889   : > { %v2054_v15 = vmax.f32 %v3134_v21, 0.0 }
 0x88a   : > { %v2037_v46 = vpop.f32.mrb[26].mxu0  ;;  %v2055_v13 = vmax.f32 %v3135_v41, 0.0 }
 0x88b   : > { %v3136_v61 = vadd.f32 %v2037_v46, %v1852_v0  ;;  %v2039_v43 = vpop.f32.mrb[27].mxu0 }
 0x88c   : > { %v3137_v55 = vadd.f32 %v2039_v43, %v1852_v0 }
 0x88d   : > { %v2056_v58 = vmax.f32 %v3136_v61, 0.0 }
 0x88e   : > { %v2057_v45 = vmax.f32 %v3137_v55, 0.0  ;;  %v2043_v18 = vpop.f32.mrb[28].mxu0 }
 0x88f   : > { %v2045_v33 = vpop.f32.mrb[29].mxu0  ;;  %v5864_v62 = vpack.i.bf16 %v2056_v58, %v2054_v15  ;;  %v3138_v52 = vadd.f32 %v2043_v18, %v1857_v49  ;;  %v5874_v3 = vpack.c.bf16 %v2056_v58, %v2054_v15 }
 0x890   : > { %v5866_v2 = vpack.i.bf16 %v2057_v45, %v2055_v13  ;;  %v3139_v24 = vadd.f32 %v2045_v33, %v1857_v49  ;;  %v5872_v53 = vpack.c.bf16 %v2057_v45, %v2055_v13 }
 0x891   : > { %3810 = vrot.lane.b32.xlu1 %v5864_v62, %s4142_s12  ;;  %v2058_v60 = vmax.f32 %v3138_v52, 0.0 }
 0x892   : > { %v2049_v47 = vpop.f32.mrb[30].mxu0  ;;  %3815 = vrot.lane.b32.xlu0 %v5866_v2, %s4142_s12  ;;  %v2059_v37 = vmax.f32 %v3139_v24, 0.0 }
 0x893   : > { %v3140_v50 = vadd.f32 %v2049_v47, %v1862_v42  ;;  %v2051_v31 = vpop.f32.mrb[31].mxu0 }
 0x894   : > { %v3141_v8 = vadd.f32 %v2051_v31, %v1862_v42 }
 0x895   : > { %v2060_v16 = vmax.f32 %v3140_v50, 0.0 }
 0x896   : > { %v2061_v20 = vmax.f32 %v3141_v8, 0.0 }
 0x897   : > { %v5876_v14 = vpack.i.bf16 %v2060_v16, %v2058_v60  ;;  %v5886_v36 = vpack.c.bf16 %v2060_v16, %v2058_v60 }
 0x898   : > { %v5878_v11 = vpack.i.bf16 %v2061_v20, %v2059_v37  ;;  %v5884_v25 = vpack.c.bf16 %v2061_v20, %v2059_v37 }
 0x899   : > { %3820 = vrot.lane.b32.xlu1 %v5876_v14, %s4142_s12 }
 0x89a   : > { %3825 = vrot.lane.b32.xlu0 %v5878_v11, %s4142_s12 }
 0x89d   : > { %3830 = vrot.lane.b32.xlu1 %v5864_v62, %s4141_s11 }
 0x89e   : > { %3835 = vrot.lane.b32.xlu0 %v5866_v2, %s4141_s11 }
 0x8a1   : > { %3840 = vrot.lane.b32.xlu1 %v5876_v14, %s4141_s11 }
 0x8a2   : > { %3850 = vrot.lane.b32.xlu0 %v5866_v2, %s4143_s13 }
 0x8a5   : > { %3845 = vrot.lane.b32.xlu1 %v5864_v62, %s4143_s13 }
 0x8a6   : > { %3860 = vrot.lane.b32.xlu0 %v5866_v2, %s4144_s14 }
 0x8a9   : > { %3855 = vrot.lane.b32.xlu1 %v5864_v62, %s4144_s14 }
 0x8aa   : > { %3865 = vrot.lane.b32.xlu0 %v5878_v11, %s4141_s11 }
 0x903   : > { %v3811_v57 = vpop.permute.xlu1 %3810 }
 0x904   : > { %v3813_v10 = vunpack.i.h.bf16 %v3811_v57  ;;  %v3812_v28 = vunpack.i.l.bf16 %v3811_v57  ;;  %v3816_v19 = vpop.permute.xlu0 %3815 }
 0x905   : > { %v3818_v56 = vunpack.i.h.bf16 %v3816_v19  ;;  %v3817_v35 = vunpack.i.l.bf16 %v3816_v19 }
 0x907   : > { %v5906_v17 = vsel %vm363_vm0, %v3812_v28, %v3817_v35  ;;  %v5910_v12 = vsel %vm363_vm0, %v3813_v10, %v3818_v56  ;;  %v5914_v59 = vsel %vm363_vm0, %v3817_v35, %v3812_v28  ;;  %v5918_v26 = vsel %vm363_vm0, %v3818_v56, %v3813_v10 }
 0x908   : > { %v3869_v7 = vpack.i.bf16 %v5918_v26, %v5914_v59  ;;  %v3874_v63 = vpack.i.bf16 %v5910_v12, %v5906_v17 }
 0x90a   : > { %3870 = vrot.lane.b32.xlu1 %v3869_v7, %s4143_s13  ;;  %3875 = vrot.lane.b32.xlu0 %v3874_v63, %s4143_s13 }
 0x90b   : > { %v3821_v22 = vpop.permute.xlu1 %3820 }
 0x90c   : > { %v3826_v9 = vpop.permute.xlu0 %3825  ;;  %v3823_v21 = vunpack.i.h.bf16 %v3821_v22  ;;  %v3822_v41 = vunpack.i.l.bf16 %v3821_v22 }
 0x90d   : > { %v3828_v0 = vunpack.i.h.bf16 %v3826_v9  ;;  %v3827_v46 = vunpack.i.l.bf16 %v3826_v9 }
 0x90e   : > { %3880 = vrot.lane.b32.xlu1 %v3869_v7, %s4144_s14  ;;  %3885 = vrot.lane.b32.xlu0 %v3874_v63, %s4144_s14 }
 0x90f   : > { %v3831_v5 = vpop.permute.xlu1 %3830  ;;  %v5936_v45 = vsel %vm363_vm0, %v3822_v41, %v3827_v46  ;;  %v5940_v18 = vsel %vm363_vm0, %v3823_v21, %v3828_v0  ;;  %v5944_v33 = vsel %vm363_vm0, %v3827_v46, %v3822_v41  ;;  %v5948_v49 = vsel %vm363_vm0, %v3828_v0, %v3823_v21 }
 0x910   : > { %v3836_v61 = vpop.permute.xlu0 %3835  ;;  %v3833_v43 = vunpack.i.h.bf16 %v3831_v5  ;;  %v3832_v55 = vunpack.i.l.bf16 %v3831_v5  ;;  %v3909_v37 = vpack.i.bf16 %v5948_v49, %v5944_v33  ;;  %v3914_v10 = vpack.i.bf16 %v5940_v18, %v5936_v45 }
 0x911   : > { %v3838_v15 = vunpack.i.h.bf16 %v3836_v61  ;;  %v3837_v58 = vunpack.i.l.bf16 %v3836_v61 }
 0x912   : > { %3890 = vrot.lane.b32.xlu1 %v3869_v7, %s4146_s16  ;;  %3895 = vrot.lane.b32.xlu0 %v3874_v63, %s4146_s16 }
 0x913   : > { %v3841_v13 = vpop.permute.xlu1 %3840  ;;  %v5952_v42 = vsel %vm370_vm1, %v3832_v55, %v3837_v58  ;;  %v5956_v24 = vsel %vm370_vm1, %v3833_v43, %v3838_v15  ;;  %v5960_v47 = vsel %vm370_vm1, %v3837_v58, %v3832_v55  ;;  %v5964_v50 = vsel %vm370_vm1, %v3838_v15, %v3833_v43 }
 0x914   : > { %v3851_v52 = vpop.permute.xlu0 %3850  ;;  %v3843_v41 = vunpack.i.h.bf16 %v3841_v13  ;;  %v3842_v0 = vunpack.i.l.bf16 %v3841_v13 }
 0x915   : > { %v3853_v46 = vunpack.i.h.bf16 %v3851_v52  ;;  %v3852_v61 = vunpack.i.l.bf16 %v3851_v52 }
 0x916   : > { %3900 = vrot.lane.b32.xlu1 %v3869_v7, %s4145_s15  ;;  %3905 = vrot.lane.b32.xlu0 %v3874_v63, %s4145_s15 }
 0x917   : > { %v3846_v31 = vpop.permute.xlu1 %3845 }
 0x918   : > { %v3861_v16 = vpop.permute.xlu0 %3860  ;;  %v3848_v19 = vunpack.i.h.bf16 %v3846_v31  ;;  %v3847_v56 = vunpack.i.l.bf16 %v3846_v31 }
 0x919   : > { %v3863_v22 = vunpack.i.h.bf16 %v3861_v16  ;;  %v3862_v9 = vunpack.i.l.bf16 %v3861_v16 }
 0x91a   : > { %3910 = vrot.lane.b32.xlu1 %v3909_v37, %s4143_s13  ;;  %3915 = vrot.lane.b32.xlu0 %v3914_v10, %s4143_s13 }
 0x91b   : > { %v3856_v28 = vpop.permute.xlu1 %3855 }
 0x91c   : > { %v3858_v35 = vunpack.i.h.bf16 %v3856_v28  ;;  %v3857_v7 = vunpack.i.l.bf16 %v3856_v28  ;;  %v3866_v63 = vpop.permute.xlu0 %3865  ;;  %v2239_v28 = vsel %vm377_vm2, %v3848_v19, %v3853_v46 }
 0x91d   : > { %v3868_v5 = vunpack.i.h.bf16 %v3866_v63  ;;  %v3867_v21 = vunpack.i.l.bf16 %v3866_v63  ;;  %v2242_v63 = vsel %vm377_vm2, %v3852_v61, %v3847_v56 }
 0x91e   : > { %3920 = vrot.lane.b32.xlu1 %v3909_v37, %s4144_s14  ;;  %v2263_v43 = vsel %vm384_vm3, %v3858_v35, %v3863_v22  ;;  %v2267_v55 = vsel %vm384_vm3, %v3863_v22, %v3858_v35  ;;  %v2262_v15 = vsel %vm384_vm3, %v3857_v7, %v3862_v9  ;;  %v2266_v58 = vsel %vm384_vm3, %v3862_v9, %v3857_v7 }
 0x91f   : > { %3930 = vrot.lane.b32.xlu0 %v3914_v10, %s4144_s14  ;;  %v5994_v13 = vsel %vm370_vm1, %v3842_v0, %v3867_v21  ;;  %v5998_v52 = vsel %vm370_vm1, %v3843_v41, %v3868_v5  ;;  %v6002_v31 = vsel %vm370_vm1, %v3867_v21, %v3842_v0  ;;  %v6006_v16 = vsel %vm370_vm1, %v3868_v5, %v3843_v41 }
 0x920   : > { %v2243_v35 = vsel %vm377_vm2, %v3853_v46, %v3848_v19  ;;  %v2238_v7 = vsel %vm377_vm2, %v3847_v56, %v3852_v61  ;;  %v2273_v9 = vsel %vm4310_vm8, %v2267_v55, %v2239_v28  ;;  %v2270_v5 = vsel %vm4302_vm6, %v2262_v15, %v2242_v63  ;;  %v6096_v46 = vld [vmem:[%s6568_s7 + $0x8] sm:$0xff]  ;;  %v6102_v61 = vld [vmem:[%s6568_s7 + $0x10] sm:$0xff] }
 0x921   : > { %v2271_v22 = vsel %vm4310_vm8, %v2266_v58, %v2238_v7  ;;  %v2272_v19 = vsel %vm4302_vm6, %v2263_v43, %v2243_v35  ;;  %v6108_v43 = vld [vmem:[%s6568_s7 + $0x18] sm:$0xff] }
 0x922   : > { %3925 = vrot.lane.b32.xlu1 %v5876_v14, %s4143_s13  ;;  %v6028_v21 = vpack.c.bf16 %v2273_v9, %v2271_v22  ;;  %v6030_v56 = vpack.c.bf16 %v2272_v19, %v2270_v5 }
 0x923   : > { %3935 = vrot.lane.b32.xlu0 %v5878_v11, %s4143_s13 }
 0x926   : > { %3940 = vrot.lane.b32.xlu1 %v5876_v14, %s4144_s14 }
 0x927   : > { %3945 = vrot.lane.b32.xlu0 %v5878_v11, %s4144_s14 }
 0x92a   : > { %3950 = vrot.lane.b32.xlu1 %v3909_v37, %s4146_s16 }
 0x92b   : > { %3955 = vrot.lane.b32.xlu0 %v3914_v10, %s4146_s16 }
 0x92e   : > { %3960 = vrot.lane.b32.xlu1 %v3909_v37, %s4145_s15  ;;  %v4009_v37 = vpack.i.bf16 %v5956_v24, %v5952_v42 }
 0x92f   : > { %3970 = vrot.lane.b32.xlu0 %v3914_v10, %s4145_s15  ;;  %v6090_v10 = vld [vmem:[%s6568_s7] sm:$0xff] }
 0x932   : > { %3965 = vrot.lane.b32.xlu1 %v5864_v62, %s4146_s16 }
 0x933   : > { %3975 = vrot.lane.b32.xlu0 %v5866_v2, %s4146_s16 }
 0x936   : > { %3980 = vrot.lane.b32.xlu1 %v5864_v62, %s4145_s15  ;;  %v4014_v62 = vpack.i.bf16 %v5964_v50, %v5960_v47 }
 0x937   : > { %3985 = vrot.lane.b32.xlu0 %v5866_v2, %s4145_s15  ;;  %v4029_v2 = vpack.i.bf16 %v5998_v52, %v5994_v13 }
 0x93a   : > { %3990 = vrot.lane.b32.xlu1 %v5876_v14, %s4146_s16 }
 0x93b   : > { %3995 = vrot.lane.b32.xlu0 %v5878_v11, %s4146_s16 }
 0x93e   : > { %4000 = vrot.lane.b32.xlu1 %v5876_v14, %s4145_s15  ;;  %v4034_v14 = vpack.i.bf16 %v6006_v16, %v6002_v31 }
 0x93f   : > { %4005 = vrot.lane.b32.xlu0 %v5878_v11, %s4145_s15  ;;  %v1445_v11 = vld [vmem:[%s6567_s6 + $0x8] sm:$0xff] }
 0x940   : > { %2538 = vmatprep.mubr.f32.mxu1 %v1445_v11 }
 0x942   : > { %4010 = vrot.lane.b32.xlu1 %v4009_v37, %s4143_s13 }
 0x943   : > { %4015 = vrot.lane.b32.xlu0 %v4014_v62, %s4143_s13 }
 0x946   : > { %4020 = vrot.lane.b32.xlu1 %v4009_v37, %s4144_s14 }
 0x947   : > { %4025 = vrot.lane.b32.xlu0 %v4014_v62, %s4144_s14 }
 0x94a   : > { %4030 = vrot.lane.b32.xlu1 %v4029_v2, %s4143_s13 }
 0x94b   : > { %4035 = vrot.lane.b32.xlu0 %v4034_v14, %s4143_s13 }
 0x94e   : > { %4040 = vrot.lane.b32.xlu1 %v4029_v2, %s4144_s14 }
 0x94f   : > { %4045 = vrot.lane.b32.xlu0 %v4034_v14, %s4144_s14 }
 0x952   : > { %4050 = vrot.lane.b32.xlu1 %v4009_v37, %s4146_s16 }
 0x953   : > { %4055 = vrot.lane.b32.xlu0 %v4014_v62, %s4146_s16 }
 0x956   : > { %4060 = vrot.lane.b32.xlu1 %v4009_v37, %s4145_s15 }
 0x957   : > { %4065 = vrot.lane.b32.xlu0 %v4014_v62, %s4145_s15 }
 0x95a   : > { %4070 = vrot.lane.b32.xlu1 %v4029_v2, %s4146_s16 }
 0x95b   : > { %4075 = vrot.lane.b32.xlu0 %v4034_v14, %s4146_s16 }
 0x95e   : > { %4080 = vrot.lane.b32.xlu1 %v4029_v2, %s4145_s15 }
 0x95f   : > { %4085 = vrot.lane.b32.xlu0 %v4034_v14, %s4145_s15 }
 0x962   : > { %2447 = vperm.xlu1 %4089, %v6090_v10  }
 0x963   : > { %2451 = vperm.xlu0 %4090, %v6096_v46  }
 0x966   : > { %2455 = vperm.xlu1 %4089, %v6102_v61  }
 0x96a   : > { %2459 = vperm.xlu1 %4089, %v6108_v43  }
 0x97c   : > { %v3871_v55 = vpop.permute.xlu1 %3870  ;;  %v3876_v15 = vpop.permute.xlu0 %3875 }
 0x97d   : > { %v3873_v58 = vunpack.i.h.bf16 %v3871_v55  ;;  %v3872_v28 = vunpack.i.l.bf16 %v3871_v55  ;;  %v3878_v35 = vunpack.i.h.bf16 %v3876_v15  ;;  %v3877_v7 = vunpack.i.l.bf16 %v3876_v15 }
 0x97f   : > { %v2127_v62 = vsel %vm377_vm2, %v3873_v58, %v3878_v35  ;;  %v2131_v2 = vsel %vm377_vm2, %v3878_v35, %v3873_v58  ;;  %v2126_v14 = vsel %vm377_vm2, %v3872_v28, %v3877_v7  ;;  %v2130_v11 = vsel %vm377_vm2, %v3877_v7, %v3872_v28 }
 0x980   : > { %v3881_v63 = vpop.permute.xlu1 %3880  ;;  %v3886_v22 = vpop.permute.xlu0 %3885 }
 0x981   : > { %v3883_v9 = vunpack.i.h.bf16 %v3881_v63  ;;  %v3882_v5 = vunpack.i.l.bf16 %v3881_v63  ;;  %v3888_v19 = vunpack.i.h.bf16 %v3886_v22  ;;  %v3887_v37 = vunpack.i.l.bf16 %v3886_v22 }
 0x983   : > { %v2151_v55 = vsel %vm384_vm3, %v3883_v9, %v3888_v19  ;;  %v2155_v15 = vsel %vm384_vm3, %v3888_v19, %v3883_v9  ;;  %v2150_v63 = vsel %vm384_vm3, %v3882_v5, %v3887_v37  ;;  %v2154_v22 = vsel %vm384_vm3, %v3887_v37, %v3882_v5 }
 0x984   : > { %v3891_v0 = vpop.permute.xlu1 %3890  ;;  %v3896_v58 = vpop.permute.xlu0 %3895  ;;  %v2159_v35 = vsel %vm4310_vm8, %v2154_v22, %v2126_v14  ;;  %v2161_v28 = vsel %vm4310_vm8, %v2155_v15, %v2127_v62  ;;  %v2158_v7 = vsel %vm4302_vm6, %v2150_v63, %v2130_v11  ;;  %v2160_v9 = vsel %vm4302_vm6, %v2151_v55, %v2131_v2 }
 0x985   : > { %v3042_v19 = vpack.c.bf16 %v2161_v28, %v2159_v35  ;;  %v3044_v41 = vpack.c.bf16 %v2160_v9, %v2158_v7  ;;  %v3898_v48 = vunpack.i.h.bf16 %v3896_v58  ;;  %v3897_v34 = vunpack.i.l.bf16 %v3896_v58 }
 0x987   : > { %3043 = vmatprep.subr.bf16.mxu1 %v3042_v19 }
 0x988   : > { %v3901_v57 = vpop.permute.xlu1 %3900  ;;  %v3906_v20 = vpop.permute.xlu0 %3905  ;;  %3045 = vmatpush1.bf16.msra.mxu1 %v3044_v41 }
 0x989   : > { %v3903_v1 = vunpack.i.h.bf16 %v3901_v57  ;;  %v3902_v2 = vunpack.i.l.bf16 %v3901_v57  ;;  %v3908_v57 = vunpack.i.h.bf16 %v3906_v20 }
 0x98c   : > { %v3911_v5 = vpop.permute.xlu1 %3910  ;;  %v3916_v37 = vpop.permute.xlu0 %3915 }
 0x98d   : > { %v3913_v60 = vunpack.i.h.bf16 %v3911_v5  ;;  %v3912_v8 = vunpack.i.l.bf16 %v3911_v5  ;;  %v3918_v14 = vunpack.i.h.bf16 %v3916_v37  ;;  %v3917_v22 = vunpack.i.l.bf16 %v3916_v37 }
 0x98f   : > { %v2129_v55 = vsel %vm377_vm2, %v3913_v60, %v3918_v14  ;;  %v2128_v41 = vsel %vm377_vm2, %v3912_v8, %v3917_v22  ;;  %v2132_v9 = vsel %vm377_vm2, %v3917_v22, %v3912_v8  ;;  %v3893_v8 = vunpack.i.h.bf16 %v3891_v0 }
 0x990   : > { %v3921_v32 = vpop.permute.xlu1 %3920  ;;  %v3892_v22 = vunpack.i.l.bf16 %v3891_v0 }
 0x991   : > { %v3923_v62 = vunpack.i.h.bf16 %v3921_v32  ;;  %v3922_v15 = vunpack.i.l.bf16 %v3921_v32  ;;  %v3931_v27 = vpop.permute.xlu0 %3930  ;;  %v2187_v58 = vsel %vm393_vm4, %v3898_v48, %v3893_v8 }
 0x992   : > { %v3933_v11 = vunpack.i.h.bf16 %v3931_v27  ;;  %v3932_v63 = vunpack.i.l.bf16 %v3931_v27 }
 0x994   : > { %v2153_v35 = vsel %vm384_vm3, %v3923_v62, %v3933_v11  ;;  %v2157_v28 = vsel %vm384_vm3, %v3933_v11, %v3923_v62  ;;  %v2152_v32 = vsel %vm384_vm3, %v3922_v15, %v3932_v63  ;;  %v2156_v27 = vsel %vm384_vm3, %v3932_v63, %v3922_v15  ;;  %v6147_v7 = vpop.permute.xlu1 %3925 }
 0x995   : > { %v6151_v19 = vpop.permute.xlu0 %3935  ;;  %v2163_v5 = vsel %vm4310_vm8, %v2156_v27, %v2128_v41  ;;  %v2165_v37 = vsel %vm4310_vm8, %v2157_v28, %v2129_v55  ;;  %v3907_v62 = vunpack.i.l.bf16 %v3906_v20  ;;  %v2133_v11 = vsel %vm377_vm2, %v3918_v14, %v3913_v60 }
 0x996   : > { %v3046_v54 = vpack.c.bf16 %v2165_v37, %v2163_v5  ;;  %v2162_v15 = vsel %vm4302_vm6, %v2152_v32, %v2132_v9  ;;  %v2164_v63 = vsel %vm4302_vm6, %v2153_v35, %v2133_v11  ;;  %v2207_v60 = vsel %vm400_vm5, %v3903_v1, %v3908_v57 }
 0x997   : > { %v3048_v20 = vpack.c.bf16 %v2164_v63, %v2162_v15  ;;  %v2211_v14 = vsel %vm400_vm5, %v3908_v57, %v3903_v1  ;;  %v2206_v55 = vsel %vm400_vm5, %v3902_v2, %v3907_v62  ;;  %v2210_v0 = vsel %vm400_vm5, %v3907_v62, %v3902_v2 }
 0x998   : > { %3047 = vmatprep.subr.bf16.mxu1 %v3046_v54  ;;  %v6163_v41 = vpop.permute.xlu1 %3940  ;;  %v2183_v54 = vsel %vm393_vm4, %v3893_v8, %v3898_v48  ;;  %v2182_v35 = vsel %vm393_vm4, %v3892_v22, %v3897_v34  ;;  %v2186_v28 = vsel %vm393_vm4, %v3897_v34, %v3892_v22  ;;  %v6614_v1 = vpack.c.bf16 %v5910_v12, %v5906_v17 }
 0x999   : > { %v6165_v27 = vpop.permute.xlu0 %3945  ;;  %3049 = vmatpush1.bf16.msra.mxu1 %v3048_v20  ;;  %v2215_v2 = vsel %vm4314_vm9, %v2206_v55, %v2186_v28  ;;  %v2217_v9 = vsel %vm4314_vm9, %v2207_v60, %v2187_v58  ;;  %v2214_v48 = vsel %vm4306_vm7, %v2210_v0, %v2182_v35  ;;  %v2216_v5 = vsel %vm4306_vm7, %v2211_v14, %v2183_v54 }
 0x99a   : > { %3051 = vmatprep.subr.bf16.mxu1 %v6614_v1  ;;  %v6615_v17 = vpack.c.bf16 %v5918_v26, %v5914_v59  ;;  %v6616_v12 = vpack.c.bf16 %v5940_v18, %v5936_v45  ;;  %v3058_v63 = vpack.c.bf16 %v2217_v9, %v2215_v2  ;;  %v3060_v8 = vpack.c.bf16 %v2216_v5, %v2214_v48 }
 0x99b   : > { %v3928_v22 = vunpack.i.h.bf16 %v6147_v7  ;;  %v3927_v20 = vunpack.i.l.bf16 %v6147_v7  ;;  %v3943_v0 = vunpack.i.h.bf16 %v6163_v41  ;;  %v3942_v54 = vunpack.i.l.bf16 %v6163_v41 }
 0x99c   : > { %v3951_v32 = vpop.permute.xlu1 %3950  ;;  %v3948_v58 = vunpack.i.h.bf16 %v6165_v27  ;;  %v3947_v45 = vunpack.i.l.bf16 %v6165_v27  ;;  %v6617_v7 = vpack.c.bf16 %v5948_v49, %v5944_v33  ;;  %v3937_v48 = vunpack.i.l.bf16 %v6151_v19 }
 0x99d   : > { %v3956_v57 = vpop.permute.xlu0 %3955  ;;  %v3953_v37 = vunpack.i.h.bf16 %v3951_v32  ;;  %v3952_v34 = vunpack.i.l.bf16 %v3951_v32  ;;  %3053 = vmatpush1.bf16.msra.mxu1 %v6615_v17 }
 0x99e   : > { %v3958_v62 = vunpack.i.h.bf16 %v3956_v57  ;;  %v3957_v11 = vunpack.i.l.bf16 %v3956_v57  ;;  %3055 = vmatprep.subr.bf16.mxu1 %v6616_v12  ;;  %v3938_v57 = vunpack.i.h.bf16 %v6151_v19  ;;  %v2264_v19 = vsel %vm384_vm3, %v3942_v54, %v3947_v45 }
 0x9a0   : > { %v3961_v15 = vpop.permute.xlu1 %3960  ;;  %v2189_v18 = vsel %vm393_vm4, %v3958_v62, %v3953_v37  ;;  %v2188_v35 = vsel %vm393_vm4, %v3957_v11, %v3952_v34  ;;  %v2184_v33 = vsel %vm393_vm4, %v3952_v34, %v3957_v11  ;;  %v2185_v5 = vsel %vm393_vm4, %v3953_v37, %v3958_v62 }
 0x9a1   : > { %v3963_v60 = vunpack.i.h.bf16 %v3961_v15  ;;  %v3962_v14 = vunpack.i.l.bf16 %v3961_v15  ;;  %v3971_v55 = vpop.permute.xlu0 %3970  ;;  %3057 = vmatpush1.bf16.msra.mxu1 %v6617_v7  ;;  %v2265_v11 = vsel %vm384_vm3, %v3943_v0, %v3948_v58  ;;  %v2269_v15 = vsel %vm384_vm3, %v3948_v58, %v3943_v0 }
 0x9a2   : > { %v3973_v59 = vunpack.i.h.bf16 %v3971_v55  ;;  %v3972_v26 = vunpack.i.l.bf16 %v3971_v55  ;;  %3059 = vmatprep.subr.bf16.mxu1 %v3058_v63  ;;  %v2268_v37 = vsel %vm384_vm3, %v3947_v45, %v3942_v54  ;;  %v2240_v55 = vsel %vm377_vm2, %v3927_v20, %v3937_v48 }
 0x9a3   : > { %v2244_v0 = vsel %vm377_vm2, %v3937_v48, %v3927_v20  ;;  %v2275_v54 = vsel %vm4310_vm8, %v2268_v37, %v2240_v55 }
 0x9a4   : > { %v2209_v28 = vsel %vm400_vm5, %v3963_v60, %v3973_v59  ;;  %v2213_v41 = vsel %vm400_vm5, %v3973_v59, %v3963_v60  ;;  %v2208_v1 = vsel %vm400_vm5, %v3962_v14, %v3972_v26  ;;  %v2212_v27 = vsel %vm400_vm5, %v3972_v26, %v3962_v14  ;;  %v6221_v32 = vpop.permute.xlu1 %3965 }
 0x9a5   : > { %v6226_v49 = vpop.permute.xlu0 %3975  ;;  %v2219_v2 = vsel %vm4314_vm9, %v2208_v1, %v2188_v35  ;;  %v2221_v9 = vsel %vm4314_vm9, %v2209_v28, %v2189_v18  ;;  %v2218_v12 = vsel %vm4306_vm7, %v2212_v27, %v2184_v33  ;;  %3061 = vmatpush1.bf16.msra.mxu1 %v3060_v8  ;;  %v2220_v34 = vsel %vm4306_vm7, %v2213_v41, %v2185_v5 }
 0x9a6   : > { %v3062_v17 = vpack.c.bf16 %v2221_v9, %v2219_v2  ;;  %v3064_v60 = vpack.c.bf16 %v2220_v34, %v2218_v12  ;;  %v2241_v8 = vsel %vm377_vm2, %v3928_v22, %v3938_v57  ;;  %v2245_v14 = vsel %vm377_vm2, %v3938_v57, %v3928_v22 }
 0x9a7   : > { %v2277_v59 = vsel %vm4310_vm8, %v2269_v15, %v2241_v8  ;;  %v2274_v26 = vsel %vm4302_vm6, %v2264_v19, %v2244_v0  ;;  %v2276_v58 = vsel %vm4302_vm6, %v2265_v11, %v2245_v14  ;;  %v3968_v7 = vunpack.i.h.bf16 %v6221_v32 }
 0x9a8   : > { %3063 = vmatprep.subr.bf16.mxu1 %v3062_v17  ;;  %v3981_v62 = vpop.permute.xlu1 %3980  ;;  %v3967_v28 = vunpack.i.l.bf16 %v6221_v32  ;;  %v3978_v41 = vunpack.i.h.bf16 %v6226_v49  ;;  %v3977_v1 = vunpack.i.l.bf16 %v6226_v49  ;;  %v3070_v57 = vpack.c.bf16 %v2277_v59, %v2275_v54 }
 0x9a9   : > { %v3986_v63 = vpop.permute.xlu0 %3985  ;;  %3065 = vmatpush1.bf16.msra.mxu1 %v3064_v60  ;;  %v3983_v22 = vunpack.i.h.bf16 %v3981_v62  ;;  %v3982_v45 = vunpack.i.l.bf16 %v3981_v62  ;;  %v3072_v9 = vpack.c.bf16 %v2276_v58, %v2274_v26 }
 0x9aa   : > { %v3988_v18 = vunpack.i.h.bf16 %v3986_v63  ;;  %v3987_v35 = vunpack.i.l.bf16 %v3986_v63  ;;  %3067 = vmatprep.subr.bf16.mxu1 %v6028_v21  ;;  %v2299_v32 = vsel %vm393_vm4, %v3978_v41, %v3968_v7  ;;  %v2298_v48 = vsel %vm393_vm4, %v3977_v1, %v3967_v28 }
 0x9ab   : > { %v2295_v54 = vsel %vm393_vm4, %v3968_v7, %v3978_v41  ;;  %v2294_v59 = vsel %vm393_vm4, %v3967_v28, %v3977_v1 }
 0x9ac   : > { %v3991_v20 = vpop.permute.xlu1 %3990  ;;  %v2319_v33 = vsel %vm400_vm5, %v3983_v22, %v3988_v18  ;;  %v2318_v2 = vsel %vm400_vm5, %v3982_v45, %v3987_v35  ;;  %v2323_v63 = vsel %vm400_vm5, %v3988_v18, %v3983_v22  ;;  %v2322_v60 = vsel %vm400_vm5, %v3987_v35, %v3982_v45 }
 0x9ad   : > { %v3996_v27 = vpop.permute.xlu0 %3995  ;;  %3069 = vmatpush1.bf16.msra.mxu1 %v6030_v56  ;;  %v3993_v12 = vunpack.i.h.bf16 %v3991_v20  ;;  %v3992_v56 = vunpack.i.l.bf16 %v3991_v20  ;;  %v2327_v37 = vsel %vm4314_vm9, %v2318_v2, %v2298_v48  ;;  %v2329_v62 = vsel %vm4314_vm9, %v2319_v33, %v2299_v32 }
 0x9ae   : > { %3071 = vmatprep.subr.bf16.mxu1 %v3070_v57  ;;  %v3998_v15 = vunpack.i.h.bf16 %v3996_v27  ;;  %v3997_v19 = vunpack.i.l.bf16 %v3996_v27  ;;  %v3082_v26 = vpack.c.bf16 %v2329_v62, %v2327_v37  ;;  %v2326_v22 = vsel %vm4306_vm7, %v2322_v60, %v2294_v59 }
 0x9af   : > { %v2328_v45 = vsel %vm4306_vm7, %v2323_v63, %v2295_v54 }
 0x9b0   : > { %v4001_v21 = vpop.permute.xlu1 %4000  ;;  %v2301_v58 = vsel %vm393_vm4, %v3998_v15, %v3993_v12  ;;  %v2296_v32 = vsel %vm393_vm4, %v3992_v56, %v3997_v19 }
 0x9b1   : > { %v4003_v49 = vunpack.i.h.bf16 %v4001_v21  ;;  %v4002_v5 = vunpack.i.l.bf16 %v4001_v21  ;;  %v4006_v17 = vpop.permute.xlu0 %4005  ;;  %3073 = vmatpush1.bf16.msra.mxu1 %v3072_v9  ;;  %v2297_v9 = vsel %vm393_vm4, %v3993_v12, %v3998_v15 }
 0x9b2   : > { %v4008_v34 = vunpack.i.h.bf16 %v4006_v17  ;;  %v4007_v11 = vunpack.i.l.bf16 %v4006_v17  ;;  %3075 = vmatprep.subr.bf16.mxu1 %v5872_v53  ;;  %v2300_v53 = vsel %vm393_vm4, %v3997_v19, %v3992_v56 }
 0x9b4   : > { %v4011_v8 = vpop.permute.xlu1 %4010  ;;  %v2321_v14 = vsel %vm400_vm5, %v4003_v49, %v4008_v34  ;;  %v2320_v55 = vsel %vm400_vm5, %v4002_v5, %v4007_v11  ;;  %v2325_v33 = vsel %vm400_vm5, %v4008_v34, %v4003_v49  ;;  %v2324_v2 = vsel %vm400_vm5, %v4007_v11, %v4002_v5 }
 0x9b5   : > { %v4016_v0 = vpop.permute.xlu0 %4015  ;;  %3077 = vmatpush1.bf16.msra.mxu1 %v5874_v3  ;;  %v4013_v18 = vunpack.i.h.bf16 %v4011_v8  ;;  %v4012_v35 = vunpack.i.l.bf16 %v4011_v8  ;;  %v2331_v7 = vsel %vm4314_vm9, %v2320_v55, %v2300_v53  ;;  %v2333_v28 = vsel %vm4314_vm9, %v2321_v14, %v2301_v58 }
 0x9b6   : > { %3079 = vmatprep.subr.bf16.mxu1 %v5884_v25  ;;  %v4018_v41 = vunpack.i.h.bf16 %v4016_v0  ;;  %v4017_v1 = vunpack.i.l.bf16 %v4016_v0  ;;  %v3084_v34 = vpack.c.bf16 %v2328_v45, %v2326_v22  ;;  %v3086_v5 = vpack.c.bf16 %v2333_v28, %v2331_v7 }
 0x9b7   : > { %v2332_v56 = vsel %vm4306_vm7, %v2325_v33, %v2297_v9 }
 0x9b8   : > { %v4021_v20 = vpop.permute.xlu1 %4020  ;;  %v2351_v11 = vsel %vm377_vm2, %v4013_v18, %v4018_v41  ;;  %v2350_v12 = vsel %vm377_vm2, %v4012_v35, %v4017_v1  ;;  %v2355_v0 = vsel %vm377_vm2, %v4018_v41, %v4013_v18  ;;  %v2354_v54 = vsel %vm377_vm2, %v4017_v1, %v4012_v35 }
 0x9b9   : > { %v4023_v3 = vunpack.i.h.bf16 %v4021_v20  ;;  %v4022_v27 = vunpack.i.l.bf16 %v4021_v20  ;;  %v4026_v57 = vpop.permute.xlu0 %4025  ;;  %3081 = vmatpush1.bf16.msra.mxu1 %v5886_v36  ;;  %v2330_v36 = vsel %vm4306_vm7, %v2324_v2, %v2296_v32 }
 0x9ba   : > { %v4028_v21 = vunpack.i.h.bf16 %v4026_v57  ;;  %v4027_v25 = vunpack.i.l.bf16 %v4026_v57  ;;  %3083 = vmatprep.subr.bf16.mxu1 %v3082_v26  ;;  %v3088_v22 = vpack.c.bf16 %v2332_v56, %v2330_v36 }
 0x9bc   : > { %v2379_v48 = vsel %vm384_vm3, %v4028_v21, %v4023_v3  ;;  %v2378_v17 = vsel %vm384_vm3, %v4027_v25, %v4022_v27  ;;  %v4031_v49 = vpop.permute.xlu1 %4030  ;;  %v2375_v19 = vsel %vm384_vm3, %v4023_v3, %v4028_v21  ;;  %v2374_v37 = vsel %vm384_vm3, %v4022_v27, %v4027_v25 }
 0x9bd   : > { %v4036_v15 = vpop.permute.xlu0 %4035  ;;  %v2383_v62 = vsel %vm4310_vm8, %v2378_v17, %v2350_v12  ;;  %v2385_v63 = vsel %vm4310_vm8, %v2379_v48, %v2351_v11  ;;  %v4033_v60 = vunpack.i.h.bf16 %v4031_v49  ;;  %v4032_v8 = vunpack.i.l.bf16 %v4031_v49  ;;  %3085 = vmatpush1.bf16.msra.mxu1 %v3084_v34 }
 0x9be   : > { %v4038_v14 = vunpack.i.h.bf16 %v4036_v15  ;;  %v4037_v55 = vunpack.i.l.bf16 %v4036_v15  ;;  %3087 = vmatprep.subr.bf16.mxu1 %v3086_v5  ;;  %v3090_v45 = vpack.c.bf16 %v2385_v63, %v2383_v62  ;;  %v2382_v28 = vsel %vm4302_vm6, %v2374_v37, %v2354_v54 }
 0x9bf   : > { %v2384_v3 = vsel %vm4302_vm6, %v2375_v19, %v2355_v0  ;;  %v6618_v54 = vpack.c.bf16 %v5964_v50, %v5960_v47 }
 0x9c0   : > { %v4041_v59 = vpop.permute.xlu1 %4040  ;;  %v2353_v18 = vsel %vm377_vm2, %v4033_v60, %v4038_v14  ;;  %v2352_v35 = vsel %vm377_vm2, %v4032_v8, %v4037_v55  ;;  %v2356_v2 = vsel %vm377_vm2, %v4037_v55, %v4032_v8  ;;  %v3092_v25 = vpack.c.bf16 %v2384_v3, %v2382_v28 }
 0x9c1   : > { %v4043_v26 = vunpack.i.h.bf16 %v4041_v59  ;;  %v4042_v58 = vunpack.i.l.bf16 %v4041_v59  ;;  %v4046_v53 = vpop.permute.xlu0 %4045  ;;  %3089 = vmatpush1.bf16.msra.mxu1 %v3088_v22  ;;  %v2357_v48 = vsel %vm377_vm2, %v4038_v14, %v4033_v60 }
 0x9c2   : > { %v4048_v20 = vunpack.i.h.bf16 %v4046_v53  ;;  %v4047_v7 = vunpack.i.l.bf16 %v4046_v53  ;;  %3091 = vmatprep.subr.bf16.mxu1 %v3090_v45 }
 0x9c4   : > { %v2377_v41 = vsel %vm384_vm3, %v4043_v26, %v4048_v20  ;;  %v2381_v1 = vsel %vm384_vm3, %v4048_v20, %v4043_v26  ;;  %v2376_v27 = vsel %vm384_vm3, %v4042_v58, %v4047_v7  ;;  %v2380_v57 = vsel %vm384_vm3, %v4047_v7, %v4042_v58  ;;  %v4051_v33 = vpop.permute.xlu1 %4050 }
 0x9c5   : > { %v4056_v21 = vpop.permute.xlu0 %4055  ;;  %v2387_v9 = vsel %vm4310_vm8, %v2380_v57, %v2352_v35  ;;  %v2389_v32 = vsel %vm4310_vm8, %v2381_v1, %v2353_v18  ;;  %v4053_v17 = vunpack.i.h.bf16 %v4051_v33  ;;  %v2386_v34 = vsel %vm4302_vm6, %v2376_v27, %v2356_v2  ;;  %3093 = vmatpush1.bf16.msra.mxu1 %v3092_v25 }
 0x9c6   : > { %v3094_v49 = vpack.c.bf16 %v2389_v32, %v2387_v9  ;;  %v4052_v5 = vunpack.i.l.bf16 %v4051_v33  ;;  %v4058_v11 = vunpack.i.h.bf16 %v4056_v21  ;;  %v4057_v12 = vunpack.i.l.bf16 %v4056_v21  ;;  %v1444_v32 = vld [vmem:[%s6567_s6] sm:$0xff] }
 0x9c7   : > { %v2388_v15 = vsel %vm4302_vm6, %v2377_v41, %v2357_v48  ;;  %v6619_v18 = vpack.c.bf16 %v5956_v24, %v5952_v42  ;;  %v6620_v41 = vpack.c.bf16 %v6006_v16, %v6002_v31  ;;  %v6621_v16 = vpack.c.bf16 %v5998_v52, %v5994_v13  ;;  %v1448_v13 = vld [vmem:[%s6567_s6 + $0x20] sm:$0xff] }
 0x9c8   : > { %3095 = vmatprep.subr.bf16.mxu1 %v3094_v49  ;;  %v4061_v36 = vpop.permute.xlu1 %4060  ;;  %v3096_v37 = vpack.c.bf16 %v2388_v15, %v2386_v34  ;;  %v2411_v60 = vsel %vm393_vm4, %v4058_v11, %v4053_v17  ;;  %v2410_v8 = vsel %vm393_vm4, %v4057_v12, %v4052_v5  ;;  %v2407_v26 = vsel %vm393_vm4, %v4053_v17, %v4058_v11 }
 0x9c9   : > { %v4063_v56 = vunpack.i.h.bf16 %v4061_v36  ;;  %v4062_v39 = vunpack.i.l.bf16 %v4061_v36  ;;  %v4066_v19 = vpop.permute.xlu0 %4065  ;;  %v2406_v58 = vsel %vm393_vm4, %v4052_v5, %v4057_v12  ;;  %v1447_v36 = vld [vmem:[%s6567_s6 + $0x18] sm:$0xff] }
 0x9ca   : > { %v4068_v62 = vunpack.i.h.bf16 %v4066_v19  ;;  %v4067_v63 = vunpack.i.l.bf16 %v4066_v19  ;;  %3097 = vmatpush1.bf16.msra.mxu1 %v3096_v37  ;;  %v1453_v19 = vld [vmem:[%s6567_s6 + $0x48] sm:$0xff] }
 0x9cb   : > { %3099 = vmatprep.subr.bf16.mxu1 %v6618_v54  ;;  %v1449_v37 = vld [vmem:[%s6567_s6 + $0x28] sm:$0xff] }
 0x9cc   : > { %v2431_v14 = vsel %vm400_vm5, %v4063_v56, %v4068_v62  ;;  %v2435_v29 = vsel %vm400_vm5, %v4068_v62, %v4063_v56  ;;  %v2430_v55 = vsel %vm400_vm5, %v4062_v39, %v4067_v63  ;;  %v2434_v0 = vsel %vm400_vm5, %v4067_v63, %v4062_v39  ;;  %v4071_v59 = vpop.permute.xlu1 %4070  ;;  %v1450_v56 = vld [vmem:[%s6567_s6 + $0x30] sm:$0xff]  ;;  %v1452_v62 = vld [vmem:[%s6567_s6 + $0x40] sm:$0xff]  ;;  %v1455_v63 = vld [vmem:[%s6567_s6 + $0x58] sm:$0xff] }
 0x9cd   : > { %v4076_v53 = vpop.permute.xlu0 %4075  ;;  %v2439_v22 = vsel %vm4314_vm9, %v2430_v55, %v2410_v8  ;;  %v2441_v45 = vsel %vm4314_vm9, %v2431_v14, %v2411_v60  ;;  %v4073_v20 = vunpack.i.h.bf16 %v4071_v59  ;;  %v2438_v47 = vsel %vm4306_vm7, %v2434_v0, %v2406_v58  ;;  %v1454_v39 = vld [vmem:[%s6567_s6 + $0x50] sm:$0xff] }
 0x9ce   : > { %v4078_v7 = vunpack.i.h.bf16 %v4076_v53  ;;  %v3106_v28 = vpack.c.bf16 %v2441_v45, %v2439_v22  ;;  %v4072_v50 = vunpack.i.l.bf16 %v4071_v59  ;;  %v4077_v3 = vunpack.i.l.bf16 %v4076_v53  ;;  %3101 = vmatpush1.bf16.msra.mxu1 %v6619_v18 }
 0x9cf   : > { %v2440_v35 = vsel %vm4306_vm7, %v2435_v29, %v2407_v26  ;;  %3103 = vmatprep.subr.bf16.mxu1 %v6620_v41 }
 0x9d0   : > { %v4081_v1 = vpop.permute.xlu1 %4080  ;;  %3107 = vmatprep.subr.bf16.mxu0 %v3106_v28  ;;  %v3108_v2 = vpack.c.bf16 %v2440_v35, %v2438_v47  ;;  %v2409_v21 = vsel %vm393_vm4, %v4073_v20, %v4078_v7  ;;  %v2413_v42 = vsel %vm393_vm4, %v4078_v7, %v4073_v20  ;;  %v2408_v24 = vsel %vm393_vm4, %v4072_v50, %v4077_v3 }
 0x9d1   : > { %v4083_v27 = vunpack.i.h.bf16 %v4081_v1  ;;  %v4082_v57 = vunpack.i.l.bf16 %v4081_v1  ;;  %v4086_v33 = vpop.permute.xlu0 %4085  ;;  %v2412_v31 = vsel %vm393_vm4, %v4077_v3, %v4072_v50 }
 0x9d2   : > { %v4088_v25 = vunpack.i.h.bf16 %v4086_v33  ;;  %v4087_v9 = vunpack.i.l.bf16 %v4086_v33  ;;  %3105 = vmatpush1.bf16.msra.mxu1 %v6621_v16  ;;  %3109 = vmatpush1.bf16.msra.mxu0 %v3108_v2 }
 0x9d3   : > { %3114 = vmatprep.subr.bf16.mxu1 %v3106_v28 }
 0x9d4   : > { %v2433_v48 = vsel %vm400_vm5, %v4083_v27, %v4088_v25  ;;  %v2437_v17 = vsel %vm400_vm5, %v4088_v25, %v4083_v27  ;;  %v2432_v49 = vsel %vm400_vm5, %v4082_v57, %v4087_v9  ;;  %v2436_v34 = vsel %vm400_vm5, %v4087_v9, %v4082_v57 }
 0x9d5   : > { %v2443_v52 = vsel %vm4314_vm9, %v2432_v49, %v2412_v31  ;;  %v2445_v5 = vsel %vm4314_vm9, %v2433_v48, %v2413_v42  ;;  %v2442_v11 = vsel %vm4306_vm7, %v2436_v34, %v2408_v24  ;;  %v2444_v12 = vsel %vm4306_vm7, %v2437_v17, %v2409_v21  ;;  %2539 = vmatmul.mubr.f32.vlgmr.msra.gmra.mrb[8].mxu1 %v1444_v32 }
 0x9d6   : > { %v3110_v4 = vpack.c.bf16 %v2445_v5, %v2443_v52  ;;  %v3112_v15 = vpack.c.bf16 %v2444_v12, %v2442_v11  ;;  %3116 = vmatpush1.bf16.msra.mxu1 %v3108_v2  ;;  %2544 = vmatprep.mubr.f32.mxu1 %v1448_v13 }
 0x9d8   : > { %3111 = vmatprep.subr.bf16.mxu0 %v3110_v4  ;;  %3115 = vmatprep.subr.bf16.mxu1 %v3110_v4 }
 0x9d9   : > { %3113 = vmatpush1.bf16.msra.mxu0 %v3112_v15  ;;  %2545 = vmatmul.mubr.f32.gmra.mrb[10].mxu1 %v1447_v36 }
 0x9da   : > { %3117 = vmatpush1.bf16.msra.mxu1 %v3112_v15  ;;  %2550 = vmatprep.mubr.f32.mxu1 %v1451_v40 }
 0x9dc   : > { %2870 = vmatmul.mubr.msk.f32.vlgmr.msra.gmra.mrb[32].mxu0 %vm991_vm11, %v1446_v30 }
 0x9dd   : > { %2551 = vmatmul.mubr.f32.gmra.mrb[12].mxu1 %v1450_v56 }
 0x9de   : > { %2556 = vmatprep.mubr.f32.mxu1 %v1454_v39 }
 0x9e1   : > { %2557 = vmatmul.mubr.f32.gmra.mrb[14].mxu1 %v1453_v19  ;;  %v2448_v14 = vpop.permute.xlu1 %2447 }
 0x9e2   : > { %2633 = vmatprep.mubr.f32.mxu1 %v6595_v23  ;;  %v2452_v22 = vpop.permute.xlu0 %2451 }
 0x9e5   : > { %2871 = vmatmul.mubr.msk.f32.vlgmr.msra.gmra.mrb[10].mxu1 %vm991_vm11, %v1449_v37  ;;  %v2456_v28 = vpop.permute.xlu1 %2455 }
 0x9e6   : > { %2639 = vmatprep.mubr.f32.mxu1 %v6595_v23 }
 0x9e9   : > { %2872 = vmatmul.mubr.msk.f32.gmra.mrb[12].mxu1 %vm991_vm11, %v1452_v62  ;;  %v2460_v33 = vpop.permute.xlu1 %2459 }
 0x9ea   : > { %2645 = vmatprep.mubr.f32.mxu1 %v6595_v23 }
 0x9ed   : > { %2873 = vmatmul.mubr.msk.f32.gmra.mrb[14].mxu1 %vm991_vm11, %v1455_v63 }
 0xaa8   : > { %v2540_v60 = vpop.f32.mrb[8].mxu1 }
 0xaa9   : > { %v2542_v8 = vpop.f32.mrb[9].mxu1  ;;  %v2541_v29 = vadd.f32 %v2540_v60, %v2448_v14 }
 0xaaa   : > { %v2543_v55 = vadd.f32 %v2542_v8, %v2448_v14 }
 0xaaf   : > { %v2629_v0 = vpop.f32.mrb[32].mxu0 }
 0xab0   : > { %v6469_v54 = vadd.f32 %v2629_v0, %v2541_v29  ;;  %v2631_v59 = vpop.f32.mrb[33].mxu0 }
 0xab1   : > { %v6471_v26 = vadd.f32 %v2631_v59, %v2543_v55 }
 0xab2   : > { %v2652_v58 = vmax.f32 %v6469_v54, 0.0 }
 0xab3   : > { %v2653_v23 = vmax.f32 %v6471_v26, 0.0 }
 0xab5   : > { %v2660_v53 = vadd.f32 %v2653_v23, %v2652_v58 }
 0xab7   : > { %2661 = vadd.xlane.f32.xlu0 %v2660_v53 }
 0xab8   : > { %v2635_v45 = vpop.f32.mrb[10].mxu1 }
 0xab9   : > { %v6479_v20 = vadd.f32 %v2635_v45, %v2452_v22  ;;  %v2637_v7 = vpop.f32.mrb[11].mxu1 }
 0xaba   : > { %v6481_v47 = vadd.f32 %v2637_v7, %v2452_v22 }
 0xabb   : > { %v2654_v50 = vmax.f32 %v6479_v20, 0.0 }
 0xabc   : > { %v2655_v3 = vmax.f32 %v6481_v47, 0.0  ;;  %v2641_v18 = vpop.f32.mrb[12].mxu1 }
 0xabd   : > { %v6485_v35 = vadd.f32 %v2641_v18, %v2456_v28  ;;  %v2643_v41 = vpop.f32.mrb[13].mxu1 }
 0xabe   : > { %v2663_v1 = vadd.f32 %v2655_v3, %v2654_v50  ;;  %v6491_v27 = vadd.f32 %v2643_v41, %v2456_v28 }
 0xabf   : > { %v2656_v57 = vmax.f32 %v6485_v35, 0.0 }
 0xac0   : > { %v2657_v2 = vmax.f32 %v6491_v27, 0.0  ;;  %v2647_v21 = vpop.f32.mrb[14].mxu1  ;;  %2664 = vadd.xlane.f32.xlu1 %v2663_v1 }
 0xac1   : > { %v6495_v25 = vadd.f32 %v2647_v21, %v2460_v33  ;;  %v2649_v9 = vpop.f32.mrb[15].mxu1 }
 0xac2   : > { %v2666_v42 = vadd.f32 %v2657_v2, %v2656_v57  ;;  %v6501_v24 = vadd.f32 %v2649_v9, %v2460_v33 }
 0xac3   : > { %v2658_v31 = vmax.f32 %v6495_v25, 0.0  ;;  %v6624_v25 = vld [vmem:[#allocation2_spill] sm:$0xff] }
 0xac4   : > { %v2659_v16 = vmax.f32 %v6501_v24, 0.0  ;;  %2667 = vadd.xlane.f32.xlu0 %v2666_v42  ;;  %v6625_v24 = vld [vmem:[#allocation5_spill] sm:$0xff] }
 0xac6   : > { %v2669_v32 = vadd.f32 %v2659_v16, %v2658_v31 }
 0xac8   : > { %2670 = vadd.xlane.f32.xlu0 %v2669_v32 }
 0xb44   : > { %v2662_v48 = vpop.xlane.xlu0 %2661 }
 0xb45   : > { %v2672_v49 = vmul.f32 0.00390625, %v2662_v48 }
 0xb47   : > { %v2676_v5 = vmul.f32 %v6090_v10, %v2672_v49 }
 0xb49   : > { %v2680_v36 = vsel %vm1210_vm12, %v2676_v5, 0.0 }
 0xb4d   : > { %v2665_v17 = vpop.xlane.xlu1 %2664 }
 0xb4e   : > { %v2673_v34 = vmul.f32 0.00390625, %v2665_v17 }
 0xb50   : > { %v2677_v13 = vmul.f32 %v6096_v46, %v2673_v34 }
 0xb51   : > { %v2668_v52 = vpop.xlane.xlu0 %2667 }
 0xb52   : > { %v2674_v11 = vmul.f32 0.00390625, %v2668_v52  ;;  %v2681_v12 = vsel %vm1210_vm12, %v2677_v13, 0.0 }
 0xb53   : > { %v2682_v56 = vadd.f32 %v2681_v12, %v2680_v36 }
 0xb54   : > { %v2678_v4 = vmul.f32 %v6102_v61, %v2674_v11 }
 0xb55   : > { %v2671_v15 = vpop.xlane.xlu0 %2670 }
 0xb56   : > { %v2683_v40 = vsel %vm1210_vm12, %v2678_v4, 0.0  ;;  %v2675_v30 = vmul.f32 0.00390625, %v2671_v15 }
 0xb57   : > { %v2684_v19 = vadd.f32 %v2683_v40, %v2682_v56 }
 0xb58   : > { %v2679_v39 = vmul.f32 %v6108_v43, %v2675_v30 }
 0xb5a   : > { %v2685_v37 = vsel %vm1210_vm12, %v2679_v39, 0.0 }
 0xb5b   : > { %v2686_v62 = vadd.f32 %v2685_v37, %v2684_v19 }
 0xb5d   : > { %v2687_v63 = vrot.slane %v2686_v62, 4 }
 0xb5f   : > { %v2688_v60 = vadd.f32 %v2687_v63, %v2686_v62 }
 0xb61   : > { %v2689_v8 = vrot.slane %v2688_v60, 2 }
 0xb63   : > { %v2690_v14 = vadd.f32 %v2689_v8, %v2688_v60  ;;  %v6623_v8 = vld [vmem:[#allocation4_spill] sm:$0xff] }
 0xb65   : > { %v2691_v29 = vrot.slane %v2690_v14, 1 }
 0xb67   : > { %v2692_v55 = vadd.f32 %v2691_v29, %v2690_v14 }
 0xb69   : > { %v2693_v0 = vmax.f32 %v2692_v55, 0.0 }
 0xb6b   : > { %2695 = vrot.lane.b32.xlu1 %v2693_v0, %s4151_s17  ;;  %s2881_s17 = sshll.u32 %s6627_s28, 6 }
 0xb6c   : > { %s305_s28 = scalar_lea.vmem %s6569_s8, %s2881_s17 }
 0xbdd   : > { %v2696_v59 = vpop.permute.xlu1 %2695 }
 0xbde   : > { %v2698_v53 = vmul.f32 %v6090_v10, %v2696_v59  ;;  %v2699_v22 = vmul.f32 %v6096_v46, %v2696_v59  ;;  %v2700_v45 = vmul.f32 %v6102_v61, %v2696_v59  ;;  %v2701_v7 = vmul.f32 %v6108_v43, %v2696_v59 }
 0xbe0   : > { %2708 = vrot.lane.b32.xlu1 %v2699_v22, %s4152_s20  ;;  %2706 = vrot.lane.b32.xlu0 %v2698_v53, %s4152_s20 }
 0xbe4   : > { %2710 = vrot.lane.b32.xlu1 %v2700_v45, %s4152_s20  ;;  %2712 = vrot.lane.b32.xlu0 %v2701_v7, %s4152_s20 }
 0xc52   : > { %v2709_v28 = vpop.permute.xlu1 %2708  ;;  %v2707_v18 = vpop.permute.xlu0 %2706 }
 0xc53   : > { %v2721_v41 = vsel %vm1249_vm14, %v2709_v28, 0.0  ;;  %v2718_v10 = vsel %vm1249_vm14, %v2707_v18, 0.0 }
 0xc54   : > { %2722 = vadd.xlane.f32.xlu0 %v2721_v41  ;;  %2719 = vadd.xlane.f32.xlu1 %v2718_v10 }
 0xc56   : > { %v2711_v46 = vpop.permute.xlu1 %2710  ;;  %v2713_v1 = vpop.permute.xlu0 %2712 }
 0xc57   : > { %v2724_v33 = vsel %vm1249_vm14, %v2711_v46, 0.0  ;;  %v2727_v61 = vsel %vm1249_vm14, %v2713_v1, 0.0 }
 0xc58   : > { %2725 = vadd.xlane.f32.xlu0 %v2724_v33  ;;  %2728 = vadd.xlane.f32.xlu1 %v2727_v61 }
 0xce1   : > { %v2720_v43 = vpop.xlane.xlu1 %2719  ;;  %v2723_v21 = vpop.xlane.xlu0 %2722 }
 0xce2   : > { %v2874_v9 = vmul.f32 -1.442695, %v2720_v43  ;;  %v2875_v42 = vmul.f32 -1.442695, %v2723_v21 }
 0xce4   : > { %4107 = vpow2.f32 %v2874_v9 }
 0xce5   : > { %4109 = vpow2.f32 %v2875_v42  ;;  %v2729_v32 = vpop.xlane.xlu1 %2728  ;;  %v2726_v48 = vpop.xlane.xlu0 %2725 }
 0xce6   : > { %v2877_v17 = vmul.f32 -1.442695, %v2729_v32  ;;  %v2876_v49 = vmul.f32 -1.442695, %v2726_v48 }
 0xce8   : > { %4111 = vpow2.f32 %v2877_v17 }
 0xce9   : > { %4113 = vpow2.f32 %v2876_v49 }
 0xcee   : > { %v4108_v34 = vpop.eup %4107 }
 0xcef   : > { %v4110_v13 = vpop.eup %4109  ;;  %v2742_v52 = vadd.f32 1.0, %v4108_v34 }
 0xcf0   : > { %v2743_v5 = vadd.f32 1.0, %v4110_v13 }
 0xcf1   : > { %4115 = vrcp.f32 %v2742_v52 }
 0xcf2   : > { %v4112_v11 = vpop.eup %4111  ;;  %4117 = vrcp.f32 %v2743_v5 }
 0xcf3   : > { %v4114_v12 = vpop.eup %4113  ;;  %v2745_v4 = vadd.f32 1.0, %v4112_v11 }
 0xcf4   : > { %v2744_v15 = vadd.f32 1.0, %v4114_v12 }
 0xcf5   : > { %4119 = vrcp.f32 %v2745_v4 }
 0xcf6   : > { %4121 = vrcp.f32 %v2744_v15 }
 0xcfb   : > { %v4116_v36 = vpop.eup %4115 }
 0xcfc   : > { %v4118_v40 = vpop.eup %4117  ;;  %v2754_v30 = vmul.f32 %v4116_v36, %v2652_v58  ;;  %v2755_v56 = vmul.f32 %v4116_v36, %v2653_v23 }
 0xcfd   : > { %v2756_v39 = vmul.f32 %v4118_v40, %v2654_v50  ;;  %v2757_v19 = vmul.f32 %v4118_v40, %v2655_v3 }
 0xcfe   : > { %v2762_v37 = vadd.f32 %v2754_v30, %v5192_v6  ;;  %v2763_v62 = vadd.f32 %v2755_v56, %v5208_v51 }
 0xcff   : > { %v4120_v63 = vpop.eup %4119  ;;  %v2764_v54 = vadd.f32 %v2756_v39, %v5194_v44  ;;  %v2765_v26 = vadd.f32 %v2757_v19, %v5198_v38  ;;  %v6622_v44 = vld [vmem:[#allocation3_spill] sm:$0xff] }
 0xd00   : > { %v4122_v58 = vpop.eup %4121  ;;  %v2770_v23 = vmax.f32 %v2762_v37, 0.0  ;;  %v2771_v20 = vmax.f32 %v2763_v62, 0.0  ;;  %v2760_v47 = vmul.f32 %v4120_v63, %v2658_v31  ;;  %v2761_v6 = vmul.f32 %v4120_v63, %v2659_v16 }
 0xd01   : > { %v2772_v50 = vmax.f32 %v2764_v54, 0.0  ;;  %v2773_v51 = vmax.f32 %v2765_v26, 0.0  ;;  %v2758_v3 = vmul.f32 %v4122_v58, %v2656_v57  ;;  %v2759_v60 = vmul.f32 %v4122_v58, %v2657_v2 }
 0xd02   : > { %2778 = vst [vmem:[%s305_s28] sm:$0xff] %v2770_v23  ;;  %2779 = vst [vmem:[%s305_s28 + $0x8] sm:$0xff] %v2771_v20  ;;  %v2768_v38 = vadd.f32 %v2760_v47, %v6622_v44  ;;  %v2769_v14 = vadd.f32 %v2761_v6, %v6623_v8 }
 0xd03   : > { %2780 = vst [vmem:[%s305_s28 + $0x10] sm:$0xff] %v2772_v50  ;;  %2781 = vst [vmem:[%s305_s28 + $0x18] sm:$0xff] %v2773_v51  ;;  %v2766_v31 = vadd.f32 %v2758_v3, %v6624_v25  ;;  %v2767_v16 = vadd.f32 %v2759_v60, %v6625_v24 }
 0xd04   : > { %v2776_v29 = vmax.f32 %v2768_v38, 0.0  ;;  %v2777_v55 = vmax.f32 %v2769_v14, 0.0 }
 0xd05   : > { %v2774_v0 = vmax.f32 %v2766_v31, 0.0  ;;  %v2775_v35 = vmax.f32 %v2767_v16, 0.0 }
 0xd06   : > { %2784 = vst [vmem:[%s305_s28 + $0x30] sm:$0xff] %v2776_v29  ;;  %2785 = vst [vmem:[%s305_s28 + $0x38] sm:$0xff] %v2777_v55 }
 0xd07   : > { %2782 = vst [vmem:[%s305_s28 + $0x20] sm:$0xff] %v2774_v0  ;;  %2783 = vst [vmem:[%s305_s28 + $0x28] sm:$0xff] %v2775_v35 }
 0xd08 PF: > { %s18_s27 = sadd.s32 1, %s4139_s27  }
 0xd09   : > { %p15_p4 = scmp.ge.s32.totalorder %s18_s27, 4  }
 0xd0b   :  { %17 = sbr.rel (!%p15_p4) target bundleno = 1 (0x1), region = 82 }

</bundles_post_ra>
